<compile_context>
chip_gen: v7x
topology: tpu7x:2x2x1
jax: 0.10.0
libtpu: 0.0.40
codegen_flags: <defaults>
</compile_context>

<pallas_src>
import numpy as np
import jax
import jax.numpy as jnp
from jax.experimental import pallas as pl
from jax.experimental.pallas import tpu as pltpu


def _round_up(x, m):
    return ((x + m - 1) // m) * m


def _divisors(n):
    return [d for d in range(1, n + 1) if n % d == 0]


def _tpu_generation():
    try:
        kind = jax.devices()[0].device_kind.lower()
    except Exception:
        return "unknown"
    for tag in ("v7", "v6", "v5", "v4"):
        if tag in kind:
            return tag
    return "unknown"


def _vmem_budget(gen):
    """(tile-picker byte budget, vmem_limit_bytes for the compiler)."""
    if gen == "v7":
        return 40 << 20, 48 << 20          # 64 MiB per-TC physical VMEM
    if gen in ("v6", "v5"):
        return 80 << 20, 100 << 20         # 128 MiB physical VMEM
    return 24 << 20, 32 << 20              # conservative default


def _pick_row_tile(H, W, bytes_fn, budget):
    """Largest even divisor TH of H with 8-aligned full/pooled tile heights and
    an estimated per-step VMEM footprint <= budget."""
    N, M = H * W, (H // 2) * (W // 2)
    cands = []
    for th in _divisors(H):
        if th % 2:
            continue
        thw, tm = th * W, (th // 2) * (W // 2)
        if thw % 8 and thw != N:
            continue
        if tm % 8 and tm != M:
            continue
        cands.append(th)
    if not cands:
        cands = [H]
    cands.sort(reverse=True)
    for th in cands:
        if bytes_fn(th) <= budget:
            return th
    return cands[-1]


def _pick_n_tile(N, bytes_fn, budget, batch=1, min_steps=1):
    """Largest divisor of N (multiple of 8, or N itself) whose estimated VMEM
    footprint fits `budget`; on v7x also prefer enough grid steps for 2 TCs."""
    cands = [tn for tn in _divisors(N) if tn % 8 == 0 or tn == N]
    cands.sort(reverse=True)
    fit = [tn for tn in cands if bytes_fn(tn) <= budget]
    if not fit:
        return cands[-1]
    for tn in fit:
        if batch * (N // tn) >= min_steps:
            return tn
    return fit[0]


def non_local_block_2d(x, params, *, data_format="NCHW", return_attn=True,
                       attn_dtype=jnp.bfloat16, recompute_theta=None):
    if data_format == "NCHW":
        B, C, H, W = x.shape
        x_nhwc = jnp.transpose(x, (0, 2, 3, 1))
    else:
        B, H, W, C = x.shape
        x_nhwc = x
    # TODO(synk): PyTorch MaxPool2d floors odd spatial dims; only even H/W here.
    assert H % 2 == 0 and W % 2 == 0, "sub_sample=True 2x2 max-pool expects even H, W"

    IC = params["w_theta"].shape[0]
    N = H * W
    M = (H // 2) * (W // 2)
    Cp = _round_up(C, 128)                 # lane-dense channel padding
    ICp = _round_up(IC, 128)
    attn_bytes = np.dtype(attn_dtype).itemsize

    gen = _tpu_generation()
    vmem_budget, vmem_limit = _vmem_budget(gen)

    if recompute_theta is None:
        # Memory-bound regime (small/medium C): skip the full-res theta HBM
        # round trip and recompute it from the x tile already in VMEM.
        recompute_theta = Cp <= 512

    # ---- host-side layout: channels-last (B, N, Cp), zero-padded ------------
    x_flat = x_nhwc.reshape(B, N, C).astype(jnp.float32)
    if Cp != C:
        x_flat = jnp.pad(x_flat, ((0, 0), (0, 0), (0, Cp - C)))
    x_bf16 = x_flat.astype(jnp.bfloat16)   # stage-1 feed: halves input DMA

    def _pad2(a, r, c):
        return jnp.pad(a, ((0, r - a.shape[0]), (0, c - a.shape[1])))

    def _pad1(a, n):
        return jnp.pad(a, ((0, n - a.shape[0]),))

    w_g_p = _pad2(params["w_g"].T, Cp, ICp)
    w_th_p = _pad2(params["w_theta"].T, Cp, ICp)
    w_ph_p = _pad2(params["w_phi"].T, Cp, ICp)
    b_g_p = _pad1(params["b_g"], ICp)
    b_th_p = _pad1(params["b_theta"], ICp)
    b_ph_p = _pad1(params["b_phi"], ICp)

    if recompute_theta:
        branches = [(w_g_p, b_g_p), (w_ph_p, b_ph_p)]                  # g, phi
    else:
        branches = [(w_g_p, b_g_p), (w_th_p, b_th_p), (w_ph_p, b_ph_p)]
    n_br = len(branches)
    w_cat = jnp.concatenate([w for w, _ in branches], axis=1).astype(jnp.bfloat16)
    b_cat = jnp.concatenate([b for _, b in branches]).reshape(1, n_br * ICp).astype(jnp.float32)

    # ---- fold inference-mode BatchNorm2d into the W 1x1 conv ----------------
    inv_std = 1.0 / jnp.sqrt(params["bn_var"] + 1e-5)
    scale = params["bn_gamma"] * inv_std
    w_eff_t = _pad2((params["w_w"] * scale[:, None]).T, ICp, Cp).astype(jnp.bfloat16)
    b_eff = _pad1(scale * (params["b_w"] - params["bn_mean"]) + params["bn_beta"],
                  Cp).reshape(1, Cp).astype(jnp.float32)

    w_th_bf = w_th_p.astype(jnp.bfloat16)
    b_th_r = b_th_p.reshape(1, ICp).astype(jnp.float32)

    # =================== stage 1: fused projections + 2x2 pool ===============
    def s1_bytes(th):
        thw = th * W
        tm = (th // 2) * (W // 2)
        by = 2 * thw * Cp * 2                      # x bf16 (double-buffered)
        by += 2 * Cp * n_br * ICp * 2              # w_cat
        by += 2 * n_br * ICp * 4                   # b_cat
        by += 2 * 2 * tm * ICp * 2                 # g + phi outputs
        if not recompute_theta:
            by += 2 * thw * ICp * 2                # theta output
        by += 2 * thw * ICp * 4                    # per-branch f32 temp + pool temps
        return by

    TH = _pick_row_tile(H, W, s1_bytes, vmem_budget)
    THW = TH * W
    TM = (TH // 2) * (W // 2)
    gh = H // TH

    def proj_pool_kernel(x_ref, wcat_ref, bcat_ref, *out_refs):
        xb = x_ref[0]                                               # (THW, Cp) bf16

        def branch(j):
            w = wcat_ref[:, j * ICp:(j + 1) * ICp]
            b = bcat_ref[:, j * ICp:(j + 1) * ICp]
            return jnp.dot(xb, w, preferred_element_type=jnp.float32) + b

        def pool2x2(t):                   # rows of t are (h_local, w) row-major
            t = t.reshape(THW // 2, 2, ICp)
            t = jnp.max(t, axis=1)                                  # pool along w
            t = t.reshape(TH // 2, W, ICp)                          # [h even | h odd]
            t = jnp.maximum(t[:, :W // 2, :], t[:, W // 2:, :])     # pool along h
            return t.reshape(TM, ICp)

        if recompute_theta:
            g_ref, ph_ref = out_refs
            g_ref[0] = pool2x2(branch(0)).astype(g_ref.dtype)
            ph_ref[0] = pool2x2(branch(1)).astype(ph_ref.dtype)
        else:
            th_ref, g_ref, ph_ref = out_refs
            g_ref[0] = pool2x2(branch(0)).astype(g_ref.dtype)
            th_ref[0] = branch(1).astype(th_ref.dtype)
            ph_ref[0] = pool2x2(branch(2)).astype(ph_ref.dtype)

    s1_out_shape, s1_out_specs = [], []
    if not recompute_theta:
        s1_out_shape.append(jax.ShapeDtypeStruct((B, N, ICp), jnp.bfloat16))
        s1_out_specs.append(pl.BlockSpec((1, THW, ICp), lambda b, h: (b, h, 0)))
    s1_out_shape += [jax.ShapeDtypeStruct((B, M, ICp), jnp.bfloat16)] * 2
    s1_out_specs += [pl.BlockSpec((1, TM, ICp), lambda b, h: (b, h, 0)),
                     pl.BlockSpec((1, TM, ICp), lambda b, h: (b, h, 0))]

    s1_out = pl.pallas_call(
        proj_pool_kernel,
        out_shape=tuple(s1_out_shape),
        grid=(B, gh),
        in_specs=[
            pl.BlockSpec((1, THW, Cp), lambda b, h: (b, h, 0)),
            pl.BlockSpec((Cp, n_br * ICp), lambda b, h: (0, 0)),
            pl.BlockSpec((1, n_br * ICp), lambda b, h: (0, 0)),
        ],
        out_specs=tuple(s1_out_specs),
        compiler_params=pltpu.CompilerParams(
            dimension_semantics=("parallel", "parallel"),
            vmem_limit_bytes=vmem_limit),
    )(x_bf16, w_cat, b_cat)

    if recompute_theta:
        g_sub, phi_sub = s1_out
        theta_x = None
    else:
        theta_x, g_sub, phi_sub = s1_out

    # =========== stage 2: attention + W projection + residual (N-tiled) ======
    bf16_exp = (gen in ("v6", "v7")) and ICp <= 256    # single EUP is the hot slot for small IC

    def s2_bytes(tn):
        by = 2 * 2 * M * ICp * 2                       # phi + g (resident, 2 bufs each)
        by += 2 * tn * Cp * 4                          # x f32 in
        by += 2 * tn * Cp * 4                          # z out
        by += 2 * ICp * Cp * 2 + 2 * Cp * 4            # W projection weights + bias
        if recompute_theta:
            by += 2 * Cp * ICp * 2 + 2 * ICp * 4       # theta weights + bias
        else:
            by += 2 * tn * ICp * 2                     # theta in
        if return_attn:
            by += 2 * tn * M * attn_bytes              # f_div out
        by += 3 * tn * M * 4                           # f / p / f_div temporaries
        by += 4 * tn * max(Cp, ICp) * 4                # misc row temporaries
        return by

    min_steps = 8 if gen == "v7" else 1                # keep both v7x TCs busy
    TN = _pick_n_tile(N, s2_bytes, vmem_budget, batch=B, min_steps=min_steps)
    gn = N // TN

    def attn_kernel(*refs):
        if recompute_theta:
            ph_ref, g_ref, x_ref, wth_ref, bth_ref, ww_ref, bw_ref = refs[:7]
            rest = refs[7:]
        else:
            th_ref, ph_ref, g_ref, x_ref, ww_ref, bw_ref = refs[:6]
            rest = refs[6:]
        if return_attn:
            z_ref, fdiv_ref = rest
        else:
            (z_ref,) = rest

        x_tile = x_ref[0]                                           # (TN, Cp) f32
        if recompute_theta:
            theta = (jnp.dot(x_tile.astype(jnp.bfloat16), wth_ref[...],
                             preferred_element_type=jnp.float32)
                     + bth_ref[...]).astype(jnp.bfloat16)           # (TN, ICp)
        else:
            theta = th_ref[0]                                       # (TN, ICp) bf16

        phi = ph_ref[0]                                             # (M, ICp) bf16
        # f = theta @ phi^T: contract the IC dims directly (native trans-B MXU
        # matmul, same pattern as the 'bqd,bkd->bqk' flash-attention einsum).
        f = jax.lax.dot_general(theta, phi, (((1,), (1,)), ((), ())),
                                preferred_element_type=jnp.float32)  # (TN, M)
        m = jnp.max(f, axis=-1, keepdims=True)
        fs = f - m
        p = jnp.exp(fs.astype(jnp.bfloat16)) if bf16_exp else jnp.exp(fs)
        s = jnp.sum(p.astype(jnp.float32), axis=-1, keepdims=True)
        inv_s = pl.reciprocal(s, approx=True)

        if return_attn:
            f_div = p.astype(jnp.float32) * inv_s
            fdiv_ref[0] = f_div.astype(fdiv_ref.dtype)
            y = jnp.dot(f_div.astype(jnp.bfloat16), g_ref[0],
                        preferred_element_type=jnp.float32)         # (TN, ICp)
        else:
            # fold the softmax normalization into the (much smaller) y tile
            y = jnp.dot(p.astype(jnp.bfloat16), g_ref[0],
                        preferred_element_type=jnp.float32) * inv_s

        w_y = jnp.dot(y.astype(jnp.bfloat16), ww_ref[...],
                      preferred_element_type=jnp.float32) + bw_ref[...]  # (TN, Cp)
        z_ref[0] = (w_y + x_tile).astype(z_ref.dtype)

    if recompute_theta:
        s2_inputs = (phi_sub, g_sub, x_flat, w_th_bf, b_th_r, w_eff_t, b_eff)
        s2_in_specs = [
            pl.BlockSpec((1, M, ICp), lambda b, n: (b, 0, 0)),   # phi: resident over n
            pl.BlockSpec((1, M, ICp), lambda b, n: (b, 0, 0)),   # g:   resident over n
            pl.BlockSpec((1, TN, Cp), lambda b, n: (b, n, 0)),   # x (f32 residual)
            pl.BlockSpec((Cp, ICp), lambda b, n: (0, 0)),
            pl.BlockSpec((1, ICp), lambda b, n: (0, 0)),
            pl.BlockSpec((ICp, Cp), lambda b, n: (0, 0)),
            pl.BlockSpec((1, Cp), lambda b, n: (0, 0)),
        ]
    else:
        s2_inputs = (theta_x, phi_sub, g_sub, x_flat, w_eff_t, b_eff)
        s2_in_specs = [
            pl.BlockSpec((1, TN, ICp), lambda b, n: (b, n, 0)),
            pl.BlockSpec((1, M, ICp), lambda b, n: (b, 0, 0)),
            pl.BlockSpec((1, M, ICp), lambda b, n: (b, 0, 0)),
            pl.BlockSpec((1, TN, Cp), lambda b, n: (b, n, 0)),
            pl.BlockSpec((ICp, Cp), lambda b, n: (0, 0)),
            pl.BlockSpec((1, Cp), lambda b, n: (0, 0)),
        ]

    if return_attn:
        s2_out_shape = (jax.ShapeDtypeStruct((B, N, Cp), jnp.float32),
                        jax.ShapeDtypeStruct((B, N, M), attn_dtype))
        s2_out_specs = (pl.BlockSpec((1, TN, Cp), lambda b, n: (b, n, 0)),
                        pl.BlockSpec((1, TN, M), lambda b, n: (b, n, 0)))
    else:
        s2_out_shape = jax.ShapeDtypeStruct((B, N, Cp), jnp.float32)
        s2_out_specs = pl.BlockSpec((1, TN, Cp), lambda b, n: (b, n, 0))

    s2_out = pl.pallas_call(
        attn_kernel,
        out_shape=s2_out_shape,
        grid=(B, gn),
        in_specs=s2_in_specs,
        out_specs=s2_out_specs,
        compiler_params=pltpu.CompilerParams(
            dimension_semantics=("parallel", "parallel"),
            vmem_limit_bytes=vmem_limit),
    )(*s2_inputs)

    if return_attn:
        z_flat, f_div = s2_out
    else:
        z_flat, f_div = s2_out, None

    z_nhwc = z_flat[:, :, :C].reshape(B, H, W, C)     # drop channel padding
    z = jnp.transpose(z_nhwc, (0, 3, 1, 2)) if data_format == "NCHW" else z_nhwc
    return z, f_div


def _reference_nonlocal(x, params):
    """Pure-JAX reference (inference-mode BN), for numerical validation."""
    B, C, H, W = x.shape
    N, M = H * W, (H // 2) * (W // 2)
    xf = jnp.transpose(x, (0, 2, 3, 1)).reshape(B, N, C).astype(jnp.float32)

    def proj(w, b):
        return xf @ w.T + b

    g = proj(params["w_g"], params["b_g"]).reshape(B, H, W, -1)
    th = proj(params["w_theta"], params["b_theta"])
    ph = proj(params["w_phi"], params["b_phi"]).reshape(B, H, W, -1)

    def pool(t):
        b_, h_, w_, c_ = t.shape
        t = t.reshape(b_, h_ // 2, 2, w_ // 2, 2, c_)
        return jnp.max(t, axis=(2, 4)).reshape(b_, (h_ // 2) * (w_ // 2), c_)

    gp, php = pool(g), pool(ph)
    f = jnp.einsum("bnd,bmd->bnm", th, php)
    fdiv = jax.nn.softmax(f, axis=-1)
    y = jnp.einsum("bnm,bmd->bnd", fdiv, gp)
    scale = params["bn_gamma"] / jnp.sqrt(params["bn_var"] + 1e-5)
    wy = y @ (params["w_w"] * scale[:, None]).T + (
        scale * (params["b_w"] - params["bn_mean"]) + params["bn_beta"])
    z = wy + xf
    return jnp.transpose(z.reshape(B, H, W, C), (0, 3, 1, 2)), fdiv


if __name__ == "__main__":
    B, C, H, W = 2, 4, 16, 16
    IC = max(C // 2, 1)

    key = jax.random.PRNGKey(0)
    keys = jax.random.split(key, 9)
    params = {
        "w_g":     0.1 * jax.random.normal(keys[0], (IC, C), jnp.float32),
        "b_g":     0.1 * jax.random.normal(keys[1], (IC,), jnp.float32),
        "w_theta": 0.1 * jax.random.normal(keys[2], (IC, C), jnp.float32),
        "b_theta": 0.1 * jax.random.normal(keys[3], (IC,), jnp.float32),
        "w_phi":   0.1 * jax.random.normal(keys[4], (IC, C), jnp.float32),
        "b_phi":   0.1 * jax.random.normal(keys[5], (IC,), jnp.float32),
        "w_w":     0.1 * jax.random.normal(keys[6], (C, IC), jnp.float32),
        "b_w":     0.1 * jax.random.normal(keys[7], (C,), jnp.float32),
        "bn_gamma": jnp.ones((C,), jnp.float32),
        "bn_beta":  jnp.zeros((C,), jnp.float32),
        "bn_mean":  jnp.zeros((C,), jnp.float32),
        "bn_var":   jnp.ones((C,), jnp.float32),
    }

    x = jax.random.normal(keys[8], (B, C, H, W), jnp.float32)

    z, f_div = jax.jit(non_local_block_2d)(x, params)
    jax.block_until_ready((z, f_div))

    assert z.shape == (B, C, H, W)
    assert f_div.shape == (B, H * W, (H // 2) * (W // 2))

    z_ref, f_ref = _reference_nonlocal(x, params)
    err_z = float(jnp.max(jnp.abs(z - z_ref)))
    err_f = float(jnp.max(jnp.abs(f_div.astype(jnp.float32) - f_ref)))
    # loose tolerances: bf16 MXU operands, bf16 attn map, approx EUP reciprocal
    assert err_z < 5e-2, f"z mismatch: {err_z}"
    assert err_f < 5e-3, f"f_div mismatch: {err_f}"
    row_sums = jnp.sum(f_div.astype(jnp.float32), axis=-1)
    assert bool(jnp.all(jnp.abs(row_sums - 1.0) < 1e-2))
    print("KERNEL_OK")
</pallas_src>

<mosaic_0001>
module attributes {stable_mosaic.version = 11 : i64} {
  func.func @proj_pool_kernel(%arg0: i32, %arg1: i32, %arg2: memref<1x256x128xbf16, #tpu.memory_space<vmem>>, %arg3: memref<128x256xbf16, #tpu.memory_space<vmem>>, %arg4: memref<1x256xf32, #tpu.memory_space<vmem>>, %arg5: memref<1x64x128xbf16, #tpu.memory_space<vmem>>, %arg6: memref<1x64x128xbf16, #tpu.memory_space<vmem>>) attributes {dimension_semantics = [#tpu.dimension_semantics<parallel>, #tpu.dimension_semantics<parallel>], iteration_bounds = array<i64: 2, 1>, scalar_prefetch = 0 : i64, scratch_operands = 0 : i64, tpu.core_type = #tpu.core_type<tc>, window_params = [{transform_indices = @transform_0, window_bounds = array<i64: 1, 256, 128>}, {pipeline_mode = #tpu.pipeline_mode<synchronous>, transform_indices = @transform_1, window_bounds = array<i64: 128, 256>}, {pipeline_mode = #tpu.pipeline_mode<synchronous>, transform_indices = @transform_2, window_bounds = array<i64: 1, 256>}, {transform_indices = @transform_3, window_bounds = array<i64: 1, 64, 128>}, {transform_indices = @transform_4, window_bounds = array<i64: 1, 64, 128>}]} {
    %c0 = arith.constant 0 : index
    %c0_0 = arith.constant 0 : index
    %c0_1 = arith.constant 0 : index
    %0 = vector.load %arg2[%c0, %c0_0, %c0_1] : memref<1x256x128xbf16, #tpu.memory_space<vmem>>, vector<1x256x128xbf16>
    %1 = vector.shape_cast %0 : vector<1x256x128xbf16> to vector<256x128xbf16>
    %c0_2 = arith.constant 0 : index
    %c0_3 = arith.constant 0 : index
    %2 = vector.load %arg3[%c0_2, %c0_3] : memref<128x256xbf16, #tpu.memory_space<vmem>>, vector<128x128xbf16>
    %c0_4 = arith.constant 0 : index
    %c0_5 = arith.constant 0 : index
    %3 = vector.load %arg4[%c0_4, %c0_5] : memref<1x256xf32, #tpu.memory_space<vmem>>, vector<1x128xf32>
    %cst = arith.constant dense<0.000000e+00> : vector<256x128xf32>
    %4 = tpu.matmul %1, %2, %cst {dimension_numbers = #tpu.dot_dimension_numbers<[1], [0], [0], [1], [0, 0, 1, 1], [], []>} : vector<256x128xbf16>, vector<128x128xbf16>, vector<256x128xf32> -> vector<256x128xf32>
    %5 = vector.broadcast %3 : vector<1x128xf32> to vector<256x128xf32>
    %6 = arith.addf %4, %5 : vector<256x128xf32>
    %7 = vector.shape_cast %6 : vector<256x128xf32> to vector<128x2x128xf32>
    %cst_6 = arith.constant dense<0xFF800000> : vector<128x128xf32>
    %8 = vector.multi_reduction <maximumf>, %7, %cst_6 [1] : vector<128x2x128xf32> to vector<128x128xf32>
    %9 = vector.shape_cast %8 : vector<128x128xf32> to vector<8x16x128xf32>
    %10 = vector.extract_strided_slice %9 {offsets = [0, 0, 0], sizes = [8, 8, 128], strides = [1, 1, 1]} : vector<8x16x128xf32> to vector<8x8x128xf32>
    %11 = vector.extract_strided_slice %9 {offsets = [0, 8, 0], sizes = [8, 8, 128], strides = [1, 1, 1]} : vector<8x16x128xf32> to vector<8x8x128xf32>
    %12 = arith.maximumf %10, %11 : vector<8x8x128xf32>
    %13 = vector.shape_cast %12 : vector<8x8x128xf32> to vector<64x128xf32>
    %14 = arith.truncf %13 : vector<64x128xf32> to vector<64x128xbf16>
    %c0_7 = arith.constant 0 : index
    %c0_8 = arith.constant 0 : index
    %c0_9 = arith.constant 0 : index
    %15 = vector.load %arg5[%c0_7, %c0_8, %c0_9] : memref<1x64x128xbf16, #tpu.memory_space<vmem>>, vector<1x64x128xbf16>
    %16 = vector.shape_cast %15 : vector<1x64x128xbf16> to vector<64x128xbf16>
    %17 = vector.shape_cast %14 : vector<64x128xbf16> to vector<1x64x128xbf16>
    tpu.vector_store %arg5[%c0_7, %c0_8, %c0_9], %17 {strides = array<i32>} : memref<1x64x128xbf16, #tpu.memory_space<vmem>>, vector<1x64x128xbf16>,
    %c0_10 = arith.constant 0 : index
    %c128 = arith.constant 128 : index
    %18 = vector.load %arg3[%c0_10, %c128] : memref<128x256xbf16, #tpu.memory_space<vmem>>, vector<128x128xbf16>
    %c0_11 = arith.constant 0 : index
    %c128_12 = arith.constant 128 : index
    %19 = vector.load %arg4[%c0_11, %c128_12] : memref<1x256xf32, #tpu.memory_space<vmem>>, vector<1x128xf32>
    %cst_13 = arith.constant dense<0.000000e+00> : vector<256x128xf32>
    %20 = tpu.matmul %1, %18, %cst_13 {dimension_numbers = #tpu.dot_dimension_numbers<[1], [0], [0], [1], [0, 0, 1, 1], [], []>} : vector<256x128xbf16>, vector<128x128xbf16>, vector<256x128xf32> -> vector<256x128xf32>
    %21 = vector.broadcast %19 : vector<1x128xf32> to vector<256x128xf32>
    %22 = arith.addf %20, %21 : vector<256x128xf32>
    %23 = vector.shape_cast %22 : vector<256x128xf32> to vector<128x2x128xf32>
    %cst_14 = arith.constant dense<0xFF800000> : vector<128x128xf32>
    %24 = vector.multi_reduction <maximumf>, %23, %cst_14 [1] : vector<128x2x128xf32> to vector<128x128xf32>
    %25 = vector.shape_cast %24 : vector<128x128xf32> to vector<8x16x128xf32>
    %26 = vector.extract_strided_slice %25 {offsets = [0, 0, 0], sizes = [8, 8, 128], strides = [1, 1, 1]} : vector<8x16x128xf32> to vector<8x8x128xf32>
    %27 = vector.extract_strided_slice %25 {offsets = [0, 8, 0], sizes = [8, 8, 128], strides = [1, 1, 1]} : vector<8x16x128xf32> to vector<8x8x128xf32>
    %28 = arith.maximumf %26, %27 : vector<8x8x128xf32>
    %29 = vector.shape_cast %28 : vector<8x8x128xf32> to vector<64x128xf32>
    %30 = arith.truncf %29 : vector<64x128xf32> to vector<64x128xbf16>
    %c0_15 = arith.constant 0 : index
    %c0_16 = arith.constant 0 : index
    %c0_17 = arith.constant 0 : index
    %31 = vector.load %arg6[%c0_15, %c0_16, %c0_17] : memref<1x64x128xbf16, #tpu.memory_space<vmem>>, vector<1x64x128xbf16>
    %32 = vector.shape_cast %31 : vector<1x64x128xbf16> to vector<64x128xbf16>
    %33 = vector.shape_cast %30 : vector<64x128xbf16> to vector<1x64x128xbf16>
    tpu.vector_store %arg6[%c0_15, %c0_16, %c0_17], %33 {strides = array<i32>} : memref<1x64x128xbf16, #tpu.memory_space<vmem>>, vector<1x64x128xbf16>,
    return
  }
  func.func @transform_0(%arg0: i32, %arg1: i32) -> (i32, i32, i32) {
    %c0_i32 = arith.constant 0 : i32
    %c0_i32_0 = arith.constant 0 : i32
    return %arg0, %arg1, %c0_i32 : i32, i32, i32
  }
  func.func @transform_1(%arg0: i32, %arg1: i32) -> (i32, i32) {
    %c0_i32 = arith.constant 0 : i32
    %c0_i32_0 = arith.constant 0 : i32
    %c0_i32_1 = arith.constant 0 : i32
    return %c0_i32, %c0_i32_0 : i32, i32
  }
  func.func @transform_2(%arg0: i32, %arg1: i32) -> (i32, i32) {
    %c0_i32 = arith.constant 0 : i32
    %c0_i32_0 = arith.constant 0 : i32
    %c0_i32_1 = arith.constant 0 : i32
    return %c0_i32, %c0_i32_0 : i32, i32
  }
  func.func @transform_3(%arg0: i32, %arg1: i32) -> (i32, i32, i32) {
    %c0_i32 = arith.constant 0 : i32
    %c0_i32_0 = arith.constant 0 : i32
    return %arg0, %arg1, %c0_i32 : i32, i32, i32
  }
  func.func @transform_4(%arg0: i32, %arg1: i32) -> (i32, i32, i32) {
    %c0_i32 = arith.constant 0 : i32
    %c0_i32_0 = arith.constant 0 : i32
    return %arg0, %arg1, %c0_i32 : i32, i32, i32
  }
}

module attributes {stable_mosaic.version = 11 : i64} {
  func.func @attn_kernel(%arg0: i32, %arg1: i32, %arg2: memref<1x64x128xbf16, #tpu.memory_space<vmem>>, %arg3: memref<1x64x128xbf16, #tpu.memory_space<vmem>>, %arg4: memref<1x256x128xf32, #tpu.memory_space<vmem>>, %arg5: memref<128x128xbf16, #tpu.memory_space<vmem>>, %arg6: memref<1x128xf32, #tpu.memory_space<vmem>>, %arg7: memref<128x128xbf16, #tpu.memory_space<vmem>>, %arg8: memref<1x128xf32, #tpu.memory_space<vmem>>, %arg9: memref<1x256x128xf32, #tpu.memory_space<vmem>>, %arg10: memref<1x256x64xbf16, #tpu.memory_space<vmem>>) attributes {dimension_semantics = [#tpu.dimension_semantics<parallel>, #tpu.dimension_semantics<parallel>], iteration_bounds = array<i64: 2, 1>, scalar_prefetch = 0 : i64, scratch_operands = 0 : i64, tpu.core_type = #tpu.core_type<tc>, window_params = [{transform_indices = @transform_0, window_bounds = array<i64: 1, 64, 128>}, {transform_indices = @transform_1, window_bounds = array<i64: 1, 64, 128>}, {transform_indices = @transform_2, window_bounds = array<i64: 1, 256, 128>}, {pipeline_mode = #tpu.pipeline_mode<synchronous>, transform_indices = @transform_3, window_bounds = array<i64: 128, 128>}, {pipeline_mode = #tpu.pipeline_mode<synchronous>, transform_indices = @transform_4, window_bounds = array<i64: 1, 128>}, {pipeline_mode = #tpu.pipeline_mode<synchronous>, transform_indices = @transform_5, window_bounds = array<i64: 128, 128>}, {pipeline_mode = #tpu.pipeline_mode<synchronous>, transform_indices = @transform_6, window_bounds = array<i64: 1, 128>}, {transform_indices = @transform_7, window_bounds = array<i64: 1, 256, 128>}, {transform_indices = @transform_8, window_bounds = array<i64: 1, 256, 64>}]} {
    %c0 = arith.constant 0 : index
    %c0_0 = arith.constant 0 : index
    %c0_1 = arith.constant 0 : index
    %0 = vector.load %arg4[%c0, %c0_0, %c0_1] : memref<1x256x128xf32, #tpu.memory_space<vmem>>, vector<1x256x128xf32>
    %1 = vector.shape_cast %0 : vector<1x256x128xf32> to vector<256x128xf32>
    %2 = arith.truncf %1 : vector<256x128xf32> to vector<256x128xbf16>
    %c0_2 = arith.constant 0 : index
    %c0_3 = arith.constant 0 : index
    %3 = vector.load %arg5[%c0_2, %c0_3] : memref<128x128xbf16, #tpu.memory_space<vmem>>, vector<128x128xbf16>
    %cst = arith.constant dense<0.000000e+00> : vector<256x128xf32>
    %4 = tpu.matmul %2, %3, %cst {dimension_numbers = #tpu.dot_dimension_numbers<[1], [0], [0], [1], [0, 0, 1, 1], [], []>} : vector<256x128xbf16>, vector<128x128xbf16>, vector<256x128xf32> -> vector<256x128xf32>
    %c0_4 = arith.constant 0 : index
    %c0_5 = arith.constant 0 : index
    %5 = vector.load %arg6[%c0_4, %c0_5] : memref<1x128xf32, #tpu.memory_space<vmem>>, vector<1x128xf32>
    %6 = vector.broadcast %5 : vector<1x128xf32> to vector<256x128xf32>
    %7 = arith.addf %4, %6 : vector<256x128xf32>
    %8 = arith.truncf %7 : vector<256x128xf32> to vector<256x128xbf16>
    %c0_6 = arith.constant 0 : index
    %c0_7 = arith.constant 0 : index
    %c0_8 = arith.constant 0 : index
    %9 = vector.load %arg2[%c0_6, %c0_7, %c0_8] : memref<1x64x128xbf16, #tpu.memory_space<vmem>>, vector<1x64x128xbf16>
    %10 = vector.shape_cast %9 : vector<1x64x128xbf16> to vector<64x128xbf16>
    %cst_9 = arith.constant dense<0.000000e+00> : vector<256x64xf32>
    %11 = tpu.matmul %8, %10, %cst_9 {dimension_numbers = #tpu.dot_dimension_numbers<[1], [1], [0], [0], [0, 0, 1, 0], [], []>} : vector<256x128xbf16>, vector<64x128xbf16>, vector<256x64xf32> -> vector<256x64xf32>
    %cst_10 = arith.constant dense<0xFF800000> : vector<256xf32>
    %12 = vector.multi_reduction <maximumf>, %11, %cst_10 [1] : vector<256x64xf32> to vector<256xf32>
    %13 = vector.shape_cast %12 : vector<256xf32> to vector<256x1xf32>
    %14 = vector.broadcast %13 : vector<256x1xf32> to vector<256x64xf32>
    %15 = arith.subf %11, %14 : vector<256x64xf32>
    %16 = math.exp %15 : vector<256x64xf32>
    %cst_11 = arith.constant dense<0.000000e+00> : vector<256xf32>
    %17 = vector.multi_reduction <add>, %16, %cst_11 [1] : vector<256x64xf32> to vector<256xf32>
    %18 = vector.shape_cast %17 : vector<256xf32> to vector<256x1xf32>
    %19 = tpu.reciprocal %18 {approx = true} : vector<256x1xf32> -> vector<256x1xf32>
    %20 = vector.broadcast %19 : vector<256x1xf32> to vector<256x64xf32>
    %21 = arith.mulf %16, %20 : vector<256x64xf32>
    %22 = arith.truncf %21 : vector<256x64xf32> to vector<256x64xbf16>
    %c0_12 = arith.constant 0 : index
    %c0_13 = arith.constant 0 : index
    %c0_14 = arith.constant 0 : index
    %23 = vector.load %arg10[%c0_12, %c0_13, %c0_14] : memref<1x256x64xbf16, #tpu.memory_space<vmem>>, vector<1x256x64xbf16>
    %24 = vector.shape_cast %23 : vector<1x256x64xbf16> to vector<256x64xbf16>
    %25 = vector.shape_cast %22 : vector<256x64xbf16> to vector<1x256x64xbf16>
    tpu.vector_store %arg10[%c0_12, %c0_13, %c0_14], %25 {strides = array<i32>} : memref<1x256x64xbf16, #tpu.memory_space<vmem>>, vector<1x256x64xbf16>,
    %26 = arith.truncf %21 : vector<256x64xf32> to vector<256x64xbf16>
    %c0_15 = arith.constant 0 : index
    %c0_16 = arith.constant 0 : index
    %c0_17 = arith.constant 0 : index
    %27 = vector.load %arg3[%c0_15, %c0_16, %c0_17] : memref<1x64x128xbf16, #tpu.memory_space<vmem>>, vector<1x64x128xbf16>
    %28 = vector.shape_cast %27 : vector<1x64x128xbf16> to vector<64x128xbf16>
    %cst_18 = arith.constant dense<0.000000e+00> : vector<256x128xf32>
    %29 = tpu.matmul %26, %28, %cst_18 {dimension_numbers = #tpu.dot_dimension_numbers<[1], [0], [0], [1], [0, 0, 1, 1], [], []>} : vector<256x64xbf16>, vector<64x128xbf16>, vector<256x128xf32> -> vector<256x128xf32>
    %30 = arith.truncf %29 : vector<256x128xf32> to vector<256x128xbf16>
    %c0_19 = arith.constant 0 : index
    %c0_20 = arith.constant 0 : index
    %31 = vector.load %arg7[%c0_19, %c0_20] : memref<128x128xbf16, #tpu.memory_space<vmem>>, vector<128x128xbf16>
    %cst_21 = arith.constant dense<0.000000e+00> : vector<256x128xf32>
    %32 = tpu.matmul %30, %31, %cst_21 {dimension_numbers = #tpu.dot_dimension_numbers<[1], [0], [0], [1], [0, 0, 1, 1], [], []>} : vector<256x128xbf16>, vector<128x128xbf16>, vector<256x128xf32> -> vector<256x128xf32>
    %c0_22 = arith.constant 0 : index
    %c0_23 = arith.constant 0 : index
    %33 = vector.load %arg8[%c0_22, %c0_23] : memref<1x128xf32, #tpu.memory_space<vmem>>, vector<1x128xf32>
    %34 = vector.broadcast %33 : vector<1x128xf32> to vector<256x128xf32>
    %35 = arith.addf %32, %34 : vector<256x128xf32>
    %36 = arith.addf %35, %1 : vector<256x128xf32>
    %c0_24 = arith.constant 0 : index
    %c0_25 = arith.constant 0 : index
    %c0_26 = arith.constant 0 : index
    %37 = vector.load %arg9[%c0_24, %c0_25, %c0_26] : memref<1x256x128xf32, #tpu.memory_space<vmem>>, vector<1x256x128xf32>
    %38 = vector.shape_cast %37 : vector<1x256x128xf32> to vector<256x128xf32>
    %39 = vector.shape_cast %36 : vector<256x128xf32> to vector<1x256x128xf32>
    tpu.vector_store %arg9[%c0_24, %c0_25, %c0_26], %39 {strides = array<i32>} : memref<1x256x128xf32, #tpu.memory_space<vmem>>, vector<1x256x128xf32>,
    return
  }
  func.func @transform_0(%arg0: i32, %arg1: i32) -> (i32, i32, i32) {
    %c0_i32 = arith.constant 0 : i32
    %c0_i32_0 = arith.constant 0 : i32
    %c0_i32_1 = arith.constant 0 : i32
    return %arg0, %c0_i32, %c0_i32_0 : i32, i32, i32
  }
  func.func @transform_1(%arg0: i32, %arg1: i32) -> (i32, i32, i32) {
    %c0_i32 = arith.constant 0 : i32
    %c0_i32_0 = arith.constant 0 : i32
    %c0_i32_1 = arith.constant 0 : i32
    return %arg0, %c0_i32, %c0_i32_0 : i32, i32, i32
  }
  func.func @transform_2(%arg0: i32, %arg1: i32) -> (i32, i32, i32) {
    %c0_i32 = arith.constant 0 : i32
    %c0_i32_0 = arith.constant 0 : i32
    return %arg0, %arg1, %c0_i32 : i32, i32, i32
  }
  func.func @transform_3(%arg0: i32, %arg1: i32) -> (i32, i32) {
    %c0_i32 = arith.constant 0 : i32
    %c0_i32_0 = arith.constant 0 : i32
    %c0_i32_1 = arith.constant 0 : i32
    return %c0_i32, %c0_i32_0 : i32, i32
  }
  func.func @transform_4(%arg0: i32, %arg1: i32) -> (i32, i32) {
    %c0_i32 = arith.constant 0 : i32
    %c0_i32_0 = arith.constant 0 : i32
    %c0_i32_1 = arith.constant 0 : i32
    return %c0_i32, %c0_i32_0 : i32, i32
  }
  func.func @transform_5(%arg0: i32, %arg1: i32) -> (i32, i32) {
    %c0_i32 = arith.constant 0 : i32
    %c0_i32_0 = arith.constant 0 : i32
    %c0_i32_1 = arith.constant 0 : i32
    return %c0_i32, %c0_i32_0 : i32, i32
  }
  func.func @transform_6(%arg0: i32, %arg1: i32) -> (i32, i32) {
    %c0_i32 = arith.constant 0 : i32
    %c0_i32_0 = arith.constant 0 : i32
    %c0_i32_1 = arith.constant 0 : i32
    return %c0_i32, %c0_i32_0 : i32, i32
  }
  func.func @transform_7(%arg0: i32, %arg1: i32) -> (i32, i32, i32) {
    %c0_i32 = arith.constant 0 : i32
    %c0_i32_0 = arith.constant 0 : i32
    return %arg0, %arg1, %c0_i32 : i32, i32, i32
  }
  func.func @transform_8(%arg0: i32, %arg1: i32) -> (i32, i32, i32) {
    %c0_i32 = arith.constant 0 : i32
    %c0_i32_0 = arith.constant 0 : i32
    return %arg0, %arg1, %c0_i32 : i32, i32, i32
  }
}

</mosaic_0001>

<bundles_post_ra>
// kernel: non_local_block_2d.3
= control target key start
LH: loop header
LB: loop body
LE: loop exit
PB: predicated region body
PF: predicated region fallthrough
CT: control target
= control target key end

     0   :  { %s2796_s27 = smov 0   ;;  %s2798_s28 = smov 0   ;;  %s3483_s0 = inlined_call_operand.vmem [shape: bf16[2,64,128], index: 0, kind: input, shape index: {}]   ;;  %s3484_s1 = inlined_call_operand.vmem [shape: bf16[2,64,128], index: 1, kind: input, shape index: {}]   ;;  %s3485_s2 = inlined_call_operand.vmem [shape: f32[2,256,128], index: 2, kind: input, shape index: {}]   ;;  %s3486_s3 = inlined_call_operand.vmem [shape: bf16[128,128], index: 3, kind: input, shape index: {}]   ;;  %s3487_s4 = inlined_call_operand.vmem [shape: f32[1,128], index: 4, kind: input, shape index: {}]   ;;  %s3488_s5 = inlined_call_operand.vmem [shape: bf16[128,128], index: 5, kind: input, shape index: {}]   ;;  %s3489_s6 = inlined_call_operand.vmem [shape: f32[1,128], index: 6, kind: input, shape index: {}]   ;;  %s3490_s7 = inlined_call_operand.vmem [shape: f32[2,256,128], index: 7, kind: output, shape index: {0}]   ;;  %s3491_s8 = inlined_call_operand.vmem [shape: bf16[2,256,64], index: 8, kind: output, shape index: {1}]  }
   0x1   :  { %s2800_s29 = smov 0  }
   0x2 LB: > { %s31_s30 = sadd.s32 1, %s2745_s28  ;;  %p2131_p0 = scmp.ge.s32.totalorder %s2749_s29, 1  ;;  %s2749_s29 = sphi %s2800_s29, %s19_s29   ;;  %s2745_s28 = sphi %s2798_s28, %s3493_s28   ;;  %s2741_s27 = sphi %s2796_s27, %s3492_s27  }
   0x3   : > { %p33_p1 = scmp.ge.s32.totalorder %s31_s30, 2  ;;  %p308_p2 = scmp.lt.s32.totalorder %s2749_s29, 3 }
   0x5   : > { %s3495_s30 = smov (%p33_p1, %s31_s30), 0  ;;  %p309_p3 = pnand %p2131_p0, %p308_p2 }
   0x6   : > { %v2543_v0 = vld [vmem:[%s3486_s3] sm:$0xff] (!%p309_p3)   ;;  %p369_p4 = scmp.lt.s32.totalorder (!%p309_p3), %s2741_s27, 1  ;;  %v2544_v1 = vld [vmem:[%s3486_s3 + $0x8] sm:$0xff] (!%p309_p3)   ;;  %v2545_v2 = vld [vmem:[%s3486_s3 + $0x10] sm:$0xff] (!%p309_p3)   ;;  %vm899_vm0 = vcmask (!%p309_p3), 523264   ;;  %vm1380_vm1 = vcmask (!%p309_p3), 519168  }
   0x7   : > { %312 = sbr.rel (%p309_p3) target bundleno = 1291 (0x50b), region = 48  ;;  %2343 = vmatprep.subr.bf16.mxu0 (!%p309_p3), %v2543_v0  ;;  %v2546_v3 = vld [vmem:[%s3486_s3 + $0x18] sm:$0xff] (!%p309_p3)   ;;  %v2547_v7 = vld [vmem:[%s3486_s3 + $0x20] sm:$0xff] (!%p309_p3)   ;;  %v2548_v8 = vld [vmem:[%s3486_s3 + $0x28] sm:$0xff] (!%p309_p3)  }
   0x8   : > { %2344 = vmatpush3.bf16.msra.mxu0 (!%p309_p3), %v2543_v0  ;;  %v2549_v9 = vld [vmem:[%s3486_s3 + $0x30] sm:$0xff] (!%p309_p3)   ;;  %v2550_v12 = vld [vmem:[%s3486_s3 + $0x38] sm:$0xff] (!%p309_p3)   ;;  %v2898_v61 = vld [vmem:[%s3487_s4] ss:$0 sm:$0xff] (!%p309_p3) }
   0x9   : > { %2345 = vmatprep.subr.bf16.mxu0 (!%p309_p3), %v2544_v1 }
   0xc   : > { %2346 = vmatpush3.bf16.msra.mxu0 (!%p309_p3), %v2544_v1 }
   0xd   : > { %2347 = vmatprep.subr.bf16.mxu0 (!%p309_p3), %v2545_v2 }
   0xe   : > { %s3497_s27 = smov (!%p369_p4, %s2741_s27), 1 }
   0xf   : > { %s2220_s15 = sshll.u32 %s3497_s27, 8  ;;  %s2218_s23 = sshll.u32 %s3497_s27, 5 }
  0x10   : > { %s2831_s18 = scalar_lea.vmem %s3485_s2, %s2220_s15  ;;  %2348 = vmatpush3.bf16.msra.mxu0 %v2545_v2  ;;  %s2848_s10 = scalar_lea.vmem %s3483_s0, %s2218_s23 }
  0x11   : > { %v410_v4 = vld [vmem:[%s2831_s18] sm:$0xff]  ;;  %v411_v5 = vld [vmem:[%s2831_s18 + $0x8] sm:$0xff]  ;;  %2349 = vmatprep.subr.bf16.mxu0 %v2546_v3  ;;  %s2858_s16 = scalar_lea.vmem %s3484_s1, %s2218_s23  ;;  %v412_v13 = vld [vmem:[%s2831_s18 + $0x10] sm:$0xff]  ;;  %s2222_s22 = sshll.u32 %s3497_s27, 7 }
  0x12   : > { %v442_v6 = vpack.c.bf16 %v411_v5, %v410_v4  ;;  %v2551_v10 = vld [vmem:[%s2848_s10] sm:$0xff]   ;;  %v2552_v11 = vld [vmem:[%s2848_s10 + $0x8] sm:$0xff]   ;;  %v413_v14 = vld [vmem:[%s2831_s18 + $0x18] sm:$0xff]  ;;  %s3253_s25 = scalar_lea.vmem %s3491_s8, %s2222_s22  ;;  %s3377_s12 = scalar_lea.vmem %s3490_s7, %s2220_s15 }
  0x13   : > { %2391 = vmatprep.subr.bf16.mxu1 %v2551_v10  ;;  %v2553_v15 = vld [vmem:[%s2848_s10 + $0x10] sm:$0xff]   ;;  %v414_v16 = vld [vmem:[%s2831_s18 + $0x20] sm:$0xff]  ;;  %v415_v17 = vld [vmem:[%s2831_s18 + $0x28] sm:$0xff]  ;;  %v443_v18 = vpack.c.bf16 %v413_v14, %v412_v13 }
  0x14   : > { %2359 = vmatprep.mubr.bf16.mxu0 %v442_v6  ;;  %2350 = vmatpush3.bf16.msra.mxu0 %v2546_v3  ;;  %v444_v19 = vpack.c.bf16 %v415_v17, %v414_v16  ;;  %v416_v20 = vld [vmem:[%s2831_s18 + $0x30] sm:$0xff]  ;;  %v417_v21 = vld [vmem:[%s2831_s18 + $0x38] sm:$0xff]  ;;  %v418_v22 = vld [vmem:[%s2831_s18 + $0x40] sm:$0xff] }
  0x15   : > { %2351 = vmatprep.subr.bf16.mxu0 %v2547_v7  ;;  %2392 = vmatpush3.bf16.xpose.msra.mxu1 %v2551_v10  ;;  %v419_v23 = vld [vmem:[%s2831_s18 + $0x48] sm:$0xff]  ;;  %v445_v24 = vpack.c.bf16 %v417_v21, %v416_v20  ;;  %v420_v26 = vld [vmem:[%s2831_s18 + $0x50] sm:$0xff]  ;;  %v421_v27 = vld [vmem:[%s2831_s18 + $0x58] sm:$0xff] }
  0x16   : > { %2393 = vmatprep.subr.bf16.mxu1 %v2552_v11  ;;  %v446_v25 = vpack.c.bf16 %v419_v23, %v418_v22  ;;  %v422_v28 = vld [vmem:[%s2831_s18 + $0x60] sm:$0xff]  ;;  %v423_v29 = vld [vmem:[%s2831_s18 + $0x68] sm:$0xff]  ;;  %v447_v30 = vpack.c.bf16 %v421_v27, %v420_v26  ;;  %v424_v32 = vld [vmem:[%s2831_s18 + $0x70] sm:$0xff] }
  0x17   : > { %v448_v31 = vpack.c.bf16 %v423_v29, %v422_v28  ;;  %v425_v33 = vld [vmem:[%s2831_s18 + $0x78] sm:$0xff]  ;;  %v426_v34 = vld [vmem:[%s2831_s18 + $0x80] sm:$0xff]  ;;  %v427_v35 = vld [vmem:[%s2831_s18 + $0x88] sm:$0xff] }
  0x18   : > { %2352 = vmatpush3.bf16.msra.mxu0 %v2547_v7  ;;  %v449_v36 = vpack.c.bf16 %v425_v33, %v424_v32  ;;  %v450_v37 = vpack.c.bf16 %v427_v35, %v426_v34  ;;  %v428_v38 = vld [vmem:[%s2831_s18 + $0x90] sm:$0xff]  ;;  %v429_v39 = vld [vmem:[%s2831_s18 + $0x98] sm:$0xff]  ;;  %v430_v40 = vld [vmem:[%s2831_s18 + $0xa0] sm:$0xff] }
  0x19   : > { %2353 = vmatprep.subr.bf16.mxu0 %v2548_v8  ;;  %v431_v41 = vld [vmem:[%s2831_s18 + $0xa8] sm:$0xff]  ;;  %v451_v42 = vpack.c.bf16 %v429_v39, %v428_v38  ;;  %v432_v44 = vld [vmem:[%s2831_s18 + $0xb0] sm:$0xff]  ;;  %v433_v45 = vld [vmem:[%s2831_s18 + $0xb8] sm:$0xff] }
  0x1a   : > { %v452_v43 = vpack.c.bf16 %v431_v41, %v430_v40  ;;  %v434_v46 = vld [vmem:[%s2831_s18 + $0xc0] sm:$0xff]  ;;  %v435_v47 = vld [vmem:[%s2831_s18 + $0xc8] sm:$0xff]  ;;  %v453_v48 = vpack.c.bf16 %v433_v45, %v432_v44  ;;  %v436_v50 = vld [vmem:[%s2831_s18 + $0xd0] sm:$0xff] }
  0x1b   : > { %v454_v49 = vpack.c.bf16 %v435_v47, %v434_v46  ;;  %v437_v51 = vld [vmem:[%s2831_s18 + $0xd8] sm:$0xff]  ;;  %v438_v52 = vld [vmem:[%s2831_s18 + $0xe0] sm:$0xff]  ;;  %v439_v53 = vld [vmem:[%s2831_s18 + $0xe8] sm:$0xff] }
  0x1c   : > { %2354 = vmatpush3.bf16.msra.mxu0 %v2548_v8  ;;  %v455_v54 = vpack.c.bf16 %v437_v51, %v436_v50  ;;  %v456_v55 = vpack.c.bf16 %v439_v53, %v438_v52  ;;  %v440_v56 = vld [vmem:[%s2831_s18 + $0xf0] sm:$0xff]  ;;  %v441_v57 = vld [vmem:[%s2831_s18 + $0xf8] sm:$0xff] }
  0x1d   : > { %2355 = vmatprep.subr.bf16.mxu0 %v2549_v9  ;;  %2394 = vmatpush3.bf16.xpose.msra.mxu1 %v2552_v11  ;;  %v457_v58 = vpack.c.bf16 %v441_v57, %v440_v56  ;;  %v2554_v59 = vld [vmem:[%s2848_s10 + $0x18] sm:$0xff]  }
  0x1e   : > { %2395 = vmatprep.subr.bf16.mxu1 %v2553_v15 }
  0x20   : > { %2356 = vmatpush3.bf16.msra.mxu0 %v2549_v9 }
  0x21   : > { %2357 = vmatprep.subr.bf16.mxu0 %v2550_v12 }
  0x24   : > { %2358 = vmatpush3.bf16.msra.mxu0 %v2550_v12 }
  0x25   : > { %2396 = vmatpush3.bf16.xpose.msra.mxu1 %v2553_v15 }
  0x26   : > { %2397 = vmatprep.subr.bf16.mxu1 %v2554_v59 }
  0x27   : > { %2360 = vmatmul.mubr.bf16.vlgmr.msra.gmra.mrb[0].mxu0 %v443_v18 }
  0x28   : > { %2363 = vmatprep.mubr.bf16.mxu0 %v444_v19 }
  0x2d   : > { %2398 = vmatpush3.bf16.xpose.msra.mxu1 %v2554_v59 }
  0x2f   : > { %2364 = vmatmul.mubr.bf16.gmra.mrb[4].mxu0 %v445_v24 }
  0x30   : > { %2367 = vmatprep.mubr.bf16.mxu0 %v446_v25 }
  0x37   : > { %2368 = vmatmul.mubr.bf16.gmra.mrb[8].mxu0 %v447_v30 }
  0x38   : > { %2371 = vmatprep.mubr.bf16.mxu0 %v448_v31 }
  0x3f   : > { %2372 = vmatmul.mubr.bf16.gmra.mrb[12].mxu0 %v449_v36 }
  0x40   : > { %2375 = vmatprep.mubr.bf16.mxu0 %v450_v37 }
  0x47   : > { %2376 = vmatmul.mubr.bf16.gmra.mrb[16].mxu0 %v451_v42 }
  0x48   : > { %2379 = vmatprep.mubr.bf16.mxu0 %v452_v43 }
  0x4f   : > { %2380 = vmatmul.mubr.bf16.gmra.mrb[20].mxu0 %v453_v48 }
  0x50   : > { %2383 = vmatprep.mubr.bf16.mxu0 %v454_v49 }
  0x57   : > { %2384 = vmatmul.mubr.bf16.gmra.mrb[24].mxu0 %v455_v54 }
  0x58   : > { %2387 = vmatprep.mubr.bf16.mxu0 %v456_v55 }
  0x5f   : > { %2388 = vmatmul.mubr.bf16.gmra.mrb[28].mxu0 %v457_v58 }
  0xfa   : > { %v2361_v60 = vpop.f32.mrb[0].mxu0 }
  0xfb   : > { %v563_v62 = vpop.f32.mrb[1].mxu0  ;;  %v572_v0 = vadd.f32 %v2361_v60, %v2898_v61 }
  0xfc   : > { %v2362_v63 = vpop.f32.mrb[2].mxu0  ;;  %v564_v3 = vadd.f32 %v2898_v61, %v563_v62 }
  0xfd   : > { %v575_v1 = vadd.f32 %v2362_v63, %v2898_v61  ;;  %v566_v2 = vpop.f32.mrb[3].mxu0 }
  0xfe   : > { %v567_v4 = vadd.f32 %v2898_v61, %v566_v2 }
  0xff   : > { %v691_v5 = vpack.c.bf16 %v575_v1, %v572_v0 }
 0x100   : > { %v690_v6 = vpack.c.bf16 %v567_v4, %v564_v3 }
 0x102   : > { %v2365_v7 = vpop.f32.mrb[4].mxu0  ;;  %2399 = vmatprep.mubr.bf16.mxu1 %v690_v6 }
 0x103   : > { %v588_v8 = vadd.f32 %v2365_v7, %v2898_v61  ;;  %v579_v9 = vpop.f32.mrb[5].mxu0  ;;  %2400 = vmatmul.mubr.bf16.vlgmr.msra.gmra.mrb[0].mxu1 %v691_v5 }
 0x104   : > { %v580_v10 = vadd.f32 %v2898_v61, %v579_v9  ;;  %v2366_v11 = vpop.f32.mrb[6].mxu0 }
 0x105   : > { %v591_v12 = vadd.f32 %v2366_v11, %v2898_v61  ;;  %v582_v13 = vpop.f32.mrb[7].mxu0 }
 0x106   : > { %v583_v14 = vadd.f32 %v2898_v61, %v582_v13 }
 0x107   : > { %v693_v15 = vpack.c.bf16 %v591_v12, %v588_v8 }
 0x108   : > { %v692_v16 = vpack.c.bf16 %v583_v14, %v580_v10 }
 0x10a   : > { %v2369_v17 = vpop.f32.mrb[8].mxu0  ;;  %2403 = vmatprep.mubr.bf16.mxu1 %v692_v16 }
 0x10b   : > { %v604_v18 = vadd.f32 %v2369_v17, %v2898_v61  ;;  %v595_v19 = vpop.f32.mrb[9].mxu0  ;;  %2404 = vmatmul.mubr.bf16.gmra.mrb[4].mxu1 %v693_v15 }
 0x10c   : > { %v596_v20 = vadd.f32 %v2898_v61, %v595_v19  ;;  %v2370_v21 = vpop.f32.mrb[10].mxu0 }
 0x10d   : > { %v607_v22 = vadd.f32 %v2370_v21, %v2898_v61  ;;  %v598_v23 = vpop.f32.mrb[11].mxu0 }
 0x10e   : > { %v599_v24 = vadd.f32 %v2898_v61, %v598_v23 }
 0x10f   : > { %v695_v25 = vpack.c.bf16 %v607_v22, %v604_v18 }
 0x110   : > { %v694_v26 = vpack.c.bf16 %v599_v24, %v596_v20 }
 0x112   : > { %v2373_v27 = vpop.f32.mrb[12].mxu0  ;;  %2407 = vmatprep.mubr.bf16.mxu1 %v694_v26 }
 0x113   : > { %v620_v28 = vadd.f32 %v2373_v27, %v2898_v61  ;;  %v611_v29 = vpop.f32.mrb[13].mxu0  ;;  %2408 = vmatmul.mubr.bf16.gmra.mrb[8].mxu1 %v695_v25 }
 0x114   : > { %v612_v30 = vadd.f32 %v2898_v61, %v611_v29  ;;  %v2374_v31 = vpop.f32.mrb[14].mxu0 }
 0x115   : > { %v623_v32 = vadd.f32 %v2374_v31, %v2898_v61  ;;  %v614_v33 = vpop.f32.mrb[15].mxu0 }
 0x116   : > { %v615_v34 = vadd.f32 %v2898_v61, %v614_v33 }
 0x117   : > { %v697_v35 = vpack.c.bf16 %v623_v32, %v620_v28 }
 0x118   : > { %v696_v36 = vpack.c.bf16 %v615_v34, %v612_v30 }
 0x11a   : > { %v2377_v37 = vpop.f32.mrb[16].mxu0  ;;  %2411 = vmatprep.mubr.bf16.mxu1 %v696_v36 }
 0x11b   : > { %v636_v38 = vadd.f32 %v2377_v37, %v2898_v61  ;;  %v627_v39 = vpop.f32.mrb[17].mxu0  ;;  %2412 = vmatmul.mubr.bf16.gmra.mrb[12].mxu1 %v697_v35 }
 0x11c   : > { %v628_v40 = vadd.f32 %v2898_v61, %v627_v39  ;;  %v2378_v41 = vpop.f32.mrb[18].mxu0 }
 0x11d   : > { %v639_v42 = vadd.f32 %v2378_v41, %v2898_v61  ;;  %v630_v43 = vpop.f32.mrb[19].mxu0 }
 0x11e   : > { %v631_v44 = vadd.f32 %v2898_v61, %v630_v43 }
 0x11f   : > { %v699_v45 = vpack.c.bf16 %v639_v42, %v636_v38 }
 0x120   : > { %v698_v46 = vpack.c.bf16 %v631_v44, %v628_v40 }
 0x122   : > { %v2381_v47 = vpop.f32.mrb[20].mxu0  ;;  %2415 = vmatprep.mubr.bf16.mxu1 %v698_v46 }
 0x123   : > { %v652_v48 = vadd.f32 %v2381_v47, %v2898_v61  ;;  %v643_v49 = vpop.f32.mrb[21].mxu0  ;;  %2416 = vmatmul.mubr.bf16.gmra.mrb[16].mxu1 %v699_v45 }
 0x124   : > { %v644_v50 = vadd.f32 %v2898_v61, %v643_v49  ;;  %v2382_v51 = vpop.f32.mrb[22].mxu0 }
 0x125   : > { %v655_v52 = vadd.f32 %v2382_v51, %v2898_v61  ;;  %v646_v53 = vpop.f32.mrb[23].mxu0 }
 0x126   : > { %v647_v54 = vadd.f32 %v2898_v61, %v646_v53 }
 0x127   : > { %v701_v55 = vpack.c.bf16 %v655_v52, %v652_v48 }
 0x128   : > { %v700_v56 = vpack.c.bf16 %v647_v54, %v644_v50 }
 0x12a   : > { %v2385_v57 = vpop.f32.mrb[24].mxu0  ;;  %2419 = vmatprep.mubr.bf16.mxu1 %v700_v56 }
 0x12b   : > { %v668_v58 = vadd.f32 %v2385_v57, %v2898_v61  ;;  %v659_v59 = vpop.f32.mrb[25].mxu0  ;;  %2420 = vmatmul.mubr.bf16.gmra.mrb[20].mxu1 %v701_v55 }
 0x12c   : > { %v660_v60 = vadd.f32 %v2898_v61, %v659_v59  ;;  %v2386_v62 = vpop.f32.mrb[26].mxu0 }
 0x12d   : > { %v671_v63 = vadd.f32 %v2386_v62, %v2898_v61  ;;  %v662_v0 = vpop.f32.mrb[27].mxu0 }
 0x12e   : > { %v663_v1 = vadd.f32 %v2898_v61, %v662_v0 }
 0x12f   : > { %v703_v2 = vpack.c.bf16 %v671_v63, %v668_v58 }
 0x130   : > { %v702_v3 = vpack.c.bf16 %v663_v1, %v660_v60 }
 0x132   : > { %v2389_v4 = vpop.f32.mrb[28].mxu0  ;;  %2423 = vmatprep.mubr.bf16.mxu1 %v702_v3 }
 0x133   : > { %v684_v5 = vadd.f32 %v2389_v4, %v2898_v61  ;;  %v675_v6 = vpop.f32.mrb[29].mxu0  ;;  %2424 = vmatmul.mubr.bf16.gmra.mrb[24].mxu1 %v703_v2 }
 0x134   : > { %v676_v7 = vadd.f32 %v2898_v61, %v675_v6  ;;  %v2390_v8 = vpop.f32.mrb[30].mxu0 }
 0x135   : > { %v687_v9 = vadd.f32 %v2390_v8, %v2898_v61  ;;  %v678_v10 = vpop.f32.mrb[31].mxu0 }
 0x136   : > { %v679_v11 = vadd.f32 %v2898_v61, %v678_v10 }
 0x137   : > { %v705_v12 = vpack.c.bf16 %v687_v9, %v684_v5 }
 0x138   : > { %v704_v13 = vpack.c.bf16 %v679_v11, %v676_v7 }
 0x13a   : > { %2427 = vmatprep.mubr.bf16.mxu1 %v704_v13 }
 0x13b   : > { %2428 = vmatmul.mubr.bf16.gmra.mrb[28].mxu1 %v705_v12 }
 0x1d6   : > { %v2932_v14 = vpop.f32.mrb[0].mxu1 }
 0x1d7   : > { %v2934_v15 = vpop.f32.mrb[1].mxu1  ;;  %v906_v16 = vsel %vm899_vm0, %v2932_v14, -inf }
 0x1d8   : > { %907 = vmax.xlane.f32.xlu1 %v906_v16  ;;  %v2938_v17 = vpop.f32.mrb[2].mxu1  ;;  %v900_v18 = vsel %vm899_vm0, %v2934_v15, -inf  ;;  %v2555_v16 = vld [vmem:[%s2858_s16] sm:$0xff]  }
 0x1d9   : > { %901 = vmax.xlane.f32.xlu0 %v900_v18  ;;  %v2942_v61 = vpop.f32.mrb[3].mxu1  ;;  %v909_v19 = vsel %vm899_vm0, %v2938_v17, -inf  ;;  %v2556_v18 = vld [vmem:[%s2858_s16 + $0x8] sm:$0xff]   ;;  %2431 = vmatprep.subr.bf16.mxu0 %v2555_v16 }
 0x1da   : > { %v903_v20 = vsel %vm899_vm0, %v2942_v61, -inf  ;;  %2432 = vmatpush3.bf16.msra.mxu0 %v2555_v16 }
 0x1db   : > { %2433 = vmatprep.subr.bf16.mxu0 %v2556_v18 }
 0x1dc   : > { %910 = vmax.xlane.f32.xlu1 %v909_v19  ;;  %v2557_v19 = vld [vmem:[%s2858_s16 + $0x10] sm:$0xff]  }
 0x1dd   : > { %904 = vmax.xlane.f32.xlu0 %v903_v20 }
 0x1de   : > { %v2948_v21 = vpop.f32.mrb[4].mxu1  ;;  %2434 = vmatpush3.bf16.msra.mxu0 %v2556_v18 }
 0x1df   : > { %v2950_v22 = vpop.f32.mrb[5].mxu1  ;;  %v918_v27 = vsel %vm899_vm0, %v2948_v21, -inf  ;;  %2435 = vmatprep.subr.bf16.mxu0 %v2557_v19 }
 0x1e0   : > { %v2952_v23 = vpop.f32.mrb[6].mxu1  ;;  %v912_v24 = vsel %vm899_vm0, %v2950_v22, -inf }
 0x1e1   : > { %913 = vmax.xlane.f32.xlu0 %v912_v24  ;;  %v2956_v25 = vpop.f32.mrb[7].mxu1  ;;  %v921_v29 = vsel %vm899_vm0, %v2952_v23, -inf }
 0x1e2   : > { %v915_v26 = vsel %vm899_vm0, %v2956_v25, -inf  ;;  %2436 = vmatpush3.bf16.msra.mxu0 %v2557_v19 }
 0x1e3   : > { %916 = vmax.xlane.f32.xlu1 %v915_v26 }
 0x1e5   : > { %919 = vmax.xlane.f32.xlu0 %v918_v27 }
 0x1e6   : > { %v2962_v28 = vpop.f32.mrb[8].mxu1 }
 0x1e7   : > { %922 = vmax.xlane.f32.xlu1 %v921_v29  ;;  %v2966_v30 = vpop.f32.mrb[9].mxu1  ;;  %v930_v35 = vsel %vm899_vm0, %v2962_v28, -inf }
 0x1e8   : > { %v2968_v31 = vpop.f32.mrb[10].mxu1  ;;  %v924_v32 = vsel %vm899_vm0, %v2966_v30, -inf }
 0x1e9   : > { %925 = vmax.xlane.f32.xlu0 %v924_v32  ;;  %v2972_v33 = vpop.f32.mrb[11].mxu1  ;;  %v933_v37 = vsel %vm899_vm0, %v2968_v31, -inf }
 0x1ea   : > { %v927_v34 = vsel %vm899_vm0, %v2972_v33, -inf }
 0x1eb   : > { %928 = vmax.xlane.f32.xlu1 %v927_v34 }
 0x1ed   : > { %931 = vmax.xlane.f32.xlu0 %v930_v35 }
 0x1ee   : > { %v2978_v36 = vpop.f32.mrb[12].mxu1 }
 0x1ef   : > { %934 = vmax.xlane.f32.xlu1 %v933_v37  ;;  %v2982_v38 = vpop.f32.mrb[13].mxu1  ;;  %v942_v43 = vsel %vm899_vm0, %v2978_v36, -inf }
 0x1f0   : > { %v2984_v39 = vpop.f32.mrb[14].mxu1  ;;  %v936_v40 = vsel %vm899_vm0, %v2982_v38, -inf }
 0x1f1   : > { %937 = vmax.xlane.f32.xlu0 %v936_v40  ;;  %v2988_v41 = vpop.f32.mrb[15].mxu1  ;;  %v945_v45 = vsel %vm899_vm0, %v2984_v39, -inf }
 0x1f2   : > { %v939_v42 = vsel %vm899_vm0, %v2988_v41, -inf }
 0x1f3   : > { %940 = vmax.xlane.f32.xlu1 %v939_v42 }
 0x1f5   : > { %943 = vmax.xlane.f32.xlu0 %v942_v43 }
 0x1f6   : > { %v2994_v44 = vpop.f32.mrb[16].mxu1 }
 0x1f7   : > { %946 = vmax.xlane.f32.xlu1 %v945_v45  ;;  %v2998_v46 = vpop.f32.mrb[17].mxu1  ;;  %v954_v51 = vsel %vm899_vm0, %v2994_v44, -inf }
 0x1f8   : > { %v3000_v47 = vpop.f32.mrb[18].mxu1  ;;  %v948_v48 = vsel %vm899_vm0, %v2998_v46, -inf }
 0x1f9   : > { %949 = vmax.xlane.f32.xlu0 %v948_v48  ;;  %v3004_v49 = vpop.f32.mrb[19].mxu1  ;;  %v957_v53 = vsel %vm899_vm0, %v3000_v47, -inf }
 0x1fa   : > { %v951_v50 = vsel %vm899_vm0, %v3004_v49, -inf }
 0x1fb   : > { %952 = vmax.xlane.f32.xlu1 %v951_v50 }
 0x1fd   : > { %955 = vmax.xlane.f32.xlu0 %v954_v51 }
 0x1fe   : > { %v3010_v52 = vpop.f32.mrb[20].mxu1 }
 0x1ff   : > { %958 = vmax.xlane.f32.xlu1 %v957_v53  ;;  %v3014_v54 = vpop.f32.mrb[21].mxu1  ;;  %v966_v59 = vsel %vm899_vm0, %v3010_v52, -inf }
 0x200   : > { %v3016_v55 = vpop.f32.mrb[22].mxu1  ;;  %v960_v56 = vsel %vm899_vm0, %v3014_v54, -inf }
 0x201   : > { %961 = vmax.xlane.f32.xlu0 %v960_v56  ;;  %v3020_v57 = vpop.f32.mrb[23].mxu1  ;;  %v969_v62 = vsel %vm899_vm0, %v3016_v55, -inf }
 0x202   : > { %v963_v58 = vsel %vm899_vm0, %v3020_v57, -inf }
 0x203   : > { %964 = vmax.xlane.f32.xlu1 %v963_v58 }
 0x205   : > { %967 = vmax.xlane.f32.xlu0 %v966_v59 }
 0x206   : > { %v3026_v60 = vpop.f32.mrb[24].mxu1 }
 0x207   : > { %970 = vmax.xlane.f32.xlu1 %v969_v62  ;;  %v3030_v63 = vpop.f32.mrb[25].mxu1  ;;  %v978_v4 = vsel %vm899_vm0, %v3026_v60, -inf }
 0x208   : > { %v3032_v0 = vpop.f32.mrb[26].mxu1  ;;  %v972_v1 = vsel %vm899_vm0, %v3030_v63, -inf }
 0x209   : > { %973 = vmax.xlane.f32.xlu0 %v972_v1  ;;  %v3036_v2 = vpop.f32.mrb[27].mxu1  ;;  %v981_v6 = vsel %vm899_vm0, %v3032_v0, -inf }
 0x20a   : > { %v975_v3 = vsel %vm899_vm0, %v3036_v2, -inf }
 0x20b   : > { %976 = vmax.xlane.f32.xlu1 %v975_v3 }
 0x20d   : > { %979 = vmax.xlane.f32.xlu0 %v978_v4 }
 0x20e   : > { %v3042_v5 = vpop.f32.mrb[28].mxu1 }
 0x20f   : > { %982 = vmax.xlane.f32.xlu1 %v981_v6  ;;  %v3046_v7 = vpop.f32.mrb[29].mxu1  ;;  %v990_v12 = vsel %vm899_vm0, %v3042_v5, -inf }
 0x210   : > { %v3048_v8 = vpop.f32.mrb[30].mxu1  ;;  %v984_v9 = vsel %vm899_vm0, %v3046_v7, -inf }
 0x211   : > { %985 = vmax.xlane.f32.xlu0 %v984_v9  ;;  %v3052_v10 = vpop.f32.mrb[31].mxu1  ;;  %v993_v13 = vsel %vm899_vm0, %v3048_v8, -inf }
 0x212   : > { %v987_v11 = vsel %vm899_vm0, %v3052_v10, -inf }
 0x213   : > { %988 = vmax.xlane.f32.xlu1 %v987_v11 }
 0x215   : > { %991 = vmax.xlane.f32.xlu0 %v990_v12 }
 0x217   : > { %994 = vmax.xlane.f32.xlu1 %v993_v13 }
 0x265   : > { %v908_v20 = vpop.xlane.xlu1 %907 }
 0x266   : > { %v998_v24 = vsub.f32 %v2932_v14, %v908_v20  ;;  %v902_v26 = vpop.xlane.xlu0 %901 }
 0x267   : > { %v996_v27 = vsub.f32 %v2934_v15, %v902_v26 }
 0x268   : > { %v1032_v29 = vmul.f32 1.442695, %v998_v24 }
 0x269   : > { %v1028_v32 = vmul.f32 1.442695, %v996_v27  ;;  %v911_v34 = vpop.xlane.xlu1 %910 }
 0x26a   : > { %v999_v35 = vsub.f32 %v2938_v17, %v911_v34  ;;  %v905_v37 = vpop.xlane.xlu0 %904 }
 0x26b   : > { %2567 = vpow2.f32 %v1028_v32  ;;  %v997_v40 = vsub.f32 %v2942_v61, %v905_v37 }
 0x26c   : > { %2569 = vpow2.f32 %v1032_v29  ;;  %v1034_v42 = vmul.f32 1.442695, %v999_v35 }
 0x26d   : > { %v1030_v43 = vmul.f32 1.442695, %v997_v40 }
 0x26e   : > { %v914_v45 = vpop.xlane.xlu0 %913 }
 0x26f   : > { %2571 = vpow2.f32 %v1030_v43  ;;  %v1000_v48 = vsub.f32 %v2950_v22, %v914_v45 }
 0x270   : > { %v917_v14 = vpop.xlane.xlu1 %916  ;;  %2573 = vpow2.f32 %v1034_v42 }
 0x271   : > { %v1036_v50 = vmul.f32 1.442695, %v1000_v48  ;;  %v1001_v15 = vsub.f32 %v2956_v25, %v917_v14 }
 0x272   : > { %v920_v51 = vpop.xlane.xlu0 %919 }
 0x273   : > { %2575 = vpow2.f32 %v1036_v50  ;;  %v1038_v53 = vmul.f32 1.442695, %v1001_v15  ;;  %v1002_v17 = vsub.f32 %v2948_v21, %v920_v51 }
 0x274   : > { %v923_v56 = vpop.xlane.xlu1 %922 }
 0x275   : > { %v3070_v58 = vpop.eup %2567  ;;  %2577 = vpow2.f32 %v1038_v53  ;;  %v1040_v61 = vmul.f32 1.442695, %v1002_v17  ;;  %v1003_v59 = vsub.f32 %v2952_v23, %v923_v56 }
 0x276   : > { %v926_v62 = vpop.xlane.xlu0 %925  ;;  %v1092_v22 = vsel %vm899_vm0, %v3070_v58, 0.0  ;;  %v3075_v1 = vpop.eup %2569 }
 0x277   : > { %2579 = vpow2.f32 %v1040_v61  ;;  %v1042_v25 = vmul.f32 1.442695, %v1003_v59  ;;  %v1004_v3 = vsub.f32 %v2966_v30, %v926_v62  ;;  %1093 = vadd.xlane.f32.xlu0 %v1092_v22  ;;  %v1098_v23 = vsel %vm899_vm0, %v3075_v1, 0.0 }
 0x278   : > { %v929_v4 = vpop.xlane.xlu1 %928 }
 0x279   : > { %v3078_v21 = vpop.eup %2571  ;;  %2581 = vpow2.f32 %v1042_v25  ;;  %v1044_v6 = vmul.f32 1.442695, %v1004_v3  ;;  %v1005_v9 = vsub.f32 %v2972_v33, %v929_v4 }
 0x27a   : > { %v932_v11 = vpop.xlane.xlu0 %931  ;;  %v1095_v12 = vsel %vm899_vm0, %v3078_v21, 0.0  ;;  %v3085_v13 = vpop.eup %2573 }
 0x27b   : > { %2583 = vpow2.f32 %v1044_v6  ;;  %v1046_v16 = vmul.f32 1.442695, %v1005_v9  ;;  %v1006_v30 = vsub.f32 %v2962_v28, %v932_v11  ;;  %1099 = vadd.xlane.f32.xlu0 %v1098_v23  ;;  %1096 = vadd.xlane.f32.xlu1 %v1095_v12  ;;  %v1101_v27 = vsel %vm899_vm0, %v3085_v13, 0.0 }
 0x27c   : > { %v935_v18 = vpop.xlane.xlu1 %934 }
 0x27d   : > { %v3088_v19 = vpop.eup %2575  ;;  %2585 = vpow2.f32 %v1046_v16  ;;  %v1048_v33 = vmul.f32 1.442695, %v1006_v30  ;;  %v1007_v20 = vsub.f32 %v2968_v31, %v935_v18 }
 0x27e   : > { %v938_v24 = vpop.xlane.xlu0 %937  ;;  %v1104_v26 = vsel %vm899_vm0, %v3088_v19, 0.0 }
 0x27f   : > { %v3095_v29 = vpop.eup %2577  ;;  %2587 = vpow2.f32 %v1048_v33  ;;  %v1050_v28 = vmul.f32 1.442695, %v1007_v20  ;;  %v1008_v32 = vsub.f32 %v2982_v38, %v938_v24  ;;  %1105 = vadd.xlane.f32.xlu0 %v1104_v26  ;;  %1102 = vadd.xlane.f32.xlu1 %v1101_v27 }
 0x280   : > { %v941_v34 = vpop.xlane.xlu1 %940  ;;  %v1107_v43 = vsel %vm899_vm0, %v3095_v29, 0.0 }
 0x281   : > { %v3098_v35 = vpop.eup %2579  ;;  %2589 = vpow2.f32 %v1050_v28  ;;  %v1052_v31 = vmul.f32 1.442695, %v1008_v32  ;;  %v1009_v37 = vsub.f32 %v2988_v41, %v941_v34 }
 0x282   : > { %v944_v40 = vpop.xlane.xlu0 %943  ;;  %v1110_v42 = vsel %vm899_vm0, %v3098_v35, 0.0 }
 0x283   : > { %v3105_v45 = vpop.eup %2581  ;;  %2591 = vpow2.f32 %v1052_v31  ;;  %v1054_v38 = vmul.f32 1.442695, %v1009_v37  ;;  %v1010_v48 = vsub.f32 %v2978_v36, %v944_v40  ;;  %1111 = vadd.xlane.f32.xlu0 %v1110_v42  ;;  %1108 = vadd.xlane.f32.xlu1 %v1107_v43 }
 0x284   : > { %v947_v14 = vpop.xlane.xlu1 %946  ;;  %v1113_v17 = vsel %vm899_vm0, %v3105_v45, 0.0 }
 0x285   : > { %v3108_v50 = vpop.eup %2583  ;;  %2593 = vpow2.f32 %v1054_v38  ;;  %v1056_v41 = vmul.f32 1.442695, %v1010_v48  ;;  %v1011_v15 = vsub.f32 %v2984_v39, %v947_v14 }
 0x286   : > { %v950_v51 = vpop.xlane.xlu0 %949  ;;  %v1116_v53 = vsel %vm899_vm0, %v3108_v50, 0.0 }
 0x287   : > { %v3115_v56 = vpop.eup %2585  ;;  %2595 = vpow2.f32 %v1056_v41  ;;  %v1058_v36 = vmul.f32 1.442695, %v1011_v15  ;;  %v1012_v61 = vsub.f32 %v2998_v46, %v950_v51  ;;  %1117 = vadd.xlane.f32.xlu0 %v1116_v53  ;;  %1114 = vadd.xlane.f32.xlu1 %v1113_v17  ;;  %v2558_v51 = vld [vmem:[%s2858_s16 + $0x18] sm:$0xff]  }
 0x288   : > { %v953_v59 = vpop.xlane.xlu1 %952  ;;  %v1119_v4 = vsel %vm899_vm0, %v3115_v56, 0.0  ;;  %2437 = vmatprep.subr.bf16.mxu0 %v2558_v51 }
 0x289   : > { %v3118_v62 = vpop.eup %2587  ;;  %2597 = vpow2.f32 %v1058_v36  ;;  %v1060_v39 = vmul.f32 1.442695, %v1012_v61  ;;  %v1013_v22 = vsub.f32 %v3004_v49, %v953_v59  ;;  %2438 = vmatpush3.bf16.msra.mxu0 %v2558_v51 }
 0x28a   : > { %v956_v25 = vpop.xlane.xlu0 %955  ;;  %v1122_v3 = vsel %vm899_vm0, %v3118_v62, 0.0 }
 0x28b   : > { %v3125_v6 = vpop.eup %2589  ;;  %2599 = vpow2.f32 %v1060_v39  ;;  %v1062_v46 = vmul.f32 1.442695, %v1013_v22  ;;  %v1014_v9 = vsub.f32 %v2994_v44, %v956_v25  ;;  %1123 = vadd.xlane.f32.xlu0 %v1122_v3  ;;  %1120 = vadd.xlane.f32.xlu1 %v1119_v4 }
 0x28c   : > { %v959_v11 = vpop.xlane.xlu1 %958  ;;  %v1125_v18 = vsel %vm899_vm0, %v3125_v6, 0.0 }
 0x28d   : > { %v3128_v23 = vpop.eup %2591  ;;  %2601 = vpow2.f32 %v1062_v46  ;;  %v1064_v49 = vmul.f32 1.442695, %v1014_v9  ;;  %v1015_v12 = vsub.f32 %v3000_v47, %v959_v11 }
 0x28e   : > { %v962_v16 = vpop.xlane.xlu0 %961  ;;  %v1128_v30 = vsel %vm899_vm0, %v3128_v23, 0.0 }
 0x28f   : > { %v3135_v33 = vpop.eup %2593  ;;  %2603 = vpow2.f32 %v1064_v49  ;;  %v1066_v44 = vmul.f32 1.442695, %v1015_v12  ;;  %v1016_v20 = vsub.f32 %v3014_v54, %v962_v16  ;;  %1129 = vadd.xlane.f32.xlu0 %v1128_v30  ;;  %1126 = vadd.xlane.f32.xlu1 %v1125_v18 }
 0x290   : > { %v965_v24 = vpop.xlane.xlu1 %964  ;;  %v1131_v34 = vsel %vm899_vm0, %v3135_v33, 0.0 }
 0x291   : > { %v3138_v26 = vpop.eup %2595  ;;  %2605 = vpow2.f32 %v1066_v44  ;;  %v1068_v47 = vmul.f32 1.442695, %v1016_v20  ;;  %v1017_v27 = vsub.f32 %v3020_v57, %v965_v24 }
 0x292   : > { %v968_v28 = vpop.xlane.xlu0 %967  ;;  %v1134_v32 = vsel %vm899_vm0, %v3138_v26, 0.0 }
 0x293   : > { %v3145_v31 = vpop.eup %2597  ;;  %2607 = vpow2.f32 %v1068_v47  ;;  %v1070_v54 = vmul.f32 1.442695, %v1017_v27  ;;  %v1018_v37 = vsub.f32 %v3010_v52, %v968_v28  ;;  %1135 = vadd.xlane.f32.xlu0 %v1134_v32  ;;  %1132 = vadd.xlane.f32.xlu1 %v1131_v34 }
 0x294   : > { %v971_v40 = vpop.xlane.xlu1 %970  ;;  %v1137_v14 = vsel %vm899_vm0, %v3145_v31, 0.0 }
 0x295   : > { %v3148_v42 = vpop.eup %2599  ;;  %2609 = vpow2.f32 %v1070_v54  ;;  %v1072_v57 = vmul.f32 1.442695, %v1018_v37  ;;  %v1019_v43 = vsub.f32 %v3016_v55, %v971_v40 }
 0x296   : > { %v974_v38 = vpop.xlane.xlu0 %973  ;;  %v1140_v48 = vsel %vm899_vm0, %v3148_v42, 0.0 }
 0x297   : > { %v3155_v41 = vpop.eup %2601  ;;  %2611 = vpow2.f32 %v1072_v57  ;;  %v1074_v52 = vmul.f32 1.442695, %v1019_v43  ;;  %v1020_v15 = vsub.f32 %v3030_v63, %v974_v38  ;;  %1141 = vadd.xlane.f32.xlu0 %v1140_v48  ;;  %1138 = vadd.xlane.f32.xlu1 %v1137_v14 }
 0x298   : > { %v977_v53 = vpop.xlane.xlu1 %976  ;;  %v1143_v39 = vsel %vm899_vm0, %v3155_v41, 0.0 }
 0x299   : > { %v3159_v17 = vpop.eup %2603  ;;  %2613 = vpow2.f32 %v1074_v52  ;;  %v1076_v55 = vmul.f32 1.442695, %v1020_v15  ;;  %v1021_v36 = vsub.f32 %v3036_v2, %v977_v53 }
 0x29a   : > { %v980_v61 = vpop.xlane.xlu0 %979  ;;  %v1146_v59 = vsel %vm899_vm0, %v3159_v17, 0.0 }
 0x29b   : > { %v3166_v63 = vpop.eup %2605  ;;  %2615 = vpow2.f32 %v1076_v55  ;;  %v1078_v22 = vmul.f32 1.442695, %v1021_v36  ;;  %v1022_v25 = vsub.f32 %v3026_v60, %v980_v61  ;;  %1147 = vadd.xlane.f32.xlu0 %v1146_v59  ;;  %1144 = vadd.xlane.f32.xlu1 %v1143_v39  ;;  %v2559_v39 = vld [vmem:[%s3488_s5] sm:$0xff]  }
 0x29c   : > { %v983_v3 = vpop.xlane.xlu1 %982  ;;  %v1149_v49 = vsel %vm899_vm0, %v3166_v63, 0.0  ;;  %2471 = vmatprep.subr.bf16.mxu1 %v2559_v39 }
 0x29d   : > { %v3169_v4 = vpop.eup %2607  ;;  %2617 = vpow2.f32 %v1078_v22  ;;  %v1080_v2 = vmul.f32 1.442695, %v1022_v25  ;;  %v1023_v46 = vsub.f32 %v3032_v0, %v983_v3  ;;  %v2560_v22 = vld [vmem:[%s3488_s5 + $0x8] sm:$0xff]   ;;  %2472 = vmatpush3.bf16.msra.mxu1 %v2559_v39  ;;  %v2561_v25 = vld [vmem:[%s3488_s5 + $0x10] sm:$0xff]   ;;  %v2562_v3 = vld [vmem:[%s3488_s5 + $0x18] sm:$0xff]  }
 0x29e   : > { %v986_v9 = vpop.xlane.xlu0 %985  ;;  %v1152_v11 = vsel %vm899_vm0, %v3169_v4, 0.0  ;;  %2473 = vmatprep.subr.bf16.mxu1 %v2560_v22 }
 0x29f   : > { %v3176_v12 = vpop.eup %2609  ;;  %2619 = vpow2.f32 %v1080_v2  ;;  %v1082_v60 = vmul.f32 1.442695, %v1023_v46  ;;  %v1024_v16 = vsub.f32 %v3046_v7, %v986_v9  ;;  %1153 = vadd.xlane.f32.xlu0 %v1152_v11  ;;  %1150 = vadd.xlane.f32.xlu1 %v1149_v49  ;;  %v2563_v2 = vld [vmem:[%s3488_s5 + $0x20] sm:$0xff]   ;;  %v2564_v46 = vld [vmem:[%s3488_s5 + $0x28] sm:$0xff]   ;;  %v2565_v9 = vld [vmem:[%s3488_s5 + $0x30] sm:$0xff]  }
 0x2a0   : > { %v989_v30 = vpop.xlane.xlu1 %988  ;;  %v1155_v47 = vsel %vm899_vm0, %v3176_v12, 0.0  ;;  %v2566_v11 = vld [vmem:[%s3488_s5 + $0x38] sm:$0xff]  }
 0x2a1   : > { %v3179_v18 = vpop.eup %2611  ;;  %2621 = vpow2.f32 %v1082_v60  ;;  %v1084_v0 = vmul.f32 1.442695, %v1024_v16  ;;  %v1025_v44 = vsub.f32 %v3052_v10, %v989_v30  ;;  %2474 = vmatpush3.bf16.msra.mxu1 %v2560_v22 }
 0x2a2   : > { %v992_v20 = vpop.xlane.xlu0 %991  ;;  %v1158_v24 = vsel %vm899_vm0, %v3179_v18, 0.0  ;;  %2475 = vmatprep.subr.bf16.mxu1 %v2561_v25 }
 0x2a3   : > { %v3186_v27 = vpop.eup %2613  ;;  %2623 = vpow2.f32 %v1084_v0  ;;  %v1086_v7 = vmul.f32 1.442695, %v1025_v44  ;;  %v1026_v28 = vsub.f32 %v3042_v5, %v992_v20  ;;  %1159 = vadd.xlane.f32.xlu0 %v1158_v24  ;;  %1156 = vadd.xlane.f32.xlu1 %v1155_v47 }
 0x2a4   : > { %v995_v32 = vpop.xlane.xlu1 %994  ;;  %v1161_v40 = vsel %vm899_vm0, %v3186_v27, 0.0 }
 0x2a5   : > { %v3189_v34 = vpop.eup %2615  ;;  %2625 = vpow2.f32 %v1086_v7  ;;  %v1088_v10 = vmul.f32 1.442695, %v1026_v28  ;;  %v1027_v54 = vsub.f32 %v3048_v8, %v995_v32  ;;  %2476 = vmatpush3.bf16.msra.mxu1 %v2561_v25 }
 0x2a6   : > { %v1164_v37 = vsel %vm899_vm0, %v3189_v34, 0.0  ;;  %2477 = vmatprep.subr.bf16.mxu1 %v2562_v3 }
 0x2a7   : > { %v3196_v57 = vpop.eup %2617  ;;  %2627 = vpow2.f32 %v1088_v10  ;;  %v1090_v43 = vmul.f32 1.442695, %v1027_v54  ;;  %1165 = vadd.xlane.f32.xlu0 %v1164_v37  ;;  %1162 = vadd.xlane.f32.xlu1 %v1161_v40 }
 0x2a8   : > { %v1167_v8 = vsel %vm899_vm0, %v3196_v57, 0.0 }
 0x2a9   : > { %v3198_v5 = vpop.eup %2619  ;;  %2629 = vpow2.f32 %v1090_v43  ;;  %2478 = vmatpush3.bf16.msra.mxu1 %v2562_v3 }
 0x2aa   : > { %v1170_v38 = vsel %vm899_vm0, %v3198_v5, 0.0  ;;  %2479 = vmatprep.subr.bf16.mxu1 %v2563_v2 }
 0x2ab   : > { %v3204_v48 = vpop.eup %2621  ;;  %1171 = vadd.xlane.f32.xlu0 %v1170_v38  ;;  %1168 = vadd.xlane.f32.xlu1 %v1167_v8 }
 0x2ac   : > { %v1173_v15 = vsel %vm899_vm0, %v3204_v48, 0.0 }
 0x2ad   : > { %v3206_v14 = vpop.eup %2623  ;;  %2480 = vmatpush3.bf16.msra.mxu1 %v2563_v2 }
 0x2ae   : > { %v1176_v52 = vsel %vm899_vm0, %v3206_v14, 0.0  ;;  %2481 = vmatprep.subr.bf16.mxu1 %v2564_v46 }
 0x2af   : > { %v3212_v51 = vpop.eup %2625  ;;  %1177 = vadd.xlane.f32.xlu0 %v1176_v52  ;;  %1174 = vadd.xlane.f32.xlu1 %v1173_v15 }
 0x2b0   : > { %v1179_v36 = vsel %vm899_vm0, %v3212_v51, 0.0 }
 0x2b1   : > { %v3214_v53 = vpop.eup %2627  ;;  %2482 = vmatpush3.bf16.msra.mxu1 %v2564_v46 }
 0x2b2   : > { %v1182_v55 = vsel %vm899_vm0, %v3214_v53, 0.0  ;;  %2483 = vmatprep.subr.bf16.mxu1 %v2565_v9 }
 0x2b3   : > { %v3220_v61 = vpop.eup %2629  ;;  %1183 = vadd.xlane.f32.xlu0 %v1182_v55  ;;  %1180 = vadd.xlane.f32.xlu1 %v1179_v36 }
 0x2b4   : > { %v1185_v59 = vsel %vm899_vm0, %v3220_v61, 0.0 }
 0x2b5   : > { %2484 = vmatpush3.bf16.msra.mxu1 %v2565_v9 }
 0x2b6   : > { %2485 = vmatprep.subr.bf16.mxu1 %v2566_v11 }
 0x2b7   : > { %1186 = vadd.xlane.f32.xlu1 %v1185_v59 }
 0x2b9   : > { %2486 = vmatpush3.bf16.msra.mxu1 %v2566_v11 }
 0x304   : > { %v1094_v49 = vpop.xlane.xlu0 %1093 }
 0x305   : > { %2631 = vrcp.f32 %v1094_v49 }
 0x308   : > { %v1100_v60 = vpop.xlane.xlu0 %1099  ;;  %v1097_v16 = vpop.xlane.xlu1 %1096 }
 0x309   : > { %2633 = vrcp.f32 %v1100_v60 }
 0x30a   : > { %2635 = vrcp.f32 %v1097_v16 }
 0x30c   : > { %v1106_v30 = vpop.xlane.xlu0 %1105  ;;  %v1103_v0 = vpop.xlane.xlu1 %1102 }
 0x30d   : > { %2637 = vrcp.f32 %v1106_v30 }
 0x30e   : > { %2639 = vrcp.f32 %v1103_v0 }
 0x30f   : > { %v2632_v44 = vpop.eup %2631 }
 0x310   : > { %v1112_v20 = vpop.xlane.xlu0 %1111  ;;  %v1109_v24 = vpop.xlane.xlu1 %1108  ;;  %v1220_v47 = vmul.f32 %v2632_v44, %v3070_v58 }
 0x311   : > { %2641 = vrcp.f32 %v1112_v20 }
 0x312   : > { %2643 = vrcp.f32 %v1109_v24  ;;  %v2223_v7 = vpack.c.bf16 %v1220_v47, %v1220_v47 }
 0x313   : > { %v2634_v28 = vpop.eup %2633 }
 0x314   : > { %v2636_v32 = vpop.eup %2635  ;;  %v1222_v10 = vmul.f32 %v2634_v28, %v3075_v1  ;;  %v1118_v54 = vpop.xlane.xlu0 %1117  ;;  %1381 = vst.msk [vmem:[%s3253_s25] sm:$0xf] %vm1380_vm1, %v2223_v7 }
 0x315   : > { %v1115_v37 = vpop.xlane.xlu1 %1114  ;;  %2645 = vrcp.f32 %v1118_v54  ;;  %v1221_v58 = vmul.f32 %v2636_v32, %v3078_v21 }
 0x316   : > { %v2225_v40 = vpack.c.bf16 %v1222_v10, %v1222_v10  ;;  %2647 = vrcp.f32 %v1115_v37 }
 0x317   : > { %v2638_v43 = vpop.eup %2637  ;;  %v1252_v38 = vpack.c.bf16 %v1221_v58, %v1220_v47  ;;  %v2224_v8 = vpack.c.bf16 %v1221_v58, %v1221_v58 }
 0x318   : > { %v2640_v52 = vpop.eup %2639  ;;  %1383 = vst.msk [vmem:[%s3253_s25 + $0x8] sm:$0xf] %vm1380_vm1, %v2225_v40  ;;  %v1124_v15 = vpop.xlane.xlu0 %1123  ;;  %v1224_v1 = vmul.f32 %v2638_v43, %v3088_v19 }
 0x319   : > { %v1121_v55 = vpop.xlane.xlu1 %1120  ;;  %v1223_v36 = vmul.f32 %v2640_v52, %v3085_v13  ;;  %2649 = vrcp.f32 %v1124_v15  ;;  %1382 = vst.msk [vmem:[%s3253_s25 + $0x4] sm:$0xf] %vm1380_vm1, %v2224_v8  ;;  %2439 = vmatprep.mubr.msk.bf16.mxu0 %vm899_vm0, %v1252_v38 }
 0x31a   : > { %2651 = vrcp.f32 %v1121_v55  ;;  %v2227_v21 = vpack.c.bf16 %v1224_v1, %v1224_v1 }
 0x31b   : > { %v2642_v59 = vpop.eup %2641  ;;  %v1253_v39 = vpack.c.bf16 %v1223_v36, %v1222_v10  ;;  %v2226_v22 = vpack.c.bf16 %v1223_v36, %v1223_v36 }
 0x31c   : > { %v2644_v25 = vpop.eup %2643  ;;  %v1130_v3 = vpop.xlane.xlu0 %1129  ;;  %1385 = vst.msk [vmem:[%s3253_s25 + $0x10] sm:$0xf] %vm1380_vm1, %v2227_v21  ;;  %v1226_v19 = vmul.f32 %v2642_v59, %v3098_v35 }
 0x31d   : > { %v1127_v2 = vpop.xlane.xlu1 %1126  ;;  %1384 = vst.msk [vmem:[%s3253_s25 + $0xc] sm:$0xf] %vm1380_vm1, %v2226_v22  ;;  %2653 = vrcp.f32 %v1130_v3  ;;  %2440 = vmatmul.mubr.msk.bf16.vlgmr.msra.gmra.mrb[32].mxu0 %vm899_vm0, %v1253_v39  ;;  %v1225_v13 = vmul.f32 %v2644_v25, %v3095_v29 }
 0x31e   : > { %2655 = vrcp.f32 %v1127_v2  ;;  %v2229_v46 = vpack.c.bf16 %v1226_v19, %v1226_v19 }
 0x31f   : > { %v2646_v9 = vpop.eup %2645  ;;  %v1254_v11 = vpack.c.bf16 %v1225_v13, %v1224_v1  ;;  %v2228_v49 = vpack.c.bf16 %v1225_v13, %v1225_v13 }
 0x320   : > { %v2648_v60 = vpop.eup %2647  ;;  %v1136_v16 = vpop.xlane.xlu0 %1135  ;;  %1387 = vst.msk [vmem:[%s3253_s25 + $0x18] sm:$0xf] %vm1380_vm1, %v2229_v46  ;;  %v1228_v35 = vmul.f32 %v2646_v9, %v3108_v50 }
 0x321   : > { %v1133_v30 = vpop.xlane.xlu1 %1132  ;;  %2657 = vrcp.f32 %v1136_v16  ;;  %1386 = vst.msk [vmem:[%s3253_s25 + $0x14] sm:$0xf] %vm1380_vm1, %v2228_v49  ;;  %2443 = vmatprep.mubr.msk.bf16.mxu0 %vm899_vm0, %v1254_v11  ;;  %v1227_v29 = vmul.f32 %v2648_v60, %v3105_v45 }
 0x322   : > { %2659 = vrcp.f32 %v1133_v30  ;;  %v2231_v0 = vpack.c.bf16 %v1228_v35, %v1228_v35 }
 0x323   : > { %v2650_v44 = vpop.eup %2649  ;;  %v1255_v20 = vpack.c.bf16 %v1227_v29, %v1226_v19  ;;  %v2230_v24 = vpack.c.bf16 %v1227_v29, %v1227_v29 }
 0x324   : > { %v2652_v47 = vpop.eup %2651  ;;  %v1142_v7 = vpop.xlane.xlu0 %1141  ;;  %1389 = vst.msk [vmem:[%s3253_s25 + $0x20] sm:$0xf] %vm1380_vm1, %v2231_v0  ;;  %v1230_v50 = vmul.f32 %v2650_v44, %v3118_v62 }
 0x325   : > { %v1139_v28 = vpop.xlane.xlu1 %1138  ;;  %2661 = vrcp.f32 %v1142_v7  ;;  %1388 = vst.msk [vmem:[%s3253_s25 + $0x1c] sm:$0xf] %vm1380_vm1, %v2230_v24  ;;  %2444 = vmatmul.mubr.msk.bf16.gmra.mrb[36].mxu0 %vm899_vm0, %v1255_v20  ;;  %v1229_v45 = vmul.f32 %v2652_v47, %v3115_v56 }
 0x326   : > { %2663 = vrcp.f32 %v1139_v28  ;;  %v2233_v32 = vpack.c.bf16 %v1230_v50, %v1230_v50 }
 0x327   : > { %v2654_v10 = vpop.eup %2653  ;;  %v1256_v54 = vpack.c.bf16 %v1229_v45, %v1228_v35  ;;  %v2232_v37 = vpack.c.bf16 %v1229_v45, %v1229_v45 }
 0x328   : > { %v2656_v58 = vpop.eup %2655  ;;  %v1148_v40 = vpop.xlane.xlu0 %1147  ;;  %1391 = vst.msk [vmem:[%s3253_s25 + $0x28] sm:$0xf] %vm1380_vm1, %v2233_v32  ;;  %v1232_v62 = vmul.f32 %v2654_v10, %v3128_v23 }
 0x329   : > { %v1145_v43 = vpop.xlane.xlu1 %1144  ;;  %2665 = vrcp.f32 %v1148_v40  ;;  %1390 = vst.msk [vmem:[%s3253_s25 + $0x24] sm:$0xf] %vm1380_vm1, %v2232_v37  ;;  %2447 = vmatprep.mubr.msk.bf16.mxu0 %vm899_vm0, %v1256_v54  ;;  %v1231_v56 = vmul.f32 %v2656_v58, %v3125_v6 }
 0x32a   : > { %2667 = vrcp.f32 %v1145_v43  ;;  %v2235_v38 = vpack.c.bf16 %v1232_v62, %v1232_v62 }
 0x32b   : > { %v2658_v8 = vpop.eup %2657  ;;  %v1257_v52 = vpack.c.bf16 %v1231_v56, %v1230_v50  ;;  %v2234_v15 = vpack.c.bf16 %v1231_v56, %v1231_v56 }
 0x32c   : > { %v2660_v55 = vpop.eup %2659  ;;  %v1154_v1 = vpop.xlane.xlu0 %1153  ;;  %1393 = vst.msk [vmem:[%s3253_s25 + $0x30] sm:$0xf] %vm1380_vm1, %v2235_v38  ;;  %v1234_v23 = vmul.f32 %v2658_v8, %v3138_v26 }
 0x32d   : > { %v1151_v36 = vpop.xlane.xlu1 %1150  ;;  %2669 = vrcp.f32 %v1154_v1  ;;  %1392 = vst.msk [vmem:[%s3253_s25 + $0x2c] sm:$0xf] %vm1380_vm1, %v2234_v15  ;;  %2448 = vmatmul.mubr.msk.bf16.gmra.mrb[40].mxu0 %vm899_vm0, %v1257_v52  ;;  %v1233_v6 = vmul.f32 %v2660_v55, %v3135_v33 }
 0x32e   : > { %2671 = vrcp.f32 %v1151_v36  ;;  %v2237_v21 = vpack.c.bf16 %v1234_v23, %v1234_v23 }
 0x32f   : > { %v2662_v59 = vpop.eup %2661  ;;  %v1258_v39 = vpack.c.bf16 %v1233_v6, %v1232_v62  ;;  %v2236_v22 = vpack.c.bf16 %v1233_v6, %v1233_v6 }
 0x330   : > { %v2664_v25 = vpop.eup %2663  ;;  %v1160_v3 = vpop.xlane.xlu0 %1159  ;;  %1395 = vst.msk [vmem:[%s3253_s25 + $0x38] sm:$0xf] %vm1380_vm1, %v2237_v21  ;;  %v1236_v26 = vmul.f32 %v2662_v59, %v3148_v42 }
 0x331   : > { %v1157_v2 = vpop.xlane.xlu1 %1156  ;;  %2673 = vrcp.f32 %v1160_v3  ;;  %1394 = vst.msk [vmem:[%s3253_s25 + $0x34] sm:$0xf] %vm1380_vm1, %v2236_v22  ;;  %2451 = vmatprep.mubr.msk.bf16.mxu0 %vm899_vm0, %v1258_v39  ;;  %v1235_v33 = vmul.f32 %v2664_v25, %v3145_v31 }
 0x332   : > { %2675 = vrcp.f32 %v1157_v2  ;;  %v2239_v19 = vpack.c.bf16 %v1236_v26, %v1236_v26 }
 0x333   : > { %v2666_v13 = vpop.eup %2665  ;;  %v1259_v46 = vpack.c.bf16 %v1235_v33, %v1234_v23  ;;  %v2238_v9 = vpack.c.bf16 %v1235_v33, %v1235_v33 }
 0x334   : > { %v2668_v11 = vpop.eup %2667  ;;  %v1166_v49 = vpop.xlane.xlu0 %1165  ;;  %1397 = vst.msk [vmem:[%s3253_s25 + $0x40] sm:$0xf] %vm1380_vm1, %v2239_v19  ;;  %v1238_v42 = vmul.f32 %v2666_v13, %v3159_v17 }
 0x335   : > { %v1163_v60 = vpop.xlane.xlu1 %1162  ;;  %2677 = vrcp.f32 %v1166_v49  ;;  %1396 = vst.msk [vmem:[%s3253_s25 + $0x3c] sm:$0xf] %vm1380_vm1, %v2238_v9  ;;  %2452 = vmatmul.mubr.msk.bf16.gmra.mrb[44].mxu0 %vm899_vm0, %v1259_v46  ;;  %v1237_v31 = vmul.f32 %v2668_v11, %v3155_v41 }
 0x336   : > { %2679 = vrcp.f32 %v1163_v60  ;;  %v2241_v16 = vpack.c.bf16 %v1238_v42, %v1238_v42 }
 0x337   : > { %v2670_v30 = vpop.eup %2669  ;;  %v1260_v35 = vpack.c.bf16 %v1237_v31, %v1236_v26  ;;  %v2240_v29 = vpack.c.bf16 %v1237_v31, %v1237_v31 }
 0x338   : > { %v2672_v0 = vpop.eup %2671  ;;  %v1172_v44 = vpop.xlane.xlu0 %1171  ;;  %1399 = vst.msk [vmem:[%s3253_s25 + $0x48] sm:$0xf] %vm1380_vm1, %v2241_v16  ;;  %v1240_v17 = vmul.f32 %v2670_v30, %v3169_v4 }
 0x339   : > { %v1169_v20 = vpop.xlane.xlu1 %1168  ;;  %2681 = vrcp.f32 %v1172_v44  ;;  %1398 = vst.msk [vmem:[%s3253_s25 + $0x44] sm:$0xf] %vm1380_vm1, %v2240_v29  ;;  %2455 = vmatprep.mubr.msk.bf16.mxu0 %vm899_vm0, %v1260_v35  ;;  %v1239_v41 = vmul.f32 %v2672_v0, %v3166_v63 }
 0x33a   : > { %2683 = vrcp.f32 %v1169_v20  ;;  %v2243_v24 = vpack.c.bf16 %v1240_v17, %v1240_v17 }
 0x33b   : > { %v2674_v47 = vpop.eup %2673  ;;  %v1261_v7 = vpack.c.bf16 %v1239_v41, %v1238_v42  ;;  %v2242_v28 = vpack.c.bf16 %v1239_v41, %v1239_v41 }
 0x33c   : > { %v2676_v50 = vpop.eup %2675  ;;  %v1178_v45 = vpop.xlane.xlu0 %1177  ;;  %1401 = vst.msk [vmem:[%s3253_s25 + $0x50] sm:$0xf] %vm1380_vm1, %v2243_v24  ;;  %v1242_v4 = vmul.f32 %v2674_v47, %v3179_v18 }
 0x33d   : > { %v1175_v32 = vpop.xlane.xlu1 %1174  ;;  %2685 = vrcp.f32 %v1178_v45  ;;  %1400 = vst.msk [vmem:[%s3253_s25 + $0x4c] sm:$0xf] %vm1380_vm1, %v2242_v28  ;;  %2456 = vmatmul.mubr.msk.bf16.gmra.mrb[48].mxu0 %vm899_vm0, %v1261_v7  ;;  %v1241_v63 = vmul.f32 %v2676_v50, %v3176_v12 }
 0x33e   : > { %2687 = vrcp.f32 %v1175_v32  ;;  %v2245_v10 = vpack.c.bf16 %v1242_v4, %v1242_v4 }
 0x33f   : > { %v2678_v54 = vpop.eup %2677  ;;  %v1262_v37 = vpack.c.bf16 %v1241_v63, %v1240_v17  ;;  %v2244_v58 = vpack.c.bf16 %v1241_v63, %v1241_v63 }
 0x340   : > { %v2680_v40 = vpop.eup %2679  ;;  %v1184_v43 = vpop.xlane.xlu0 %1183  ;;  %1403 = vst.msk [vmem:[%s3253_s25 + $0x58] sm:$0xf] %vm1380_vm1, %v2245_v10  ;;  %v1244_v18 = vmul.f32 %v2678_v54, %v3189_v34 }
 0x341   : > { %v1181_v62 = vpop.xlane.xlu1 %1180  ;;  %2689 = vrcp.f32 %v1184_v43  ;;  %1402 = vst.msk [vmem:[%s3253_s25 + $0x54] sm:$0xf] %vm1380_vm1, %v2244_v58  ;;  %2459 = vmatprep.mubr.msk.bf16.mxu0 %vm899_vm0, %v1262_v37  ;;  %v1243_v12 = vmul.f32 %v2680_v40, %v3186_v27 }
 0x342   : > { %2691 = vrcp.f32 %v1181_v62  ;;  %v2247_v56 = vpack.c.bf16 %v1244_v18, %v1244_v18 }
 0x343   : > { %v2682_v38 = vpop.eup %2681  ;;  %v1263_v8 = vpack.c.bf16 %v1243_v12, %v1242_v4  ;;  %v2246_v52 = vpack.c.bf16 %v1243_v12, %v1243_v12 }
 0x344   : > { %v2684_v15 = vpop.eup %2683  ;;  %1405 = vst.msk [vmem:[%s3253_s25 + $0x60] sm:$0xf] %vm1380_vm1, %v2247_v56  ;;  %v1246_v34 = vmul.f32 %v2682_v38, %v3198_v5 }
 0x345   : > { %v1187_v55 = vpop.xlane.xlu1 %1186  ;;  %1404 = vst.msk [vmem:[%s3253_s25 + $0x5c] sm:$0xf] %vm1380_vm1, %v2246_v52  ;;  %2460 = vmatmul.mubr.msk.bf16.gmra.mrb[52].mxu0 %vm899_vm0, %v1263_v8  ;;  %v1245_v27 = vmul.f32 %v2684_v15, %v3196_v57 }
 0x346   : > { %2693 = vrcp.f32 %v1187_v55  ;;  %v2249_v1 = vpack.c.bf16 %v1246_v34, %v1246_v34 }
 0x347   : > { %v2686_v36 = vpop.eup %2685  ;;  %v1264_v23 = vpack.c.bf16 %v1245_v27, %v1244_v18  ;;  %v2248_v6 = vpack.c.bf16 %v1245_v27, %v1245_v27 }
 0x348   : > { %v2688_v21 = vpop.eup %2687  ;;  %1407 = vst.msk [vmem:[%s3253_s25 + $0x68] sm:$0xf] %vm1380_vm1, %v2249_v1  ;;  %v1248_v59 = vmul.f32 %v2686_v36, %v3206_v14 }
 0x349   : > { %1406 = vst.msk [vmem:[%s3253_s25 + $0x64] sm:$0xf] %vm1380_vm1, %v2248_v6  ;;  %2463 = vmatprep.mubr.msk.bf16.mxu0 %vm899_vm0, %v1264_v23  ;;  %v1247_v5 = vmul.f32 %v2688_v21, %v3204_v48 }
 0x34a   : > { %v2251_v39 = vpack.c.bf16 %v1248_v59, %v1248_v59 }
 0x34b   : > { %v2690_v57 = vpop.eup %2689  ;;  %v1265_v22 = vpack.c.bf16 %v1247_v5, %v1246_v34  ;;  %v2250_v25 = vpack.c.bf16 %v1247_v5, %v1247_v5 }
 0x34c   : > { %v2692_v3 = vpop.eup %2691  ;;  %1409 = vst.msk [vmem:[%s3253_s25 + $0x70] sm:$0xf] %vm1380_vm1, %v2251_v39  ;;  %v1250_v2 = vmul.f32 %v2690_v57, %v3214_v53 }
 0x34d   : > { %1408 = vst.msk [vmem:[%s3253_s25 + $0x6c] sm:$0xf] %vm1380_vm1, %v2250_v25  ;;  %2464 = vmatmul.mubr.msk.bf16.gmra.mrb[56].mxu0 %vm899_vm0, %v1265_v22  ;;  %v1249_v14 = vmul.f32 %v2692_v3, %v3212_v51  ;;  %v2695_v3 = vld [vmem:[%s2831_s18 + $0x10] sm:$0xff] }
 0x34e   : > { %v2253_v26 = vpack.c.bf16 %v1250_v2, %v1250_v2 }
 0x34f   : > { %v1266_v33 = vpack.c.bf16 %v1249_v14, %v1248_v59  ;;  %v2252_v19 = vpack.c.bf16 %v1249_v14, %v1249_v14  ;;  %v3369_v59 = vld [vmem:[%s3489_s6] ss:$0 sm:$0xff] }
 0x350   : > { %v2694_v48 = vpop.eup %2693  ;;  %1411 = vst.msk [vmem:[%s3253_s25 + $0x78] sm:$0xf] %vm1380_vm1, %v2253_v26 }
 0x351   : > { %v1251_v13 = vmul.f32 %v2694_v48, %v3220_v61  ;;  %1410 = vst.msk [vmem:[%s3253_s25 + $0x74] sm:$0xf] %vm1380_vm1, %v2252_v19  ;;  %2467 = vmatprep.mubr.msk.bf16.mxu0 %vm899_vm0, %v1266_v33  ;;  %v2696_v48 = vld [vmem:[%s2831_s18] sm:$0xff] }
 0x353   : > { %v1267_v46 = vpack.c.bf16 %v1251_v13, %v1250_v2  ;;  %v2254_v53 = vpack.c.bf16 %v1251_v13, %v1251_v13  ;;  %v2697_v13 = vld [vmem:[%s2831_s18 + $0x18] sm:$0xff] }
 0x355   : > { %1412 = vst.msk [vmem:[%s3253_s25 + $0x7c] sm:$0xf] %vm1380_vm1, %v2254_v53  ;;  %2468 = vmatmul.mubr.msk.bf16.gmra.mrb[60].mxu0 %vm899_vm0, %v1267_v46  ;;  %v2698_v53 = vld [vmem:[%s2831_s18 + $0x8] sm:$0xff] }
 0x3f0   : > { %v2441_v9 = vpop.f32.mrb[32].mxu0 }
 0x3f1   : > { %v1527_v51 = vpop.f32.mrb[33].mxu0 }
 0x3f2   : > { %v2442_v11 = vpop.f32.mrb[34].mxu0 }
 0x3f3   : > { %v1655_v49 = vpack.c.bf16 %v2442_v11, %v2441_v9  ;;  %v1530_v60 = vpop.f32.mrb[35].mxu0 }
 0x3f4   : > { %v1654_v42 = vpack.c.bf16 %v1530_v60, %v1527_v51 }
 0x3f6   : > { %2487 = vmatprep.mubr.bf16.mxu1 %v1654_v42 }
 0x3f7   : > { %2488 = vmatmul.mubr.bf16.vlgmr.msra.gmra.mrb[32].mxu1 %v1655_v49 }
 0x3f8   : > { %v2445_v61 = vpop.f32.mrb[36].mxu0 }
 0x3f9   : > { %v1543_v31 = vpop.f32.mrb[37].mxu0 }
 0x3fa   : > { %v2446_v16 = vpop.f32.mrb[38].mxu0 }
 0x3fb   : > { %v1657_v30 = vpack.c.bf16 %v2446_v16, %v2445_v61  ;;  %v1546_v35 = vpop.f32.mrb[39].mxu0  ;;  %v2699_v61 = vld [vmem:[%s2831_s18 + $0x30] sm:$0xff] }
 0x3fc   : > { %v1656_v29 = vpack.c.bf16 %v1546_v35, %v1543_v31  ;;  %v2700_v35 = vld [vmem:[%s2831_s18 + $0x20] sm:$0xff] }
 0x3fe   : > { %2491 = vmatprep.mubr.bf16.mxu1 %v1656_v29 }
 0x3ff   : > { %2492 = vmatmul.mubr.bf16.gmra.mrb[36].mxu1 %v1657_v30 }
 0x400   : > { %v2449_v0 = vpop.f32.mrb[40].mxu0 }
 0x401   : > { %v1559_v44 = vpop.f32.mrb[41].mxu0 }
 0x402   : > { %v2450_v20 = vpop.f32.mrb[42].mxu0 }
 0x403   : > { %v1659_v17 = vpack.c.bf16 %v2450_v20, %v2449_v0  ;;  %v1562_v41 = vpop.f32.mrb[43].mxu0 }
 0x404   : > { %v1658_v24 = vpack.c.bf16 %v1562_v41, %v1559_v44  ;;  %v2701_v44 = vld [vmem:[%s2831_s18 + $0x38] sm:$0xff] }
 0x406   : > { %2495 = vmatprep.mubr.bf16.mxu1 %v1658_v24 }
 0x407   : > { %2496 = vmatmul.mubr.bf16.gmra.mrb[40].mxu1 %v1659_v17  ;;  %v2702_v17 = vld [vmem:[%s2831_s18 + $0x28] sm:$0xff] }
 0x408   : > { %v2453_v47 = vpop.f32.mrb[44].mxu0 }
 0x409   : > { %v1575_v7 = vpop.f32.mrb[45].mxu0 }
 0x40a   : > { %v2454_v28 = vpop.f32.mrb[46].mxu0 }
 0x40b   : > { %v1661_v50 = vpack.c.bf16 %v2454_v28, %v2453_v47  ;;  %v1578_v45 = vpop.f32.mrb[47].mxu0 }
 0x40c   : > { %v1660_v32 = vpack.c.bf16 %v1578_v45, %v1575_v7  ;;  %v2703_v45 = vld [vmem:[%s2831_s18 + $0x50] sm:$0xff] }
 0x40e   : > { %2499 = vmatprep.mubr.bf16.mxu1 %v1660_v32 }
 0x40f   : > { %2500 = vmatmul.mubr.bf16.gmra.mrb[44].mxu1 %v1661_v50 }
 0x410   : > { %v2457_v4 = vpop.f32.mrb[48].mxu0 }
 0x411   : > { %v1591_v63 = vpop.f32.mrb[49].mxu0 }
 0x412   : > { %v2458_v10 = vpop.f32.mrb[50].mxu0 }
 0x413   : > { %v1663_v54 = vpack.c.bf16 %v2458_v10, %v2457_v4  ;;  %v1594_v37 = vpop.f32.mrb[51].mxu0  ;;  %v2704_v10 = vld [vmem:[%s2831_s18 + $0x40] sm:$0xff] }
 0x414   : > { %v1662_v58 = vpack.c.bf16 %v1594_v37, %v1591_v63 }
 0x416   : > { %2503 = vmatprep.mubr.bf16.mxu1 %v1662_v58  ;;  %v2705_v58 = vld [vmem:[%s2831_s18 + $0x58] sm:$0xff] }
 0x417   : > { %2504 = vmatmul.mubr.bf16.gmra.mrb[48].mxu1 %v1663_v54 }
 0x418   : > { %v2461_v40 = vpop.f32.mrb[52].mxu0 }
 0x419   : > { %v1607_v43 = vpop.f32.mrb[53].mxu0 }
 0x41a   : > { %v2462_v62 = vpop.f32.mrb[54].mxu0 }
 0x41b   : > { %v1665_v18 = vpack.c.bf16 %v2462_v62, %v2461_v40  ;;  %v1610_v12 = vpop.f32.mrb[55].mxu0 }
 0x41c   : > { %v1664_v56 = vpack.c.bf16 %v1610_v12, %v1607_v43  ;;  %v2706_v43 = vld [vmem:[%s2831_s18 + $0x48] sm:$0xff] }
 0x41e   : > { %2507 = vmatprep.mubr.bf16.mxu1 %v1664_v56 }
 0x41f   : > { %2508 = vmatmul.mubr.bf16.gmra.mrb[52].mxu1 %v1665_v18 }
 0x420   : > { %v2465_v38 = vpop.f32.mrb[56].mxu0 }
 0x421   : > { %v1623_v8 = vpop.f32.mrb[57].mxu0 }
 0x422   : > { %v2466_v52 = vpop.f32.mrb[58].mxu0 }
 0x423   : > { %v1667_v15 = vpack.c.bf16 %v2466_v52, %v2465_v38  ;;  %v1626_v55 = vpop.f32.mrb[59].mxu0  ;;  %v2707_v52 = vld [vmem:[%s2831_s18 + $0x70] sm:$0xff] }
 0x424   : > { %v1666_v34 = vpack.c.bf16 %v1626_v55, %v1623_v8 }
 0x426   : > { %2511 = vmatprep.mubr.bf16.mxu1 %v1666_v34 }
 0x427   : > { %2512 = vmatmul.mubr.bf16.gmra.mrb[56].mxu1 %v1667_v15 }
 0x428   : > { %v2469_v27 = vpop.f32.mrb[60].mxu0 }
 0x429   : > { %v1639_v1 = vpop.f32.mrb[61].mxu0 }
 0x42a   : > { %v2470_v36 = vpop.f32.mrb[62].mxu0 }
 0x42b   : > { %v1669_v23 = vpack.c.bf16 %v2470_v36, %v2469_v27  ;;  %v1642_v6 = vpop.f32.mrb[63].mxu0  ;;  %v2708_v27 = vld [vmem:[%s2831_s18 + $0x60] sm:$0xff] }
 0x42c   : > { %v1668_v21 = vpack.c.bf16 %v1642_v6, %v1639_v1 }
 0x42e   : > { %2515 = vmatprep.mubr.bf16.mxu1 %v1668_v21  ;;  %v2710_v21 = vld [vmem:[%s2831_s18 + $0x68] sm:$0xff] }
 0x42f   : > { %2516 = vmatmul.mubr.bf16.gmra.mrb[60].mxu1 %v1669_v23  ;;  %v2709_v23 = vld [vmem:[%s2831_s18 + $0x78] sm:$0xff] }
 0x4ca   : > { %v2489_v5 = vpop.f32.mrb[32].mxu1 }
 0x4cb   : > { %v1784_v39 = vadd.f32 %v2489_v5, %v3369_v59  ;;  %v1775_v57 = vpop.f32.mrb[33].mxu1 }
 0x4cc   : > { %v1776_v22 = vadd.f32 %v3369_v59, %v1775_v57  ;;  %v2490_v25 = vpop.f32.mrb[34].mxu1 }
 0x4cd   : > { %v1904_v2 = vadd.f32 %v2695_v3, %v1784_v39  ;;  %v1787_v14 = vadd.f32 %v2490_v25, %v3369_v59  ;;  %v1778_v26 = vpop.f32.mrb[35].mxu1 }
 0x4ce   : > { %v1902_v33 = vadd.f32 %v2696_v48, %v1776_v22  ;;  %v1779_v19 = vadd.f32 %v3369_v59, %v1778_v26 }
 0x4cf   : > { %1936 = vst [vmem:[%s3377_s12 + $0x10] sm:$0xff] %v1904_v2  ;;  %v1905_v46 = vadd.f32 %v2697_v13, %v1787_v14  ;;  %v2711_v2 = vld [vmem:[%s2831_s18 + $0x90] sm:$0xff] }
 0x4d0   : > { %1934 = vst [vmem:[%s3377_s12] sm:$0xff] %v1902_v33  ;;  %v1903_v9 = vadd.f32 %v2698_v53, %v1779_v19  ;;  %v2712_v33 = vld [vmem:[%s2831_s18 + $0x80] sm:$0xff] }
 0x4d1   : > { %1937 = vst [vmem:[%s3377_s12 + $0x18] sm:$0xff] %v1905_v46  ;;  %v2713_v46 = vld [vmem:[%s2831_s18 + $0x98] sm:$0xff] }
 0x4d2   : > { %1935 = vst [vmem:[%s3377_s12 + $0x8] sm:$0xff] %v1903_v9  ;;  %v2493_v51 = vpop.f32.mrb[36].mxu1  ;;  %v2714_v9 = vld [vmem:[%s2831_s18 + $0x88] sm:$0xff] }
 0x4d3   : > { %v1800_v11 = vadd.f32 %v2493_v51, %v3369_v59  ;;  %v1791_v49 = vpop.f32.mrb[37].mxu1 }
 0x4d4   : > { %v1792_v60 = vadd.f32 %v3369_v59, %v1791_v49  ;;  %v2494_v42 = vpop.f32.mrb[38].mxu1 }
 0x4d5   : > { %v1908_v31 = vadd.f32 %v2699_v61, %v1800_v11  ;;  %v1803_v16 = vadd.f32 %v2494_v42, %v3369_v59  ;;  %v1794_v30 = vpop.f32.mrb[39].mxu1 }
 0x4d6   : > { %v1906_v29 = vadd.f32 %v2700_v35, %v1792_v60  ;;  %v1795_v0 = vadd.f32 %v3369_v59, %v1794_v30 }
 0x4d7   : > { %1940 = vst [vmem:[%s3377_s12 + $0x30] sm:$0xff] %v1908_v31  ;;  %v1909_v20 = vadd.f32 %v2701_v44, %v1803_v16  ;;  %v2715_v31 = vld [vmem:[%s2831_s18 + $0xb0] sm:$0xff] }
 0x4d8   : > { %1938 = vst [vmem:[%s3377_s12 + $0x20] sm:$0xff] %v1906_v29  ;;  %v1907_v41 = vadd.f32 %v2702_v17, %v1795_v0  ;;  %v2716_v29 = vld [vmem:[%s2831_s18 + $0xa0] sm:$0xff] }
 0x4d9   : > { %1941 = vst [vmem:[%s3377_s12 + $0x38] sm:$0xff] %v1909_v20  ;;  %v2717_v20 = vld [vmem:[%s2831_s18 + $0xb8] sm:$0xff] }
 0x4da   : > { %1939 = vst [vmem:[%s3377_s12 + $0x28] sm:$0xff] %v1907_v41  ;;  %v2497_v24 = vpop.f32.mrb[40].mxu1  ;;  %v2718_v41 = vld [vmem:[%s2831_s18 + $0xa8] sm:$0xff] }
 0x4db   : > { %v1816_v47 = vadd.f32 %v2497_v24, %v3369_v59  ;;  %v1807_v7 = vpop.f32.mrb[41].mxu1 }
 0x4dc   : > { %v1808_v28 = vadd.f32 %v3369_v59, %v1807_v7  ;;  %v2498_v50 = vpop.f32.mrb[42].mxu1 }
 0x4dd   : > { %v1912_v32 = vadd.f32 %v2703_v45, %v1816_v47  ;;  %v1819_v4 = vadd.f32 %v2498_v50, %v3369_v59  ;;  %v1810_v63 = vpop.f32.mrb[43].mxu1 }
 0x4de   : > { %v1910_v54 = vadd.f32 %v2704_v10, %v1808_v28  ;;  %v1811_v37 = vadd.f32 %v3369_v59, %v1810_v63 }
 0x4df   : > { %1944 = vst [vmem:[%s3377_s12 + $0x50] sm:$0xff] %v1912_v32  ;;  %v1913_v40 = vadd.f32 %v2705_v58, %v1819_v4  ;;  %v2719_v32 = vld [vmem:[%s2831_s18 + $0xd0] sm:$0xff] }
 0x4e0   : > { %1942 = vst [vmem:[%s3377_s12 + $0x40] sm:$0xff] %v1910_v54  ;;  %v1911_v62 = vadd.f32 %v2706_v43, %v1811_v37  ;;  %v2720_v54 = vld [vmem:[%s2831_s18 + $0xc0] sm:$0xff] }
 0x4e1   : > { %1945 = vst [vmem:[%s3377_s12 + $0x58] sm:$0xff] %v1913_v40  ;;  %v2721_v40 = vld [vmem:[%s2831_s18 + $0xd8] sm:$0xff] }
 0x4e2   : > { %1943 = vst [vmem:[%s3377_s12 + $0x48] sm:$0xff] %v1911_v62  ;;  %v2501_v18 = vpop.f32.mrb[44].mxu1  ;;  %v2722_v62 = vld [vmem:[%s2831_s18 + $0xc8] sm:$0xff] }
 0x4e3   : > { %v1832_v12 = vadd.f32 %v2501_v18, %v3369_v59  ;;  %v1823_v56 = vpop.f32.mrb[45].mxu1 }
 0x4e4   : > { %v1824_v38 = vadd.f32 %v3369_v59, %v1823_v56  ;;  %v2502_v8 = vpop.f32.mrb[46].mxu1 }
 0x4e5   : > { %v1916_v15 = vadd.f32 %v2707_v52, %v1832_v12  ;;  %v1835_v55 = vadd.f32 %v2502_v8, %v3369_v59  ;;  %v1826_v34 = vpop.f32.mrb[47].mxu1 }
 0x4e6   : > { %v1914_v1 = vadd.f32 %v2708_v27, %v1824_v38  ;;  %v1827_v36 = vadd.f32 %v3369_v59, %v1826_v34 }
 0x4e7   : > { %1948 = vst [vmem:[%s3377_s12 + $0x70] sm:$0xff] %v1916_v15  ;;  %v1917_v6 = vadd.f32 %v2709_v23, %v1835_v55  ;;  %v2723_v15 = vld [vmem:[%s2831_s18 + $0xf0] sm:$0xff] }
 0x4e8   : > { %1946 = vst [vmem:[%s3377_s12 + $0x60] sm:$0xff] %v1914_v1  ;;  %v1915_v5 = vadd.f32 %v2710_v21, %v1827_v36  ;;  %v2724_v1 = vld [vmem:[%s2831_s18 + $0xe0] sm:$0xff] }
 0x4e9   : > { %1949 = vst [vmem:[%s3377_s12 + $0x78] sm:$0xff] %v1917_v6  ;;  %v2725_v6 = vld [vmem:[%s2831_s18 + $0xf8] sm:$0xff] }
 0x4ea   : > { %1947 = vst [vmem:[%s3377_s12 + $0x68] sm:$0xff] %v1915_v5  ;;  %v2505_v39 = vpop.f32.mrb[48].mxu1  ;;  %v2726_v5 = vld [vmem:[%s2831_s18 + $0xe8] sm:$0xff] }
 0x4eb   : > { %v1848_v57 = vadd.f32 %v2505_v39, %v3369_v59  ;;  %v1839_v22 = vpop.f32.mrb[49].mxu1 }
 0x4ec   : > { %v1840_v25 = vadd.f32 %v3369_v59, %v1839_v22  ;;  %v2506_v3 = vpop.f32.mrb[50].mxu1 }
 0x4ed   : > { %v1920_v14 = vadd.f32 %v2711_v2, %v1848_v57  ;;  %v1851_v26 = vadd.f32 %v2506_v3, %v3369_v59  ;;  %v1842_v48 = vpop.f32.mrb[51].mxu1 }
 0x4ee   : > { %v1918_v19 = vadd.f32 %v2712_v33, %v1840_v25  ;;  %v1843_v13 = vadd.f32 %v3369_v59, %v1842_v48 }
 0x4ef   : > { %1952 = vst [vmem:[%s3377_s12 + $0x90] sm:$0xff] %v1920_v14  ;;  %v1921_v53 = vadd.f32 %v2713_v46, %v1851_v26 }
 0x4f0   : > { %1950 = vst [vmem:[%s3377_s12 + $0x80] sm:$0xff] %v1918_v19  ;;  %v1919_v51 = vadd.f32 %v2714_v9, %v1843_v13 }
 0x4f1   : > { %1953 = vst [vmem:[%s3377_s12 + $0x98] sm:$0xff] %v1921_v53 }
 0x4f2   : > { %1951 = vst [vmem:[%s3377_s12 + $0x88] sm:$0xff] %v1919_v51  ;;  %v2509_v11 = vpop.f32.mrb[52].mxu1 }
 0x4f3   : > { %v1864_v49 = vadd.f32 %v2509_v11, %v3369_v59  ;;  %v1855_v60 = vpop.f32.mrb[53].mxu1 }
 0x4f4   : > { %v1856_v42 = vadd.f32 %v3369_v59, %v1855_v60  ;;  %v2510_v61 = vpop.f32.mrb[54].mxu1 }
 0x4f5   : > { %v1924_v16 = vadd.f32 %v2715_v31, %v1864_v49  ;;  %v1867_v30 = vadd.f32 %v2510_v61, %v3369_v59  ;;  %v1858_v35 = vpop.f32.mrb[55].mxu1 }
 0x4f6   : > { %v1922_v0 = vadd.f32 %v2716_v29, %v1856_v42  ;;  %v1859_v44 = vadd.f32 %v3369_v59, %v1858_v35 }
 0x4f7   : > { %1956 = vst [vmem:[%s3377_s12 + $0xb0] sm:$0xff] %v1924_v16  ;;  %v1925_v17 = vadd.f32 %v2717_v20, %v1867_v30 }
 0x4f8   : > { %1954 = vst [vmem:[%s3377_s12 + $0xa0] sm:$0xff] %v1922_v0  ;;  %v1923_v24 = vadd.f32 %v2718_v41, %v1859_v44 }
 0x4f9   : > { %1957 = vst [vmem:[%s3377_s12 + $0xb8] sm:$0xff] %v1925_v17 }
 0x4fa   : > { %1955 = vst [vmem:[%s3377_s12 + $0xa8] sm:$0xff] %v1923_v24  ;;  %v2513_v47 = vpop.f32.mrb[56].mxu1 }
 0x4fb   : > { %v1880_v7 = vadd.f32 %v2513_v47, %v3369_v59  ;;  %v1871_v28 = vpop.f32.mrb[57].mxu1 }
 0x4fc   : > { %v1872_v50 = vadd.f32 %v3369_v59, %v1871_v28  ;;  %v2514_v45 = vpop.f32.mrb[58].mxu1 }
 0x4fd   : > { %v1928_v4 = vadd.f32 %v2719_v32, %v1880_v7  ;;  %v1883_v63 = vadd.f32 %v2514_v45, %v3369_v59  ;;  %v1874_v10 = vpop.f32.mrb[59].mxu1 }
 0x4fe   : > { %v1926_v37 = vadd.f32 %v2720_v54, %v1872_v50  ;;  %v1875_v58 = vadd.f32 %v3369_v59, %v1874_v10 }
 0x4ff   : > { %1960 = vst [vmem:[%s3377_s12 + $0xd0] sm:$0xff] %v1928_v4  ;;  %v1929_v43 = vadd.f32 %v2721_v40, %v1883_v63 }
 0x500   : > { %1958 = vst [vmem:[%s3377_s12 + $0xc0] sm:$0xff] %v1926_v37  ;;  %v1927_v18 = vadd.f32 %v2722_v62, %v1875_v58 }
 0x501   : > { %1961 = vst [vmem:[%s3377_s12 + $0xd8] sm:$0xff] %v1929_v43 }
 0x502   : > { %1959 = vst [vmem:[%s3377_s12 + $0xc8] sm:$0xff] %v1927_v18  ;;  %v2517_v12 = vpop.f32.mrb[60].mxu1 }
 0x503   : > { %v1896_v56 = vadd.f32 %v2517_v12, %v3369_v59  ;;  %v1887_v38 = vpop.f32.mrb[61].mxu1 }
 0x504   : > { %v1888_v8 = vadd.f32 %v3369_v59, %v1887_v38  ;;  %v2518_v52 = vpop.f32.mrb[62].mxu1 }
 0x505   : > { %v1932_v55 = vadd.f32 %v2723_v15, %v1896_v56  ;;  %v1899_v34 = vadd.f32 %v2518_v52, %v3369_v59  ;;  %v1890_v27 = vpop.f32.mrb[63].mxu1 }
 0x506   : > { %v1930_v36 = vadd.f32 %v2724_v1, %v1888_v8  ;;  %v1891_v23 = vadd.f32 %v3369_v59, %v1890_v27 }
 0x507   : > { %1964 = vst [vmem:[%s3377_s12 + $0xf0] sm:$0xff] %v1932_v55  ;;  %v1933_v21 = vadd.f32 %v2725_v6, %v1899_v34 }
 0x508   : > { %1962 = vst [vmem:[%s3377_s12 + $0xe0] sm:$0xff] %v1930_v36  ;;  %v1931_v39 = vadd.f32 %v2726_v5, %v1891_v23 }
 0x509   : > { %1965 = vst [vmem:[%s3377_s12 + $0xf8] sm:$0xff] %v1933_v21 }
 0x50a   : > { %1963 = vst [vmem:[%s3377_s12 + $0xe8] sm:$0xff] %v1931_v39 }
 0x50b PF: > { %s19_s29 = sadd.s32 1, %s2749_s29   ;;  %s3492_s27 = smov %s2745_s28 }
 0x50c   : > { %p16_p5 = scmp.ge.s32.totalorder %s19_s29, 4   ;;  %s3493_s28 = smov %s3495_s30 }
 0x50e   :  { %18 = sbr.rel (!%p16_p5) target bundleno = 2 (0x2), region = 96 }

// kernel: non_local_block_2d.2
= control target key start
LH: loop header
LB: loop body
LE: loop exit
PB: predicated region body
PF: predicated region fallthrough
CT: control target
= control target key end

     0   :  { %s5692_s15 = smov 0   ;;  %s5694_s16 = smov 0   ;;  %s7189_s0 = inlined_call_operand.vmem [shape: bf16[2,256,128], index: 0, kind: input, shape index: {}]   ;;  %s7190_s1 = inlined_call_operand.vmem [shape: bf16[128,256], index: 1, kind: input, shape index: {}]   ;;  %s7191_s2 = inlined_call_operand.vmem [shape: f32[1,256], index: 2, kind: input, shape index: {}]   ;;  %s7192_s3 = inlined_call_operand.vmem [shape: bf16[2,64,128], index: 3, kind: output, shape index: {0}]   ;;  %s7193_s4 = inlined_call_operand.vmem [shape: bf16[2,64,128], index: 4, kind: output, shape index: {1}]  }
   0x1   :  { %s5696_s17 = smov 0  }
   0x2 LB: > { %s27_s18 = sadd.s32 1, %s5660_s16  ;;  %p5131_p0 = scmp.ge.s32.totalorder %s5664_s17, 1  ;;  %s5664_s17 = sphi %s5696_s17, %s15_s17   ;;  %s5660_s16 = sphi %s5694_s16, %s7195_s16   ;;  %s5656_s15 = sphi %s5692_s15, %s7194_s15  }
   0x3   : > { %p29_p1 = scmp.ge.s32.totalorder %s27_s18, 2  ;;  %p188_p2 = scmp.lt.s32.totalorder %s5664_s17, 3 }
   0x5   : > { %s7197_s18 = smov (%p29_p1, %s27_s18), 0  ;;  %p189_p3 = pnand %p5131_p0, %p188_p2 }
   0x6   : > { %v5602_v0 = vld [vmem:[%s7190_s1] ss:$8 sps:$4 sm:$0xff] (!%p189_p3)   ;;  %v5603_v1 = vld [vmem:[%s7190_s1 + $0x4] ss:$8 sps:$4 sm:$0xff] (!%p189_p3)   ;;  %v5604_v2 = vld [vmem:[%s7190_s1 + $0x10] ss:$8 sps:$4 sm:$0xff] (!%p189_p3)   ;;  %v658_v34 = vlaneseq (!%p189_p3) }
   0x7   : > { %192 = sbr.rel (%p189_p3) target bundleno = 934 (0x3a6), region = 32  ;;  %5481 = vmatprep.subr.bf16.mxu0 (!%p189_p3), %v5602_v0  ;;  %5529 = vmatprep.subr.bf16.mxu1 (!%p189_p3), %v5603_v1  ;;  %v5605_v3 = vld [vmem:[%s7190_s1 + $0x14] ss:$8 sps:$4 sm:$0xff] (!%p189_p3)   ;;  %v5606_v4 = vld [vmem:[%s7190_s1 + $0x20] ss:$8 sps:$4 sm:$0xff] (!%p189_p3)   ;;  %p232_p4 = scmp.lt.s32.totalorder (!%p189_p3), %s5656_s15, 1 }
   0x8   : > { %5482 = vmatpush3.bf16.msra.mxu0 (!%p189_p3), %v5602_v0  ;;  %5530 = vmatpush3.bf16.msra.mxu1 (!%p189_p3), %v5603_v1  ;;  %v5607_v5 = vld [vmem:[%s7190_s1 + $0x24] ss:$8 sps:$4 sm:$0xff] (!%p189_p3)   ;;  %v5608_v6 = vld [vmem:[%s7190_s1 + $0x30] ss:$8 sps:$4 sm:$0xff] (!%p189_p3)   ;;  %v5609_v7 = vld [vmem:[%s7190_s1 + $0x34] ss:$8 sps:$4 sm:$0xff] (!%p189_p3)  }
   0x9   : > { %5483 = vmatprep.subr.bf16.mxu0 (!%p189_p3), %v5604_v2  ;;  %5531 = vmatprep.subr.bf16.mxu1 (!%p189_p3), %v5605_v3  ;;  %v5610_v8 = vld [vmem:[%s7190_s1 + $0x40] ss:$8 sps:$4 sm:$0xff] (!%p189_p3)   ;;  %v5611_v9 = vld [vmem:[%s7190_s1 + $0x44] ss:$8 sps:$4 sm:$0xff] (!%p189_p3)   ;;  %v5612_v10 = vld [vmem:[%s7190_s1 + $0x50] ss:$8 sps:$4 sm:$0xff] (!%p189_p3)  }
   0xa   : > { %v5613_v11 = vld [vmem:[%s7190_s1 + $0x54] ss:$8 sps:$4 sm:$0xff] (!%p189_p3)   ;;  %v5614_v12 = vld [vmem:[%s7190_s1 + $0x60] ss:$8 sps:$4 sm:$0xff] (!%p189_p3)   ;;  %v5615_v13 = vld [vmem:[%s7190_s1 + $0x64] ss:$8 sps:$4 sm:$0xff] (!%p189_p3)  }
   0xb   : > { %v5616_v15 = vld [vmem:[%s7190_s1 + $0x70] ss:$8 sps:$4 sm:$0xff] (!%p189_p3)   ;;  %v5617_v16 = vld [vmem:[%s7190_s1 + $0x74] ss:$8 sps:$4 sm:$0xff] (!%p189_p3)   ;;  %v5666_v32 = vmov (!%p189_p3), 1983009808  }
   0xc   : > { %5484 = vmatpush3.bf16.msra.mxu0 (!%p189_p3), %v5604_v2  ;;  %5532 = vmatpush3.bf16.msra.mxu1 (!%p189_p3), %v5605_v3  ;;  %v656_v33 = vunpack.c.l.s4 (!%p189_p3), %v5666_v32  ;;  %v659_v36 = vshrl.u32 (!%p189_p3), %v658_v34, 7  ;;  %v5789_v37 = vld [vmem:[%s7191_s2] ss:$0 sm:$0xff] (!%p189_p3)  ;;  %v5796_v39 = vld [vmem:[%s7191_s2 + $0x1] ss:$0 sm:$0xff] (!%p189_p3)  ;;  %vm1326_vm0 = vcmask (!%p189_p3), 1041408  }
   0xd   : > { %5485 = vmatprep.subr.bf16.mxu0 (!%p189_p3), %v5606_v4  ;;  %5533 = vmatprep.subr.bf16.mxu1 (!%p189_p3), %v5607_v5  ;;  %vm2607_vm1 = vcmask (!%p189_p3), 1041409   ;;  %vm2609_vm2 = vcmask (!%p189_p3), 1042434   ;;  %vm2611_vm3 = vcmask (!%p189_p3), 1043459   ;;  %vm2613_vm4 = vcmask (!%p189_p3), 1044484  }
   0xe   : > { %s7199_s15 = smov (!%p232_p4, %s5656_s15), 1  ;;  %v657_v35 = vunpack.c.0.s8 %v656_v33  ;;  %vm2615_vm5 = vcmask 1045509   ;;  %vm2617_vm6 = vcmask 1046534   ;;  %vm2619_vm7 = vcmask 1047559  }
   0xf   : > { %s5302_s23 = sshll.u32 %s7199_s15, 7  ;;  %s5303_s11 = sshll.u32 %s7199_s15, 5 }
  0x10   : > { %5486 = vmatpush3.bf16.msra.mxu0 %v5606_v4  ;;  %5534 = vmatpush3.bf16.msra.mxu1 %v5607_v5  ;;  %s5762_s28 = scalar_lea.vmem %s7189_s0, %s5302_s23  ;;  %v5791_v38 = vsub.s32 %v657_v35, %v659_v36  ;;  %s6001_s14 = scalar_lea.vmem %s7192_s3, %s5303_s11 }
  0x11   : > { %5487 = vmatprep.subr.bf16.mxu0 %v5608_v6  ;;  %5535 = vmatprep.subr.bf16.mxu1 %v5609_v7  ;;  %v5618_v14 = vld [vmem:[%s5762_s28] sm:$0xff]   ;;  %v5619_v17 = vld [vmem:[%s5762_s28 + $0x8] sm:$0xff]   ;;  %v5620_v18 = vld [vmem:[%s5762_s28 + $0x10] sm:$0xff]   ;;  %s6027_s21 = scalar_lea.vmem %s7193_s4, %s5303_s11 }
  0x12   : > { %5497 = vmatprep.mubr.bf16.mxu0 %v5618_v14  ;;  %5545 = vmatprep.mubr.bf16.mxu1 %v5618_v14  ;;  %v5621_v19 = vld [vmem:[%s5762_s28 + $0x18] sm:$0xff]   ;;  %v5622_v20 = vld [vmem:[%s5762_s28 + $0x20] sm:$0xff]   ;;  %v5623_v21 = vld [vmem:[%s5762_s28 + $0x28] sm:$0xff]  }
  0x13   : > { %v5624_v22 = vld [vmem:[%s5762_s28 + $0x30] sm:$0xff]   ;;  %v5625_v23 = vld [vmem:[%s5762_s28 + $0x38] sm:$0xff]   ;;  %v5626_v24 = vld [vmem:[%s5762_s28 + $0x40] sm:$0xff]  }
  0x14   : > { %5488 = vmatpush3.bf16.msra.mxu0 %v5608_v6  ;;  %5536 = vmatpush3.bf16.msra.mxu1 %v5609_v7  ;;  %v5627_v25 = vld [vmem:[%s5762_s28 + $0x48] sm:$0xff]   ;;  %v5628_v26 = vld [vmem:[%s5762_s28 + $0x50] sm:$0xff]   ;;  %v5629_v27 = vld [vmem:[%s5762_s28 + $0x58] sm:$0xff]  }
  0x15   : > { %5489 = vmatprep.subr.bf16.mxu0 %v5610_v8  ;;  %5537 = vmatprep.subr.bf16.mxu1 %v5611_v9  ;;  %v5630_v28 = vld [vmem:[%s5762_s28 + $0x60] sm:$0xff]   ;;  %v5631_v29 = vld [vmem:[%s5762_s28 + $0x68] sm:$0xff]   ;;  %v5632_v30 = vld [vmem:[%s5762_s28 + $0x70] sm:$0xff]  }
  0x16   : > { %v5633_v31 = vld [vmem:[%s5762_s28 + $0x78] sm:$0xff]  }
  0x18   : > { %5490 = vmatpush3.bf16.msra.mxu0 %v5610_v8  ;;  %5538 = vmatpush3.bf16.msra.mxu1 %v5611_v9 }
  0x19   : > { %5491 = vmatprep.subr.bf16.mxu0 %v5612_v10  ;;  %5539 = vmatprep.subr.bf16.mxu1 %v5613_v11 }
  0x1c   : > { %5492 = vmatpush3.bf16.msra.mxu0 %v5612_v10  ;;  %5540 = vmatpush3.bf16.msra.mxu1 %v5613_v11 }
  0x1d   : > { %5493 = vmatprep.subr.bf16.mxu0 %v5614_v12  ;;  %5541 = vmatprep.subr.bf16.mxu1 %v5615_v13 }
  0x20   : > { %5494 = vmatpush3.bf16.msra.mxu0 %v5614_v12  ;;  %5542 = vmatpush3.bf16.msra.mxu1 %v5615_v13 }
  0x21   : > { %5495 = vmatprep.subr.bf16.mxu0 %v5616_v15  ;;  %5543 = vmatprep.subr.bf16.mxu1 %v5617_v16 }
  0x24   : > { %5496 = vmatpush3.bf16.msra.mxu0 %v5616_v15  ;;  %5544 = vmatpush3.bf16.msra.mxu1 %v5617_v16 }
  0x27   : > { %5498 = vmatmul.mubr.bf16.vlgmr.msra.gmra.mrb[0].mxu0 %v5619_v17  ;;  %5546 = vmatmul.mubr.bf16.vlgmr.msra.gmra.mrb[0].mxu1 %v5619_v17 }
  0x28   : > { %5501 = vmatprep.mubr.bf16.mxu0 %v5620_v18  ;;  %5549 = vmatprep.mubr.bf16.mxu1 %v5620_v18 }
  0x2f   : > { %5502 = vmatmul.mubr.bf16.gmra.mrb[4].mxu0 %v5621_v19  ;;  %5550 = vmatmul.mubr.bf16.gmra.mrb[4].mxu1 %v5621_v19 }
  0x30   : > { %5505 = vmatprep.mubr.bf16.mxu0 %v5622_v20  ;;  %5553 = vmatprep.mubr.bf16.mxu1 %v5622_v20 }
  0x37   : > { %5506 = vmatmul.mubr.bf16.gmra.mrb[8].mxu0 %v5623_v21  ;;  %5554 = vmatmul.mubr.bf16.gmra.mrb[8].mxu1 %v5623_v21 }
  0x38   : > { %5509 = vmatprep.mubr.bf16.mxu0 %v5624_v22  ;;  %5557 = vmatprep.mubr.bf16.mxu1 %v5624_v22 }
  0x3f   : > { %5510 = vmatmul.mubr.bf16.gmra.mrb[12].mxu0 %v5625_v23  ;;  %5558 = vmatmul.mubr.bf16.gmra.mrb[12].mxu1 %v5625_v23 }
  0x40   : > { %5513 = vmatprep.mubr.bf16.mxu0 %v5626_v24  ;;  %5561 = vmatprep.mubr.bf16.mxu1 %v5626_v24 }
  0x47   : > { %5514 = vmatmul.mubr.bf16.gmra.mrb[16].mxu0 %v5627_v25  ;;  %5562 = vmatmul.mubr.bf16.gmra.mrb[16].mxu1 %v5627_v25 }
  0x48   : > { %5517 = vmatprep.mubr.bf16.mxu0 %v5628_v26  ;;  %5565 = vmatprep.mubr.bf16.mxu1 %v5628_v26 }
  0x4f   : > { %5518 = vmatmul.mubr.bf16.gmra.mrb[20].mxu0 %v5629_v27  ;;  %5566 = vmatmul.mubr.bf16.gmra.mrb[20].mxu1 %v5629_v27 }
  0x50   : > { %5521 = vmatprep.mubr.bf16.mxu0 %v5630_v28  ;;  %5569 = vmatprep.mubr.bf16.mxu1 %v5630_v28 }
  0x57   : > { %5522 = vmatmul.mubr.bf16.gmra.mrb[24].mxu0 %v5631_v29  ;;  %5570 = vmatmul.mubr.bf16.gmra.mrb[24].mxu1 %v5631_v29 }
  0x58   : > { %5525 = vmatprep.mubr.bf16.mxu0 %v5632_v30  ;;  %5573 = vmatprep.mubr.bf16.mxu1 %v5632_v30 }
  0x5f   : > { %5526 = vmatmul.mubr.bf16.gmra.mrb[28].mxu0 %v5633_v31  ;;  %5574 = vmatmul.mubr.bf16.gmra.mrb[28].mxu1 %v5633_v31 }
  0xfa   : > { %v5499_v40 = vpop.f32.mrb[0].mxu0  ;;  %v5547_v42 = vpop.f32.mrb[0].mxu1 }
  0xfb   : > { %v504_v41 = vadd.f32 %v5499_v40, %v5789_v37  ;;  %v495_v43 = vpop.f32.mrb[1].mxu0  ;;  %v2808_v44 = vadd.f32 %v5547_v42, %v5796_v39  ;;  %v2799_v46 = vpop.f32.mrb[1].mxu1 }
  0xfc   : > { %v5801_v45 = vadd.f32 %v5789_v37, %v495_v43  ;;  %v5500_v47 = vpop.f32.mrb[2].mxu0  ;;  %v5805_v50 = vadd.f32 %v5796_v39, %v2799_v46  ;;  %v5810_v52 = vpop.f32.mrb[2].mxu1 }
  0xfd   : > { %v688_v48 = vcombine.high %v504_v41, %v504_v41  ;;  %v695_v49 = vrot.slane %v504_v41, %v5791_v38  ;;  %v5808_v51 = vadd.f32 %v5500_v47, %v5789_v37  ;;  %v5812_v53 = vpop.f32.mrb[3].mxu0  ;;  %v2992_v54 = vcombine.high %v2808_v44, %v2808_v44  ;;  %v5821_v58 = vpop.f32.mrb[3].mxu1 }
  0xfe   : > { %v2999_v55 = vrot.slane %v2808_v44, %v5791_v38  ;;  %v654_v56 = vcombine.high %v5801_v45, %v5801_v45  ;;  %v5819_v57 = vrot.slane %v5801_v45, %v5791_v38  ;;  %v2958_v62 = vcombine.high %v5805_v50, %v5805_v50 }
  0xff   : > { %v702_v59 = vrot.slane %v688_v48, %v5791_v38  ;;  %v703_v60 = vcombine.high %v695_v49, %v695_v49  ;;  %v1383_v61 = vsel %vm1326_vm0, %v695_v49, -inf  ;;  %v3006_v0 = vrot.slane %v2992_v54, %v5791_v38 }
 0x100   : > { %v1384_v63 = vrot.slane %v1383_v61, 4  ;;  %v3007_v1 = vcombine.high %v2999_v55, %v2999_v55  ;;  %v3686_v2 = vsel %vm1326_vm0, %v2999_v55, -inf }
 0x101   : > { %v704_v3 = vcombine.high %v702_v59, %v702_v59  ;;  %v1390_v4 = vsel %vm1326_vm0, %v703_v60, -inf  ;;  %v1397_v5 = vsel %vm1326_vm0, %v702_v59, -inf  ;;  %v3687_v6 = vrot.slane %v3686_v2, 4 }
 0x102   : > { %v1385_v7 = vmax.f32 %v1383_v61, %v1384_v63  ;;  %v1391_v8 = vrot.slane %v1390_v4, 4  ;;  %v1398_v9 = vrot.slane %v1397_v5, 4  ;;  %v3008_v10 = vcombine.high %v3006_v0, %v3006_v0  ;;  %v5831_v11 = vpop.f32.mrb[4].mxu0  ;;  %v5836_v16 = vpop.f32.mrb[4].mxu1 }
 0x103   : > { %v1404_v12 = vsel %vm1326_vm0, %v704_v3, -inf  ;;  %v3688_v13 = vmax.f32 %v3686_v2, %v3687_v6  ;;  %v3693_v14 = vsel %vm1326_vm0, %v3007_v1, -inf  ;;  %v3700_v15 = vsel %vm1326_vm0, %v3006_v0, -inf  ;;  %v5838_v17 = vpop.f32.mrb[5].mxu0  ;;  %v5840_v22 = vpop.f32.mrb[5].mxu1 }
 0x104   : > { %v1386_v18 = vrot.slane %v1385_v7, 2  ;;  %v1392_v19 = vmax.f32 %v1390_v4, %v1391_v8  ;;  %v1399_v20 = vmax.f32 %v1397_v5, %v1398_v9  ;;  %v1405_v21 = vrot.slane %v1404_v12, 4  ;;  %v5842_v23 = vpop.f32.mrb[6].mxu0  ;;  %v5845_v28 = vpop.f32.mrb[6].mxu1 }
 0x105   : > { %v3689_v24 = vrot.slane %v3688_v13, 2  ;;  %v3694_v25 = vrot.slane %v3693_v14, 4  ;;  %v3701_v26 = vrot.slane %v3700_v15, 4  ;;  %v3707_v27 = vsel %vm1326_vm0, %v3008_v10, -inf  ;;  %v5847_v29 = vpop.f32.mrb[7].mxu0  ;;  %v5849_v34 = vpop.f32.mrb[7].mxu1 }
 0x106   : > { %v1387_v30 = vmax.f32 %v1385_v7, %v1386_v18  ;;  %v1393_v31 = vrot.slane %v1392_v19, 2  ;;  %v1400_v32 = vrot.slane %v1399_v20, 2  ;;  %v1406_v33 = vmax.f32 %v1404_v12, %v1405_v21 }
 0x107   : > { %v3690_v35 = vmax.f32 %v3688_v13, %v3689_v24  ;;  %v3695_v36 = vmax.f32 %v3693_v14, %v3694_v25  ;;  %v3702_v40 = vmax.f32 %v3700_v15, %v3701_v26  ;;  %v3708_v41 = vrot.slane %v3707_v27, 4 }
 0x108   : > { %v1388_v42 = vrot.slane %v1387_v30, 1  ;;  %v1394_v43 = vmax.f32 %v1392_v19, %v1393_v31  ;;  %v1401_v44 = vmax.f32 %v1399_v20, %v1400_v32  ;;  %v1407_v46 = vrot.slane %v1406_v33, 2 }
 0x109   : > { %v3691_v47 = vrot.slane %v3690_v35, 1  ;;  %v3696_v48 = vrot.slane %v3695_v36, 2  ;;  %v3703_v49 = vrot.slane %v3702_v40, 2  ;;  %v3709_v54 = vmax.f32 %v3707_v27, %v3708_v41 }
 0x10a   : > { %v5851_v55 = vmax.f32 %v1387_v30, %v1388_v42  ;;  %v1395_v59 = vrot.slane %v1394_v43, 1  ;;  %v1402_v60 = vrot.slane %v1401_v44, 1  ;;  %v1408_v61 = vmax.f32 %v1406_v33, %v1407_v46 }
 0x10b   : > { %v5853_v63 = vmax.f32 %v3690_v35, %v3691_v47  ;;  %v3697_v0 = vmax.f32 %v3695_v36, %v3696_v48  ;;  %v3704_v1 = vmax.f32 %v3702_v40, %v3703_v49  ;;  %v3710_v2 = vrot.slane %v3709_v54, 2  ;;  %v5887_v48 = vpop.f32.mrb[8].mxu0 }
 0x10c   : > { %v5855_v3 = vmax.f32 %v1394_v43, %v1395_v59  ;;  %v5857_v4 = vmax.f32 %v1401_v44, %v1402_v60  ;;  %v1409_v5 = vrot.slane %v1408_v61, 1  ;;  %v668_v6 = vrot.slane %v654_v56, %v5791_v38 }
 0x10d   : > { %v3698_v7 = vrot.slane %v3697_v0, 1  ;;  %v3705_v8 = vrot.slane %v3704_v1, 1  ;;  %v3711_v9 = vmax.f32 %v3709_v54, %v3710_v2  ;;  %v669_v10 = vcombine.high %v5819_v57, %v5819_v57 }
 0x10e   : > { %v5865_v12 = vmax.f32 %v1408_v61, %v1409_v5  ;;  %v670_v13 = vcombine.high %v668_v6, %v668_v6  ;;  %v1327_v14 = vsel %vm1326_vm0, %v5819_v57, -inf  ;;  %v1341_v15 = vsel %vm1326_vm0, %v668_v6, -inf }
 0x10f   : > { %v5870_v18 = vmax.f32 %v3697_v0, %v3698_v7  ;;  %v5872_v19 = vmax.f32 %v3704_v1, %v3705_v8  ;;  %v3712_v45 = vrot.slane %v3711_v9, 1  ;;  %v1328_v56 = vrot.slane %v1327_v14, 4 }
 0x110   : > { %v1334_v20 = vsel %vm1326_vm0, %v669_v10, -inf  ;;  %v1342_v21 = vrot.slane %v1341_v15, 4  ;;  %v1348_v24 = vsel %vm1326_vm0, %v670_v13, -inf  ;;  %v2965_v25 = vrot.slane %v5805_v50, %v5791_v38 }
 0x111   : > { %v5878_v26 = vmax.f32 %v3711_v9, %v3712_v45  ;;  %v1329_v27 = vmax.f32 %v1327_v14, %v1328_v56  ;;  %v1335_v57 = vrot.slane %v1334_v20, 4  ;;  %v1349_v30 = vrot.slane %v1348_v24, 4 }
 0x112   : > { %v1343_v31 = vmax.f32 %v1341_v15, %v1342_v21  ;;  %v2972_v32 = vrot.slane %v2958_v62, %v5791_v38  ;;  %v2973_v33 = vcombine.high %v2965_v25, %v2965_v25  ;;  %v3630_v35 = vsel %vm1326_vm0, %v2965_v25, -inf }
 0x113   : > { %v1330_v36 = vrot.slane %v1329_v27, 2  ;;  %v1336_v40 = vmax.f32 %v1334_v20, %v1335_v57  ;;  %v1350_v41 = vmax.f32 %v1348_v24, %v1349_v30  ;;  %v3631_v42 = vrot.slane %v3630_v35, 4 }
 0x114   : > { %v1344_v43 = vrot.slane %v1343_v31, 2  ;;  %v2974_v44 = vcombine.high %v2972_v32, %v2972_v32  ;;  %v3637_v46 = vsel %vm1326_vm0, %v2973_v33, -inf  ;;  %v3644_v47 = vsel %vm1326_vm0, %v2972_v32, -inf }
 0x115   : > { %v1331_v49 = vmax.f32 %v1329_v27, %v1330_v36  ;;  %v1337_v54 = vrot.slane %v1336_v40, 2  ;;  %v1351_v59 = vrot.slane %v1350_v41, 2  ;;  %v3632_v50 = vmax.f32 %v3630_v35, %v3631_v42  ;;  %v5892_v36 = vpop.f32.mrb[8].mxu1 }
 0x116   : > { %v1345_v62 = vmax.f32 %v1343_v31, %v1344_v43  ;;  %v3638_v60 = vrot.slane %v3637_v46, 4  ;;  %v3645_v61 = vrot.slane %v3644_v47, 4  ;;  %v3651_v0 = vsel %vm1326_vm0, %v2974_v44, -inf }
 0x117   : > { %v1332_v1 = vrot.slane %v1331_v49, 1  ;;  %v1338_v2 = vmax.f32 %v1336_v40, %v1337_v54  ;;  %v1352_v5 = vmax.f32 %v1350_v41, %v1351_v59  ;;  %v3633_v6 = vrot.slane %v3632_v50, 2 }
 0x118   : > { %v1346_v7 = vrot.slane %v1345_v62, 1  ;;  %v3639_v8 = vmax.f32 %v3637_v46, %v3638_v60  ;;  %v3646_v9 = vmax.f32 %v3644_v47, %v3645_v61  ;;  %v3652_v10 = vrot.slane %v3651_v0, 4 }
 0x119   : > { %v1333_v13 = vmax.f32 %v1331_v49, %v1332_v1  ;;  %v1339_v14 = vrot.slane %v1338_v2, 1  ;;  %v1353_v15 = vrot.slane %v1352_v5, 1  ;;  %v3634_v45 = vmax.f32 %v3632_v50, %v3633_v6 }
 0x11a   : > { %v1347_v56 = vmax.f32 %v1345_v62, %v1346_v7  ;;  %v3640_v20 = vrot.slane %v3639_v8, 2  ;;  %v3647_v21 = vrot.slane %v3646_v9, 2  ;;  %v3653_v24 = vmax.f32 %v3651_v0, %v3652_v10 }
 0x11b   : > { %v1340_v25 = vmax.f32 %v1338_v2, %v1339_v14  ;;  %v1354_v27 = vmax.f32 %v1352_v5, %v1353_v15  ;;  %v2223_v57 = vmax.f32 %v1333_v13, %v5851_v55  ;;  %v3635_v30 = vrot.slane %v3634_v45, 1 }
 0x11c   : > { %v2225_v31 = vmax.f32 %v1347_v56, %v5857_v4  ;;  %v3641_v32 = vmax.f32 %v3639_v8, %v3640_v20  ;;  %v3648_v33 = vmax.f32 %v3646_v9, %v3647_v21  ;;  %v3654_v35 = vrot.slane %v3653_v24, 2 }
 0x11d   : > { %v2224_v40 = vmax.f32 %v1340_v25, %v5855_v3  ;;  %v2226_v41 = vmax.f32 %v1354_v27, %v5865_v12  ;;  %v5305_v42 = vpack.c.bf16 %v2223_v57, %v2223_v57  ;;  %v3636_v43 = vmax.f32 %v3634_v45, %v3635_v30 }
 0x11e   : > { %v5307_v44 = vpack.c.bf16 %v2225_v31, %v2225_v31  ;;  %v3642_v46 = vrot.slane %v3641_v32, 1  ;;  %v3649_v47 = vrot.slane %v3648_v33, 1  ;;  %v3655_v49 = vmax.f32 %v3653_v24, %v3654_v35 }
 0x11f   : > { %v5306_v54 = vpack.c.bf16 %v2224_v40, %v2224_v40  ;;  %v5308_v55 = vpack.c.bf16 %v2226_v41, %v2226_v41  ;;  %v2543_v59 = vunpack.c.l.b16 %v5305_v42  ;;  %v4526_v4 = vmax.f32 %v3636_v43, %v5853_v63  ;;  %v5924_v43 = vpop.f32.mrb[9].mxu0 }
 0x120   : > { %v2545_v50 = vunpack.c.l.b16 %v5307_v44  ;;  %v3643_v62 = vmax.f32 %v3641_v32, %v3642_v46  ;;  %v3650_v60 = vmax.f32 %v3648_v33, %v3649_v47  ;;  %v3656_v61 = vrot.slane %v3655_v49, 1 }
 0x121   : > { %v2544_v0 = vunpack.c.l.b16 %v5306_v54  ;;  %v5897_v1 = vunpack.c.l.b16 %v5308_v55  ;;  %v5369_v3 = vpack.c.bf16 %v4526_v4, %v4526_v4  ;;  %v705_v12 = vcombine.high %v5808_v51, %v5808_v51 }
 0x122   : > { %v3657_v2 = vmax.f32 %v3655_v49, %v3656_v61  ;;  %v4527_v5 = vmax.f32 %v3643_v62, %v5870_v18  ;;  %v4528_v6 = vmax.f32 %v3650_v60, %v5872_v19  ;;  %v712_v7 = vrot.slane %v5808_v51, %v5791_v38 }
 0x123   : > { %v2608_v63 = vsel %vm2607_vm1, %v2544_v0, %v2543_v59  ;;  %v4846_v8 = vunpack.c.l.b16 %v5369_v3  ;;  %v719_v9 = vrot.slane %v705_v12, %v5791_v38  ;;  %v2811_v10 = vadd.f32 %v5810_v52, %v5796_v39 }
 0x124   : > { %v5910_v13 = vsel %vm2609_vm2, %v2545_v50, %v2608_v63  ;;  %v4529_v14 = vmax.f32 %v3657_v2, %v5878_v26  ;;  %v5370_v15 = vpack.c.bf16 %v4527_v5, %v4527_v5  ;;  %v5371_v18 = vpack.c.bf16 %v4528_v6, %v4528_v6  ;;  %v5932_v5 = vpop.f32.mrb[9].mxu1 }
 0x125   : > { %v720_v45 = vcombine.high %v712_v7, %v712_v7  ;;  %v721_v19 = vcombine.high %v719_v9, %v719_v9  ;;  %v1411_v56 = vsel %vm1326_vm0, %v712_v7, -inf  ;;  %v1425_v51 = vsel %vm1326_vm0, %v719_v9, -inf }
 0x126   : > { %v5372_v20 = vpack.c.bf16 %v4529_v14, %v4529_v14  ;;  %v4847_v21 = vunpack.c.l.b16 %v5370_v15  ;;  %v4848_v24 = vunpack.c.l.b16 %v5371_v18  ;;  %v1412_v25 = vrot.slane %v1411_v56, 4 }
 0x127   : > { %v1418_v27 = vsel %vm1326_vm0, %v720_v45, -inf  ;;  %v1426_v52 = vrot.slane %v1425_v51, 4  ;;  %v1432_v57 = vsel %vm1326_vm0, %v721_v19, -inf  ;;  %v3009_v30 = vcombine.high %v2811_v10, %v2811_v10 }
 0x128   : > { %v5917_v31 = vunpack.c.l.b16 %v5372_v20  ;;  %v4910_v26 = vsel %vm2607_vm1, %v4847_v21, %v4846_v8  ;;  %v1413_v32 = vmax.f32 %v1411_v56, %v1412_v25  ;;  %v1419_v33 = vrot.slane %v1418_v27, 4 }
 0x129   : > { %v5921_v35 = vsel %vm2609_vm2, %v4848_v24, %v4910_v26  ;;  %v1427_v40 = vmax.f32 %v1425_v51, %v1426_v52  ;;  %v1433_v41 = vrot.slane %v1432_v57, 4  ;;  %v3016_v42 = vrot.slane %v2811_v10, %v5791_v38 }
 0x12a   : > { %v1414_v44 = vrot.slane %v1413_v32, 2  ;;  %v1420_v46 = vmax.f32 %v1418_v27, %v1419_v33  ;;  %v3023_v47 = vrot.slane %v3009_v30, %v5791_v38  ;;  %v499_v49 = vadd.f32 %v5789_v37, %v5812_v53 }
 0x12b   : > { %v1428_v54 = vrot.slane %v1427_v40, 2  ;;  %v1434_v55 = vmax.f32 %v1432_v57, %v1433_v41  ;;  %v3024_v59 = vcombine.high %v3016_v42, %v3016_v42  ;;  %v3714_v4 = vsel %vm1326_vm0, %v3016_v42, -inf }
 0x12c   : > { %v1415_v50 = vmax.f32 %v1413_v32, %v1414_v44  ;;  %v1421_v62 = vrot.slane %v1420_v46, 2  ;;  %v3025_v60 = vcombine.high %v3023_v47, %v3023_v47  ;;  %v3715_v61 = vrot.slane %v3714_v4, 4 }
 0x12d   : > { %v1429_v0 = vmax.f32 %v1427_v40, %v1428_v54  ;;  %v1435_v3 = vrot.slane %v1434_v55, 2  ;;  %v3721_v12 = vsel %vm1326_vm0, %v3024_v59, -inf  ;;  %v3728_v2 = vsel %vm1326_vm0, %v3023_v47, -inf }
 0x12e   : > { %v1416_v6 = vrot.slane %v1415_v50, 1  ;;  %v1422_v7 = vmax.f32 %v1420_v46, %v1421_v62  ;;  %v3716_v53 = vmax.f32 %v3714_v4, %v3715_v61  ;;  %v3722_v63 = vrot.slane %v3721_v12, 4 }
 0x12f   : > { %v1430_v8 = vrot.slane %v1429_v0, 1  ;;  %v1436_v9 = vmax.f32 %v1434_v55, %v1435_v3  ;;  %v3729_v10 = vrot.slane %v3728_v2, 4  ;;  %v3735_v14 = vsel %vm1326_vm0, %v3025_v60, -inf }
 0x130   : > { %v5935_v15 = vmax.f32 %v1415_v50, %v1416_v6  ;;  %v1423_v18 = vrot.slane %v1422_v7, 1  ;;  %v3717_v45 = vrot.slane %v3716_v53, 2  ;;  %v3723_v19 = vmax.f32 %v3721_v12, %v3722_v63 }
 0x131   : > { %v5937_v56 = vmax.f32 %v1429_v0, %v1430_v8  ;;  %v1437_v51 = vrot.slane %v1436_v9, 1  ;;  %v3730_v20 = vmax.f32 %v3728_v2, %v3729_v10  ;;  %v3736_v21 = vrot.slane %v3735_v14, 4 }
 0x132   : > { %v5939_v24 = vmax.f32 %v1422_v7, %v1423_v18  ;;  %v3718_v25 = vmax.f32 %v3716_v53, %v3717_v45  ;;  %v3724_v27 = vrot.slane %v3723_v19, 2  ;;  %v671_v52 = vcombine.high %v499_v49, %v499_v49 }
 0x133   : > { %v5941_v57 = vmax.f32 %v1436_v9, %v1437_v51  ;;  %v3731_v30 = vrot.slane %v3730_v20, 2  ;;  %v3737_v26 = vmax.f32 %v3735_v14, %v3736_v21  ;;  %v678_v32 = vrot.slane %v499_v49, %v5791_v38 }
 0x134   : > { %v3719_v33 = vrot.slane %v3718_v25, 1  ;;  %v3725_v40 = vmax.f32 %v3723_v19, %v3724_v27  ;;  %v685_v41 = vrot.slane %v671_v52, %v5791_v38  ;;  %v5948_v42 = vsel %vm2611_vm3, %v5897_v1, %v5910_v13 }
 0x135   : > { %v3732_v44 = vmax.f32 %v3730_v20, %v3731_v30  ;;  %v3738_v46 = vrot.slane %v3737_v26, 2  ;;  %v686_v47 = vcombine.high %v678_v32, %v678_v32  ;;  %v1355_v54 = vsel %vm1326_vm0, %v678_v32, -inf }
 0x136   : > { %v5951_v55 = vmax.f32 %v3718_v25, %v3719_v33  ;;  %v3726_v59 = vrot.slane %v3725_v40, 1  ;;  %v687_v4 = vcombine.high %v685_v41, %v685_v41  ;;  %v1356_v50 = vrot.slane %v1355_v54, 4  ;;  %v5970_v25 = vpop.f32.mrb[10].mxu0 }
 0x137   : > { %v3733_v49 = vrot.slane %v3732_v44, 1  ;;  %v3739_v62 = vmax.f32 %v3737_v26, %v3738_v46  ;;  %v1362_v60 = vsel %vm1326_vm0, %v686_v47, -inf  ;;  %v1369_v61 = vsel %vm1326_vm0, %v685_v41, -inf }
 0x138   : > { %v5955_v0 = vmax.f32 %v3725_v40, %v3726_v59  ;;  %v1357_v1 = vmax.f32 %v1355_v54, %v1356_v50  ;;  %v1363_v13 = vrot.slane %v1362_v60, 4  ;;  %v1370_v3 = vrot.slane %v1369_v61, 4 }
 0x139   : > { %v5957_v12 = vmax.f32 %v3732_v44, %v3733_v49  ;;  %v3740_v2 = vrot.slane %v3739_v62, 1  ;;  %v1376_v6 = vsel %vm1326_vm0, %v687_v4, -inf  ;;  %v2803_v7 = vadd.f32 %v5796_v39, %v5821_v58 }
 0x13a   : > { %v1358_v53 = vrot.slane %v1357_v1, 2  ;;  %v1364_v63 = vmax.f32 %v1362_v60, %v1363_v13  ;;  %v1371_v8 = vmax.f32 %v1369_v61, %v1370_v3  ;;  %v1377_v9 = vrot.slane %v1376_v6, 4 }
 0x13b   : > { %v5962_v10 = vmax.f32 %v3739_v62, %v3740_v2  ;;  %v2975_v14 = vcombine.high %v2803_v7, %v2803_v7  ;;  %v2982_v18 = vrot.slane %v2803_v7, %v5791_v38  ;;  %v5968_v45 = vsel %vm2611_vm3, %v5917_v31, %v5921_v35 }
 0x13c   : > { %v1359_v19 = vmax.f32 %v1357_v1, %v1358_v53  ;;  %v1365_v51 = vrot.slane %v1364_v63, 2  ;;  %v1372_v20 = vrot.slane %v1371_v8, 2  ;;  %v1378_v21 = vmax.f32 %v1376_v6, %v1377_v9 }
 0x13d   : > { %v2989_v58 = vrot.slane %v2975_v14, %v5791_v38  ;;  %v2990_v27 = vcombine.high %v2982_v18, %v2982_v18  ;;  %v3658_v52 = vsel %vm1326_vm0, %v2982_v18, -inf  ;;  %v5976_v30 = vadd.f32 %v5831_v11, %v5789_v37 }
 0x13e   : > { %v1360_v26 = vrot.slane %v1359_v19, 1  ;;  %v1366_v32 = vmax.f32 %v1364_v63, %v1365_v51  ;;  %v1373_v31 = vmax.f32 %v1371_v8, %v1372_v20  ;;  %v1379_v35 = vrot.slane %v1378_v21, 2  ;;  %v5984_v51 = vpop.f32.mrb[10].mxu1 }
 0x13f   : > { %v2991_v33 = vcombine.high %v2989_v58, %v2989_v58  ;;  %v3659_v40 = vrot.slane %v3658_v52, 4  ;;  %v3665_v41 = vsel %vm1326_vm0, %v2990_v27, -inf  ;;  %v3672_v44 = vsel %vm1326_vm0, %v2989_v58, -inf }
 0x140   : > { %v1361_v46 = vmax.f32 %v1359_v19, %v1360_v26  ;;  %v1367_v47 = vrot.slane %v1366_v32, 1  ;;  %v1374_v54 = vrot.slane %v1373_v31, 1  ;;  %v1380_v59 = vmax.f32 %v1378_v21, %v1379_v35 }
 0x141   : > { %v3660_v4 = vmax.f32 %v3658_v52, %v3659_v40  ;;  %v3666_v11 = vrot.slane %v3665_v41, 4  ;;  %v3673_v50 = vrot.slane %v3672_v44, 4  ;;  %v3679_v49 = vsel %vm1326_vm0, %v2991_v33, -inf }
 0x142   : > { %v1368_v62 = vmax.f32 %v1366_v32, %v1367_v47  ;;  %v1375_v60 = vmax.f32 %v1373_v31, %v1374_v54  ;;  %v1381_v61 = vrot.slane %v1380_v59, 1  ;;  %v2227_v1 = vmax.f32 %v1361_v46, %v5935_v15 }
 0x143   : > { %v3661_v13 = vrot.slane %v3660_v4, 2  ;;  %v3667_v3 = vmax.f32 %v3665_v41, %v3666_v11  ;;  %v3674_v2 = vmax.f32 %v3672_v44, %v3673_v50  ;;  %v3680_v6 = vrot.slane %v3679_v49, 4 }
 0x144   : > { %v1382_v7 = vmax.f32 %v1380_v59, %v1381_v61  ;;  %v2228_v53 = vmax.f32 %v1368_v62, %v5939_v24  ;;  %v2229_v63 = vmax.f32 %v1375_v60, %v5937_v56  ;;  %v5309_v8 = vpack.c.bf16 %v2227_v1, %v2227_v1 }
 0x145   : > { %v3662_v9 = vmax.f32 %v3660_v4, %v3661_v13  ;;  %v3668_v14 = vrot.slane %v3667_v3, 2  ;;  %v3675_v18 = vrot.slane %v3674_v2, 2  ;;  %v3681_v19 = vmax.f32 %v3679_v49, %v3680_v6 }
 0x146   : > { %v2230_v20 = vmax.f32 %v1382_v7, %v5941_v57  ;;  %v5310_v15 = vpack.c.bf16 %v2228_v53, %v2228_v53  ;;  %v5311_v21 = vpack.c.bf16 %v2229_v63, %v2229_v63  ;;  %v2547_v58 = vunpack.c.l.b16 %v5309_v8 }
 0x147   : > { %v3663_v27 = vrot.slane %v3662_v9, 1  ;;  %v3669_v52 = vmax.f32 %v3667_v3, %v3668_v14  ;;  %v3676_v26 = vmax.f32 %v3674_v2, %v3675_v18  ;;  %v3682_v32 = vrot.slane %v3681_v19, 2 }
 0x148   : > { %v5312_v24 = vpack.c.bf16 %v2230_v20, %v2230_v20  ;;  %v2548_v31 = vunpack.c.l.b16 %v5310_v15  ;;  %v2549_v56 = vunpack.c.l.b16 %v5311_v21  ;;  %v2614_v35 = vsel %vm2613_vm4, %v2547_v58, %v5948_v42 }
 0x149   : > { %v3664_v33 = vmax.f32 %v3662_v9, %v3663_v27  ;;  %v3670_v40 = vrot.slane %v3669_v52, 1  ;;  %v3677_v41 = vrot.slane %v3676_v26, 1  ;;  %v3683_v44 = vmax.f32 %v3681_v19, %v3682_v32 }
 0x14a   : > { %v2550_v57 = vunpack.c.l.b16 %v5312_v24  ;;  %v2616_v46 = vsel %vm2615_vm5, %v2548_v31, %v2614_v35  ;;  %v756_v47 = vcombine.high %v5976_v30, %v5976_v30  ;;  %v763_v54 = vrot.slane %v5976_v30, %v5791_v38 }
 0x14b   : > { %v2618_v59 = vsel %vm2617_vm6, %v2549_v56, %v2616_v46  ;;  %v3671_v4 = vmax.f32 %v3669_v52, %v3670_v40  ;;  %v3678_v11 = vmax.f32 %v3676_v26, %v3677_v41  ;;  %v3684_v50 = vrot.slane %v3683_v44, 1  ;;  %v6016_v52 = vpop.f32.mrb[11].mxu0 }
 0x14c   : > { %v2620_v42 = vsel %vm2619_vm7, %v2550_v57, %v2618_v59  ;;  %v4530_v49 = vmax.f32 %v3664_v33, %v5951_v55  ;;  %v770_v62 = vrot.slane %v756_v47, %v5791_v38  ;;  %v771_v60 = vcombine.high %v763_v54, %v763_v54 }
 0x14d   : > { %v2670_v30 = vpack.c.b16 %v2620_v42, %v2620_v42  ;;  %v3685_v61 = vmax.f32 %v3683_v44, %v3684_v50  ;;  %v4531_v1 = vmax.f32 %v3671_v4, %v5955_v0  ;;  %v4532_v13 = vmax.f32 %v3678_v11, %v5957_v12 }
 0x14e   : > { %v5373_v3 = vpack.c.bf16 %v4530_v49, %v4530_v49  ;;  %v772_v2 = vcombine.high %v770_v62, %v770_v62  ;;  %v1495_v6 = vsel %vm1326_vm0, %v763_v54, -inf  ;;  %v1502_v7 = vsel %vm1326_vm0, %v771_v60, -inf }
 0x14f   : > { %2686 = vst [vmem:[%s6001_s14] sm:$0xf] %v2670_v30  ;;  %v4533_v53 = vmax.f32 %v3685_v61, %v5962_v10  ;;  %v5374_v63 = vpack.c.bf16 %v4531_v1, %v4531_v1  ;;  %v5375_v55 = vpack.c.bf16 %v4532_v13, %v4532_v13  ;;  %v1496_v8 = vrot.slane %v1495_v6, 4  ;;  %v6034_v30 = vpop.f32.mrb[11].mxu1 }
 0x150   : > { %v4850_v9 = vunpack.c.l.b16 %v5373_v3  ;;  %v1503_v14 = vrot.slane %v1502_v7, 4  ;;  %v1509_v18 = vsel %vm1326_vm0, %v770_v62, -inf  ;;  %v1516_v0 = vsel %vm1326_vm0, %v772_v2, -inf }
 0x151   : > { %v5376_v19 = vpack.c.bf16 %v4533_v53, %v4533_v53  ;;  %v4851_v12 = vunpack.c.l.b16 %v5374_v63  ;;  %v4852_v20 = vunpack.c.l.b16 %v5375_v55  ;;  %v1497_v15 = vmax.f32 %v1495_v6, %v1496_v8 }
 0x152   : > { %v4913_v21 = vsel %vm2613_vm4, %v4850_v9, %v5968_v45  ;;  %v1504_v58 = vmax.f32 %v1502_v7, %v1503_v14  ;;  %v1510_v27 = vrot.slane %v1509_v18, 4  ;;  %v1517_v10 = vrot.slane %v1516_v0, 4 }
 0x153   : > { %v4853_v26 = vunpack.c.l.b16 %v5376_v19  ;;  %v4914_v32 = vsel %vm2615_vm5, %v4851_v12, %v4913_v21  ;;  %v1498_v24 = vrot.slane %v1497_v15, 2  ;;  %v2824_v31 = vadd.f32 %v5836_v16, %v5796_v39 }
 0x154   : > { %v4915_v56 = vsel %vm2617_vm6, %v4852_v20, %v4914_v32  ;;  %v1505_v35 = vrot.slane %v1504_v58, 2  ;;  %v1511_v33 = vmax.f32 %v1509_v18, %v1510_v27  ;;  %v1518_v40 = vmax.f32 %v1516_v0, %v1517_v10 }
 0x155   : > { %v4916_v45 = vsel %vm2619_vm7, %v4853_v26, %v4915_v56  ;;  %v1499_v41 = vmax.f32 %v1497_v15, %v1498_v24  ;;  %v3060_v44 = vcombine.high %v2824_v31, %v2824_v31  ;;  %v3067_v57 = vrot.slane %v2824_v31, %v5791_v38 }
 0x156   : > { %v4966_v46 = vpack.c.b16 %v4916_v45, %v4916_v45  ;;  %v1506_v16 = vmax.f32 %v1504_v58, %v1505_v35  ;;  %v1512_v47 = vrot.slane %v1511_v33, 2  ;;  %v1519_v54 = vrot.slane %v1518_v40, 2 }
 0x157   : > { %v1500_v59 = vrot.slane %v1499_v41, 1  ;;  %v3074_v4 = vrot.slane %v3060_v44, %v5791_v38  ;;  %v3075_v11 = vcombine.high %v3067_v57, %v3067_v57  ;;  %v3798_v50 = vsel %vm1326_vm0, %v3067_v57, -inf }
 0x158   : > { %4982 = vst [vmem:[%s6027_s21] sm:$0xf] %v4966_v46  ;;  %v1507_v42 = vrot.slane %v1506_v16, 1  ;;  %v1513_v49 = vmax.f32 %v1511_v33, %v1512_v47  ;;  %v1520_v62 = vmax.f32 %v1518_v40, %v1519_v54  ;;  %v3799_v60 = vrot.slane %v3798_v50, 4 }
 0x159   : > { %v6036_v61 = vmax.f32 %v1499_v41, %v1500_v59  ;;  %v3076_v1 = vcombine.high %v3074_v4, %v3074_v4  ;;  %v3805_v13 = vsel %vm1326_vm0, %v3075_v11, -inf  ;;  %v3812_v3 = vsel %vm1326_vm0, %v3074_v4, -inf }
 0x15a   : > { %v6040_v2 = vmax.f32 %v1506_v16, %v1507_v42  ;;  %v1514_v6 = vrot.slane %v1513_v49, 1  ;;  %v1521_v7 = vrot.slane %v1520_v62, 1  ;;  %v3800_v53 = vmax.f32 %v3798_v50, %v3799_v60 }
 0x15b   : > { %v3806_v63 = vrot.slane %v3805_v13, 4  ;;  %v3813_v55 = vrot.slane %v3812_v3, 4  ;;  %v3819_v8 = vsel %vm1326_vm0, %v3076_v1, -inf  ;;  %v512_v9 = vadd.f32 %v5789_v37, %v5838_v17 }
 0x15c   : > { %v6045_v14 = vmax.f32 %v1513_v49, %v1514_v6  ;;  %v6047_v18 = vmax.f32 %v1520_v62, %v1521_v7  ;;  %v3801_v0 = vrot.slane %v3800_v53, 2  ;;  %v3820_v19 = vrot.slane %v3819_v8, 4 }
 0x15d   : > { %v3807_v12 = vmax.f32 %v3805_v13, %v3806_v63  ;;  %v3814_v20 = vmax.f32 %v3812_v3, %v3813_v55  ;;  %v722_v15 = vcombine.high %v512_v9, %v512_v9  ;;  %v729_v21 = vrot.slane %v512_v9, %v5791_v38 }
 0x15e   : > { %v3802_v58 = vmax.f32 %v3800_v53, %v3801_v0  ;;  %v3821_v27 = vmax.f32 %v3819_v8, %v3820_v19  ;;  %v2816_v10 = vadd.f32 %v5796_v39, %v5840_v22  ;;  %v6054_v26 = vadd.f32 %v5842_v23, %v5789_v37 }
 0x15f   : > { %v3808_v17 = vrot.slane %v3807_v12, 2  ;;  %v3815_v32 = vrot.slane %v3814_v20, 2  ;;  %v736_v24 = vrot.slane %v722_v15, %v5791_v38  ;;  %v737_v31 = vcombine.high %v729_v21, %v729_v21 }
 0x160   : > { %v3803_v56 = vrot.slane %v3802_v58, 1  ;;  %v3822_v35 = vrot.slane %v3821_v27, 2  ;;  %v1439_v33 = vsel %vm1326_vm0, %v729_v21, -inf  ;;  %v3026_v40 = vcombine.high %v2816_v10, %v2816_v10 }
 0x161   : > { %v3809_v45 = vmax.f32 %v3807_v12, %v3808_v17  ;;  %v3816_v41 = vmax.f32 %v3814_v20, %v3815_v32  ;;  %v738_v44 = vcombine.high %v736_v24, %v736_v24  ;;  %v1440_v57 = vrot.slane %v1439_v33, 4  ;;  %v6072_v12 = vpop.f32.mrb[12].mxu0 }
 0x162   : > { %v6058_v46 = vmax.f32 %v3802_v58, %v3803_v56  ;;  %v3823_v39 = vmax.f32 %v3821_v27, %v3822_v35  ;;  %v1446_v37 = vsel %vm1326_vm0, %v737_v31, -inf  ;;  %v1453_v22 = vsel %vm1326_vm0, %v736_v24, -inf }
 0x163   : > { %v3810_v23 = vrot.slane %v3809_v45, 1  ;;  %v3817_v16 = vrot.slane %v3816_v41, 1  ;;  %v1441_v47 = vmax.f32 %v1439_v33, %v1440_v57  ;;  %v1447_v54 = vrot.slane %v1446_v37, 4 }
 0x164   : > { %v3824_v59 = vrot.slane %v3823_v39, 1  ;;  %v1454_v4 = vrot.slane %v1453_v22, 4  ;;  %v1460_v11 = vsel %vm1326_vm0, %v738_v44, -inf  ;;  %v3033_v50 = vrot.slane %v2816_v10, %v5791_v38 }
 0x165   : > { %v6064_v42 = vmax.f32 %v3809_v45, %v3810_v23  ;;  %v6066_v49 = vmax.f32 %v3816_v41, %v3817_v16  ;;  %v1442_v62 = vrot.slane %v1441_v47, 2  ;;  %v1448_v60 = vmax.f32 %v1446_v37, %v1447_v54 }
 0x166   : > { %v6068_v1 = vmax.f32 %v3823_v39, %v3824_v59  ;;  %v1455_v13 = vmax.f32 %v1453_v22, %v1454_v4  ;;  %v1461_v3 = vrot.slane %v1460_v11, 4  ;;  %v3040_v6 = vrot.slane %v3026_v40, %v5791_v38 }
 0x167   : > { %v1443_v7 = vmax.f32 %v1441_v47, %v1442_v62  ;;  %v1449_v53 = vrot.slane %v1448_v60, 2  ;;  %v3041_v63 = vcombine.high %v3033_v50, %v3033_v50  ;;  %v3742_v55 = vsel %vm1326_vm0, %v3033_v50, -inf }
 0x168   : > { %v1456_v8 = vrot.slane %v1455_v13, 2  ;;  %v1462_v9 = vmax.f32 %v1460_v11, %v1461_v3  ;;  %v3042_v0 = vcombine.high %v3040_v6, %v3040_v6  ;;  %v3743_v19 = vrot.slane %v3742_v55, 4 }
 0x169   : > { %v1444_v20 = vrot.slane %v1443_v7, 1  ;;  %v1450_v15 = vmax.f32 %v1448_v60, %v1449_v53  ;;  %v3749_v21 = vsel %vm1326_vm0, %v3041_v63, -inf  ;;  %v3756_v58 = vsel %vm1326_vm0, %v3040_v6, -inf  ;;  %v6080_v53 = vpop.f32.mrb[12].mxu1 }
 0x16a   : > { %v1457_v27 = vmax.f32 %v1455_v13, %v1456_v8  ;;  %v1463_v10 = vrot.slane %v1462_v9, 2  ;;  %v3744_v17 = vmax.f32 %v3742_v55, %v3743_v19  ;;  %v3750_v32 = vrot.slane %v3749_v21, 4 }
 0x16b   : > { %v1445_v24 = vmax.f32 %v1443_v7, %v1444_v20  ;;  %v1451_v31 = vrot.slane %v1450_v15, 1  ;;  %v3757_v56 = vrot.slane %v3756_v58, 4  ;;  %v3763_v35 = vsel %vm1326_vm0, %v3042_v0, -inf }
 0x16c   : > { %v1458_v33 = vrot.slane %v1457_v27, 1  ;;  %v1464_v40 = vmax.f32 %v1462_v9, %v1463_v10  ;;  %v3745_v45 = vrot.slane %v3744_v17, 2  ;;  %v3751_v41 = vmax.f32 %v3749_v21, %v3750_v32 }
 0x16d   : > { %v1452_v44 = vmax.f32 %v1450_v15, %v1451_v31  ;;  %v2231_v57 = vmax.f32 %v1445_v24, %v6036_v61  ;;  %v3758_v39 = vmax.f32 %v3756_v58, %v3757_v56  ;;  %v3764_v37 = vrot.slane %v3763_v35, 4 }
 0x16e   : > { %v1459_v22 = vmax.f32 %v1457_v27, %v1458_v33  ;;  %v1465_v23 = vrot.slane %v1464_v40, 1  ;;  %v3746_v16 = vmax.f32 %v3744_v17, %v3745_v45  ;;  %v3752_v47 = vrot.slane %v3751_v41, 2 }
 0x16f   : > { %v2232_v54 = vmax.f32 %v1452_v44, %v6040_v2  ;;  %v5313_v59 = vpack.c.bf16 %v2231_v57, %v2231_v57  ;;  %v3759_v4 = vrot.slane %v3758_v39, 2  ;;  %v3765_v11 = vmax.f32 %v3763_v35, %v3764_v37 }
 0x170   : > { %v1466_v50 = vmax.f32 %v1464_v40, %v1465_v23  ;;  %v2233_v62 = vmax.f32 %v1459_v22, %v6045_v14  ;;  %v3747_v60 = vrot.slane %v3746_v16, 1  ;;  %v3753_v13 = vmax.f32 %v3751_v41, %v3752_v47 }
 0x171   : > { %v5314_v3 = vpack.c.bf16 %v2232_v54, %v2232_v54  ;;  %v2551_v6 = vunpack.c.l.b16 %v5313_v59  ;;  %v3760_v7 = vmax.f32 %v3758_v39, %v3759_v4  ;;  %v3766_v61 = vrot.slane %v3765_v11, 2 }
 0x172   : > { %v2234_v63 = vmax.f32 %v1466_v50, %v6047_v18  ;;  %v5315_v55 = vpack.c.bf16 %v2233_v62, %v2233_v62  ;;  %v3748_v8 = vmax.f32 %v3746_v16, %v3747_v60  ;;  %v3754_v9 = vrot.slane %v3753_v13, 1 }
 0x173   : > { %v2552_v2 = vunpack.c.l.b16 %v5314_v3  ;;  %v3761_v0 = vrot.slane %v3760_v7, 1  ;;  %v3767_v19 = vmax.f32 %v3765_v11, %v3766_v61  ;;  %v773_v20 = vcombine.high %v6054_v26, %v6054_v26 }
 0x174   : > { %v5316_v14 = vpack.c.bf16 %v2234_v63, %v2234_v63  ;;  %v2553_v15 = vunpack.c.l.b16 %v5315_v55  ;;  %v3755_v21 = vmax.f32 %v3753_v13, %v3754_v9  ;;  %v4534_v58 = vmax.f32 %v3748_v8, %v6058_v46 }
 0x175   : > { %v2621_v27 = vsel %vm2607_vm1, %v2552_v2, %v2551_v6  ;;  %v3762_v10 = vmax.f32 %v3760_v7, %v3761_v0  ;;  %v3768_v17 = vrot.slane %v3767_v19, 1  ;;  %v780_v18 = vrot.slane %v6054_v26, %v5791_v38  ;;  %v6101_v26 = vld [vmem:[%s7191_s2 + $0x1] ss:$0 sm:$0xff]  ;;  %v6116_v7 = vpop.f32.mrb[13].mxu0 }
 0x176   : > { %v6089_v32 = vunpack.c.l.b16 %v5316_v14  ;;  %v6092_v24 = vsel %vm2609_vm2, %v2553_v15, %v2621_v27  ;;  %v4535_v31 = vmax.f32 %v3755_v21, %v6064_v42  ;;  %v5377_v56 = vpack.c.bf16 %v4534_v58, %v4534_v58 }
 0x177   : > { %v3769_v35 = vmax.f32 %v3767_v19, %v3768_v17  ;;  %v4536_v33 = vmax.f32 %v3762_v10, %v6066_v49  ;;  %v787_v46 = vrot.slane %v773_v20, %v5791_v38  ;;  %v788_v40 = vcombine.high %v780_v18, %v780_v18  ;;  %v6123_v19 = vld [vmem:[%s7191_s2] ss:$0 sm:$0xff] }
 0x178   : > { %v5378_v45 = vpack.c.bf16 %v4535_v31, %v4535_v31  ;;  %v4854_v41 = vunpack.c.l.b16 %v5377_v56  ;;  %v1523_v44 = vsel %vm1326_vm0, %v780_v18, -inf  ;;  %v2827_v57 = vadd.f32 %v6101_v26, %v5845_v28 }
 0x179   : > { %v4537_v42 = vmax.f32 %v3769_v35, %v6068_v1  ;;  %v5379_v39 = vpack.c.bf16 %v4536_v33, %v4536_v33  ;;  %v789_v37 = vcombine.high %v787_v46, %v787_v46  ;;  %v1524_v49 = vrot.slane %v1523_v44, 4 }
 0x17a   : > { %v4855_v22 = vunpack.c.l.b16 %v5378_v45  ;;  %v1530_v23 = vsel %vm1326_vm0, %v788_v40, -inf  ;;  %v1537_v16 = vsel %vm1326_vm0, %v787_v46, -inf  ;;  %v3077_v47 = vcombine.high %v2827_v57, %v2827_v57 }
 0x17b   : > { %v5380_v54 = vpack.c.bf16 %v4537_v42, %v4537_v42  ;;  %v4856_v59 = vunpack.c.l.b16 %v5379_v39  ;;  %v1525_v4 = vmax.f32 %v1523_v44, %v1524_v49  ;;  %v1531_v11 = vrot.slane %v1530_v23, 4  ;;  %v6132_v39 = vpop.f32.mrb[13].mxu1 }
 0x17c   : > { %v4917_v50 = vsel %vm2607_vm1, %v4855_v22, %v4854_v41  ;;  %v1538_v62 = vrot.slane %v1537_v16, 4  ;;  %v1544_v28 = vsel %vm1326_vm0, %v789_v37, -inf  ;;  %v3084_v1 = vrot.slane %v2827_v57, %v5791_v38 }
 0x17d   : > { %v6111_v60 = vunpack.c.l.b16 %v5380_v54  ;;  %v6114_v13 = vsel %vm2609_vm2, %v4856_v59, %v4917_v50  ;;  %v1526_v3 = vrot.slane %v1525_v4, 2  ;;  %v1532_v6 = vmax.f32 %v1530_v23, %v1531_v11 }
 0x17e   : > { %v1539_v61 = vmax.f32 %v1537_v16, %v1538_v62  ;;  %v1545_v63 = vrot.slane %v1544_v28, 4  ;;  %v3091_v55 = vrot.slane %v3077_v47, %v5791_v38  ;;  %v3092_v8 = vcombine.high %v3084_v1, %v3084_v1 }
 0x17f   : > { %v1527_v9 = vmax.f32 %v1525_v4, %v1526_v3  ;;  %v1533_v2 = vrot.slane %v1532_v6, 2  ;;  %v3826_v0 = vsel %vm1326_vm0, %v3084_v1, -inf  ;;  %v515_v20 = vadd.f32 %v6123_v19, %v5847_v29 }
 0x180   : > { %v1540_v14 = vrot.slane %v1539_v61, 2  ;;  %v1546_v15 = vmax.f32 %v1544_v28, %v1545_v63  ;;  %v3093_v21 = vcombine.high %v3091_v55, %v3091_v55  ;;  %v3827_v58 = vrot.slane %v3826_v0, 4 }
 0x181   : > { %v1528_v27 = vrot.slane %v1527_v9, 1  ;;  %v1534_v10 = vmax.f32 %v1532_v6, %v1533_v2  ;;  %v3833_v17 = vsel %vm1326_vm0, %v3092_v8, -inf  ;;  %v3840_v18 = vsel %vm1326_vm0, %v3091_v55, -inf }
 0x182   : > { %v1541_v31 = vmax.f32 %v1539_v61, %v1540_v14  ;;  %v1547_v56 = vrot.slane %v1546_v15, 2  ;;  %v3828_v35 = vmax.f32 %v3826_v0, %v3827_v58  ;;  %v3834_v33 = vrot.slane %v3833_v17, 4 }
 0x183   : > { %v6129_v46 = vmax.f32 %v1527_v9, %v1528_v27  ;;  %v1535_v40 = vrot.slane %v1534_v10, 1  ;;  %v3841_v45 = vrot.slane %v3840_v18, 4  ;;  %v3847_v29 = vsel %vm1326_vm0, %v3093_v21, -inf }
 0x184   : > { %v1542_v41 = vrot.slane %v1541_v31, 1  ;;  %v1548_v44 = vmax.f32 %v1546_v15, %v1547_v56  ;;  %v3829_v57 = vrot.slane %v3828_v35, 2  ;;  %v3835_v42 = vmax.f32 %v3833_v17, %v3834_v33  ;;  %v6155_v17 = vpop.f32.mrb[14].mxu0 }
 0x185   : > { %v6134_v37 = vmax.f32 %v1534_v10, %v1535_v40  ;;  %v3842_v49 = vmax.f32 %v3840_v18, %v3841_v45  ;;  %v3848_v22 = vrot.slane %v3847_v29, 4  ;;  %v739_v23 = vcombine.high %v515_v20, %v515_v20 }
 0x186   : > { %v6136_v16 = vmax.f32 %v1541_v31, %v1542_v41  ;;  %v1549_v47 = vrot.slane %v1548_v44, 1  ;;  %v3830_v54 = vmax.f32 %v3828_v35, %v3829_v57  ;;  %v3836_v59 = vrot.slane %v3835_v42, 2 }
 0x187   : > { %v3843_v4 = vrot.slane %v3842_v49, 2  ;;  %v3849_v11 = vmax.f32 %v3847_v29, %v3848_v22  ;;  %v746_v50 = vrot.slane %v515_v20, %v5791_v38  ;;  %v753_v62 = vrot.slane %v739_v23, %v5791_v38 }
 0x188   : > { %v6140_v28 = vmax.f32 %v1548_v44, %v1549_v47  ;;  %v3831_v1 = vrot.slane %v3830_v54, 1  ;;  %v3837_v3 = vmax.f32 %v3835_v42, %v3836_v59  ;;  %v6145_v6 = vsel %vm2611_vm3, %v6089_v32, %v6092_v24 }
 0x189   : > { %v3844_v61 = vmax.f32 %v3842_v49, %v3843_v4  ;;  %v3850_v63 = vrot.slane %v3849_v11, 2  ;;  %v754_v55 = vcombine.high %v746_v50, %v746_v50  ;;  %v755_v8 = vcombine.high %v753_v62, %v753_v62 }
 0x18a   : > { %v6147_v9 = vmax.f32 %v3830_v54, %v3831_v1  ;;  %v3838_v2 = vrot.slane %v3837_v3, 1  ;;  %v1467_v0 = vsel %vm1326_vm0, %v746_v50, -inf  ;;  %v1481_v20 = vsel %vm1326_vm0, %v753_v62, -inf }
 0x18b   : > { %v3845_v14 = vrot.slane %v3844_v61, 1  ;;  %v3851_v15 = vmax.f32 %v3849_v11, %v3850_v63  ;;  %v1468_v21 = vrot.slane %v1467_v0, 4  ;;  %v1474_v58 = vsel %vm1326_vm0, %v754_v55, -inf }
 0x18c   : > { %v6152_v27 = vmax.f32 %v3837_v3, %v3838_v2  ;;  %v1475_v32 = vrot.slane %v1474_v58, 4  ;;  %v1482_v24 = vrot.slane %v1481_v20, 4  ;;  %v1488_v10 = vsel %vm1326_vm0, %v755_v8, -inf }
 0x18d   : > { %v6157_v18 = vmax.f32 %v3844_v61, %v3845_v14  ;;  %v3852_v31 = vrot.slane %v3851_v15, 1  ;;  %v1469_v56 = vmax.f32 %v1467_v0, %v1468_v21  ;;  %v1489_v35 = vrot.slane %v1488_v10, 4 }
 0x18e   : > { %v1476_v33 = vmax.f32 %v1474_v58, %v1475_v32  ;;  %v1483_v40 = vmax.f32 %v1481_v20, %v1482_v24  ;;  %v2819_v45 = vadd.f32 %v6101_v26, %v5849_v34  ;;  %v6164_v29 = vsel %vm2611_vm3, %v6111_v60, %v6114_v13 }
 0x18f   : > { %v6166_v41 = vmax.f32 %v3851_v15, %v3852_v31  ;;  %v1470_v44 = vrot.slane %v1469_v56, 2  ;;  %v1490_v57 = vmax.f32 %v1488_v10, %v1489_v35  ;;  %v536_v42 = vadd.f32 %v6123_v19, %v5887_v48 }
 0x190   : > { %v1477_v49 = vrot.slane %v1476_v33, 2  ;;  %v1484_v22 = vrot.slane %v1483_v40, 2  ;;  %v3043_v23 = vcombine.high %v2819_v45, %v2819_v45  ;;  %v3050_v47 = vrot.slane %v2819_v45, %v5791_v38 }
 0x191   : > { %v1471_v54 = vmax.f32 %v1469_v56, %v1470_v44  ;;  %v1491_v59 = vrot.slane %v1490_v57, 2  ;;  %v824_v34 = vcombine.high %v536_v42, %v536_v42  ;;  %v6172_v4 = vrot.slane %v536_v42, %v5791_v38 }
 0x192   : > { %v1478_v60 = vmax.f32 %v1476_v33, %v1477_v49  ;;  %v1485_v13 = vmax.f32 %v1483_v40, %v1484_v22  ;;  %v3057_v11 = vrot.slane %v3043_v23, %v5791_v38  ;;  %v3058_v50 = vcombine.high %v3050_v47, %v3050_v47 }
 0x193   : > { %v1472_v62 = vrot.slane %v1471_v54, 1  ;;  %v1492_v1 = vmax.f32 %v1490_v57, %v1491_v59  ;;  %v3770_v48 = vsel %vm1326_vm0, %v3050_v47, -inf  ;;  %v6177_v3 = vrot.slane %v824_v34, %v5791_v38 }
 0x194   : > { %v1479_v61 = vrot.slane %v1478_v60, 1  ;;  %v1486_v63 = vrot.slane %v1485_v13, 1  ;;  %v3059_v55 = vcombine.high %v3057_v11, %v3057_v11  ;;  %v3771_v8 = vrot.slane %v3770_v48, 4 }
 0x195   : > { %v1473_v2 = vmax.f32 %v1471_v54, %v1472_v62  ;;  %v1493_v0 = vrot.slane %v1492_v1, 1  ;;  %v3777_v20 = vsel %vm1326_vm0, %v3058_v50, -inf  ;;  %v3784_v14 = vsel %vm1326_vm0, %v3057_v11, -inf }
 0x196   : > { %v1480_v15 = vmax.f32 %v1478_v60, %v1479_v61  ;;  %v1487_v21 = vmax.f32 %v1485_v13, %v1486_v63  ;;  %v3772_v58 = vmax.f32 %v3770_v48, %v3771_v8  ;;  %v3778_v32 = vrot.slane %v3777_v20, 4  ;;  %v6188_v48 = vpop.f32.mrb[14].mxu1 }
 0x197   : > { %v1494_v24 = vmax.f32 %v1492_v1, %v1493_v0  ;;  %v2235_v10 = vmax.f32 %v1473_v2, %v6129_v46  ;;  %v3785_v31 = vrot.slane %v3784_v14, 4  ;;  %v3791_v56 = vsel %vm1326_vm0, %v3059_v55, -inf }
 0x198   : > { %v2236_v35 = vmax.f32 %v1480_v15, %v6134_v37  ;;  %v2237_v33 = vmax.f32 %v1487_v21, %v6136_v16  ;;  %v3773_v40 = vrot.slane %v3772_v58, 2  ;;  %v3779_v45 = vmax.f32 %v3777_v20, %v3778_v32 }
 0x199   : > { %v2238_v44 = vmax.f32 %v1494_v24, %v6140_v28  ;;  %v5317_v57 = vpack.c.bf16 %v2235_v10, %v2235_v10  ;;  %v3786_v42 = vmax.f32 %v3784_v14, %v3785_v31  ;;  %v3792_v49 = vrot.slane %v3791_v56, 4 }
 0x19a   : > { %v5318_v22 = vpack.c.bf16 %v2236_v35, %v2236_v35  ;;  %v5319_v23 = vpack.c.bf16 %v2237_v33, %v2237_v33  ;;  %v3774_v47 = vmax.f32 %v3772_v58, %v3773_v40  ;;  %v3780_v54 = vrot.slane %v3779_v45, 2 }
 0x19b   : > { %v5320_v59 = vpack.c.bf16 %v2238_v44, %v2238_v44  ;;  %v2555_v46 = vunpack.c.l.b16 %v5317_v57  ;;  %v3787_v34 = vrot.slane %v3786_v42, 2  ;;  %v3793_v60 = vmax.f32 %v3791_v56, %v3792_v49 }
 0x19c   : > { %v2556_v13 = vunpack.c.l.b16 %v5318_v22  ;;  %v2557_v11 = vunpack.c.l.b16 %v5319_v23  ;;  %v3775_v37 = vrot.slane %v3774_v47, 1  ;;  %v3781_v50 = vmax.f32 %v3779_v45, %v3780_v54  ;;  %v6207_v23 = vpop.f32.mrb[15].mxu0 }
 0x19d   : > { %v2558_v16 = vunpack.c.l.b16 %v5320_v59  ;;  %v2624_v62 = vsel %vm2613_vm4, %v2555_v46, %v6145_v6  ;;  %v3788_v28 = vmax.f32 %v3786_v42, %v3787_v34  ;;  %v3794_v1 = vrot.slane %v3793_v60, 2 }
 0x19e   : > { %v2625_v61 = vsel %vm2615_vm5, %v2556_v13, %v2624_v62  ;;  %v3776_v63 = vmax.f32 %v3774_v47, %v3775_v37  ;;  %v3782_v55 = vrot.slane %v3781_v50, 1  ;;  %v839_v8 = vcombine.high %v6172_v4, %v6172_v4 }
 0x19f   : > { %v2626_v2 = vsel %vm2617_vm6, %v2557_v11, %v2625_v61  ;;  %v3789_v0 = vrot.slane %v3788_v28, 1  ;;  %v3795_v20 = vmax.f32 %v3793_v60, %v3794_v1  ;;  %v840_v14 = vcombine.high %v6177_v3, %v6177_v3 }
 0x1a0   : > { %v2627_v6 = vsel %vm2619_vm7, %v2558_v16, %v2626_v2  ;;  %v3783_v15 = vmax.f32 %v3781_v50, %v3782_v55  ;;  %v4538_v21 = vmax.f32 %v3776_v63, %v6147_v9  ;;  %v1607_v58 = vsel %vm1326_vm0, %v6172_v4, -inf }
 0x1a1   : > { %v2671_v32 = vpack.c.b16 %v2627_v6, %v2627_v6  ;;  %v3790_v24 = vmax.f32 %v3788_v28, %v3789_v0  ;;  %v3796_v10 = vrot.slane %v3795_v20, 1  ;;  %v1608_v31 = vrot.slane %v1607_v58, 4 }
 0x1a2   : > { %v4539_v56 = vmax.f32 %v3783_v15, %v6152_v27  ;;  %v5381_v35 = vpack.c.bf16 %v4538_v21, %v4538_v21  ;;  %v1614_v33 = vsel %vm1326_vm0, %v839_v8, -inf  ;;  %v1621_v40 = vsel %vm1326_vm0, %v6177_v3, -inf }
 0x1a3   : > { %2687 = vst [vmem:[%s6001_s14 + $0x4] sm:$0xf] %v2671_v32  ;;  %v3797_v45 = vmax.f32 %v3795_v20, %v3796_v10  ;;  %v4540_v44 = vmax.f32 %v3790_v24, %v6157_v18  ;;  %v1609_v9 = vmax.f32 %v1607_v58, %v1608_v31  ;;  %v1615_v57 = vrot.slane %v1614_v33, 4  ;;  %v6223_v32 = vpop.f32.mrb[15].mxu1 }
 0x1a4   : > { %v5382_v42 = vpack.c.bf16 %v4539_v56, %v4539_v56  ;;  %v4858_v4 = vunpack.c.l.b16 %v5381_v35  ;;  %v1622_v49 = vrot.slane %v1621_v40, 4  ;;  %v1628_v22 = vsel %vm1326_vm0, %v840_v14, -inf }
 0x1a5   : > { %v4541_v27 = vmax.f32 %v3797_v45, %v6166_v41  ;;  %v5383_v47 = vpack.c.bf16 %v4540_v44, %v4540_v44  ;;  %v1610_v54 = vrot.slane %v1609_v9, 2  ;;  %v1616_v59 = vmax.f32 %v1614_v33, %v1615_v57 }
 0x1a6   : > { %v4859_v46 = vunpack.c.l.b16 %v5382_v42  ;;  %v4920_v3 = vsel %vm2613_vm4, %v4858_v4, %v6164_v29  ;;  %v1623_v34 = vmax.f32 %v1621_v40, %v1622_v49  ;;  %v1629_v18 = vrot.slane %v1628_v22, 4 }
 0x1a7   : > { %v5384_v60 = vpack.c.bf16 %v4541_v27, %v4541_v27  ;;  %v4860_v13 = vunpack.c.l.b16 %v5383_v47  ;;  %v1611_v11 = vmax.f32 %v1609_v9, %v1610_v54  ;;  %v1617_v37 = vrot.slane %v1616_v59, 2 }
 0x1a8   : > { %v4921_v50 = vsel %vm2615_vm5, %v4859_v46, %v4920_v3  ;;  %v1624_v16 = vrot.slane %v1623_v34, 2  ;;  %v1630_v62 = vmax.f32 %v1628_v22, %v1629_v18  ;;  %v2840_v41 = vadd.f32 %v6101_v26, %v5892_v36 }
 0x1a9   : > { %v4861_v28 = vunpack.c.l.b16 %v5384_v60  ;;  %v4922_v1 = vsel %vm2617_vm6, %v4860_v13, %v4921_v50  ;;  %v1612_v61 = vrot.slane %v1611_v11, 1  ;;  %v1618_v63 = vmax.f32 %v1616_v59, %v1617_v37 }
 0x1aa   : > { %v1625_v55 = vmax.f32 %v1623_v34, %v1624_v16  ;;  %v1631_v29 = vrot.slane %v1630_v62, 2  ;;  %v3128_v8 = vcombine.high %v2840_v41, %v2840_v41  ;;  %v3135_v2 = vrot.slane %v2840_v41, %v5791_v38 }
 0x1ab   : > { %v4923_v0 = vsel %vm2619_vm7, %v4861_v28, %v4922_v1  ;;  %v6218_v20 = vmax.f32 %v1611_v11, %v1612_v61  ;;  %v1619_v14 = vrot.slane %v1618_v63, 1  ;;  %v528_v6 = vadd.f32 %v6123_v19, %v5924_v43 }
 0x1ac   : > { %v4967_v36 = vpack.c.b16 %v4923_v0, %v4923_v0  ;;  %v1626_v15 = vrot.slane %v1625_v55, 1  ;;  %v1632_v21 = vmax.f32 %v1630_v62, %v1631_v29  ;;  %v3142_v58 = vrot.slane %v3128_v8, %v5791_v38 }
 0x1ad   : > { %v6225_v24 = vmax.f32 %v1618_v63, %v1619_v14  ;;  %v3143_v10 = vcombine.high %v3135_v2, %v3135_v2  ;;  %v3910_v31 = vsel %vm1326_vm0, %v3135_v2, -inf  ;;  %v790_v56 = vcombine.high %v528_v6, %v528_v6 }
 0x1ae   : > { %4983 = vst [vmem:[%s6027_s21 + $0x4] sm:$0xf] %v4967_v36  ;;  %v6229_v35 = vmax.f32 %v1625_v55, %v1626_v15  ;;  %v1633_v33 = vrot.slane %v1632_v21, 1  ;;  %v3144_v40 = vcombine.high %v3142_v58, %v3142_v58  ;;  %v3911_v45 = vrot.slane %v3910_v31, 4 }
 0x1af   : > { %v3917_v43 = vsel %vm1326_vm0, %v3143_v10, -inf  ;;  %v3924_v44 = vsel %vm1326_vm0, %v3142_v58, -inf  ;;  %v797_v9 = vrot.slane %v528_v6, %v5791_v38  ;;  %v804_v57 = vrot.slane %v790_v56, %v5791_v38 }
 0x1b0   : > { %v6235_v42 = vmax.f32 %v1632_v21, %v1633_v33  ;;  %v3912_v4 = vmax.f32 %v3910_v31, %v3911_v45  ;;  %v3918_v49 = vrot.slane %v3917_v43, 4  ;;  %v3925_v22 = vrot.slane %v3924_v44, 4 }
 0x1b1   : > { %v3931_v27 = vsel %vm1326_vm0, %v3144_v40, -inf  ;;  %v805_v47 = vcombine.high %v797_v9, %v797_v9  ;;  %v806_v54 = vcombine.high %v804_v57, %v804_v57  ;;  %v1551_v59 = vsel %vm1326_vm0, %v797_v9, -inf }
 0x1b2   : > { %v3913_v46 = vrot.slane %v3912_v4, 2  ;;  %v3919_v3 = vmax.f32 %v3917_v43, %v3918_v49  ;;  %v3926_v34 = vmax.f32 %v3924_v44, %v3925_v22  ;;  %v3932_v18 = vrot.slane %v3931_v27, 4 }
 0x1b3   : > { %v1552_v60 = vrot.slane %v1551_v59, 4  ;;  %v1558_v13 = vsel %vm1326_vm0, %v805_v47, -inf  ;;  %v1565_v11 = vsel %vm1326_vm0, %v804_v57, -inf  ;;  %v1572_v37 = vsel %vm1326_vm0, %v806_v54, -inf }
 0x1b4   : > { %v3914_v50 = vmax.f32 %v3912_v4, %v3913_v46  ;;  %v3920_v16 = vrot.slane %v3919_v3, 2  ;;  %v3927_v62 = vrot.slane %v3926_v34, 2  ;;  %v3933_v41 = vmax.f32 %v3931_v27, %v3932_v18  ;;  %v6250_v27 = vpop.f32.mrb[16].mxu0 }
 0x1b5   : > { %v1553_v28 = vmax.f32 %v1551_v59, %v1552_v60  ;;  %v1559_v1 = vrot.slane %v1558_v13, 4  ;;  %v1566_v61 = vrot.slane %v1565_v11, 4  ;;  %v1573_v63 = vrot.slane %v1572_v37, 4 }
 0x1b6   : > { %v3915_v55 = vrot.slane %v3914_v50, 1  ;;  %v3921_v29 = vmax.f32 %v3919_v3, %v3920_v16  ;;  %v3928_v8 = vmax.f32 %v3926_v34, %v3927_v62  ;;  %v3934_v2 = vrot.slane %v3933_v41, 2 }
 0x1b7   : > { %v1554_v0 = vrot.slane %v1553_v28, 2  ;;  %v1560_v14 = vmax.f32 %v1558_v13, %v1559_v1  ;;  %v1567_v6 = vmax.f32 %v1565_v11, %v1566_v61  ;;  %v1574_v36 = vmax.f32 %v1572_v37, %v1573_v63 }
 0x1b8   : > { %v6242_v15 = vmax.f32 %v3914_v50, %v3915_v55  ;;  %v3922_v21 = vrot.slane %v3921_v29, 1  ;;  %v3929_v58 = vrot.slane %v3928_v8, 1  ;;  %v3935_v10 = vmax.f32 %v3933_v41, %v3934_v2 }
 0x1b9   : > { %v1555_v31 = vmax.f32 %v1553_v28, %v1554_v0  ;;  %v1561_v56 = vrot.slane %v1560_v14, 2  ;;  %v1568_v33 = vrot.slane %v1567_v6, 2  ;;  %v1575_v40 = vrot.slane %v1574_v36, 2 }
 0x1ba   : > { %v6244_v45 = vmax.f32 %v3921_v29, %v3922_v21  ;;  %v6246_v43 = vmax.f32 %v3928_v8, %v3929_v58  ;;  %v3936_v44 = vrot.slane %v3935_v10, 1  ;;  %v2832_v9 = vadd.f32 %v6101_v26, %v5932_v5 }
 0x1bb   : > { %v1556_v57 = vrot.slane %v1555_v31, 1  ;;  %v1562_v4 = vmax.f32 %v1560_v14, %v1561_v56  ;;  %v1569_v49 = vmax.f32 %v1567_v6, %v1568_v33  ;;  %v1576_v22 = vmax.f32 %v1574_v36, %v1575_v40 }
 0x1bc   : > { %v6252_v47 = vmax.f32 %v3935_v10, %v3936_v44  ;;  %v3094_v54 = vcombine.high %v2832_v9, %v2832_v9  ;;  %v3101_v59 = vrot.slane %v2832_v9, %v5791_v38  ;;  %v539_v46 = vadd.f32 %v6123_v19, %v5970_v25 }
 0x1bd   : > { %v1557_v3 = vmax.f32 %v1555_v31, %v1556_v57  ;;  %v1563_v34 = vrot.slane %v1562_v4, 1  ;;  %v1570_v18 = vrot.slane %v1569_v49, 1  ;;  %v1577_v60 = vrot.slane %v1576_v22, 1 }
 0x1be   : > { %v3108_v5 = vrot.slane %v3094_v54, %v5791_v38  ;;  %v3109_v13 = vcombine.high %v3101_v59, %v3101_v59  ;;  %v3854_v11 = vsel %vm1326_vm0, %v3101_v59, -inf  ;;  %v841_v37 = vcombine.high %v539_v46, %v539_v46 }
 0x1bf   : > { %v1564_v50 = vmax.f32 %v1562_v4, %v1563_v34  ;;  %v1571_v16 = vmax.f32 %v1569_v49, %v1570_v18  ;;  %v1578_v62 = vmax.f32 %v1576_v22, %v1577_v60  ;;  %v2239_v41 = vmax.f32 %v1557_v3, %v6218_v20  ;;  %v6269_v49 = vpop.f32.mrb[16].mxu1 }
 0x1c0   : > { %v3110_v28 = vcombine.high %v3108_v5, %v3108_v5  ;;  %v3855_v1 = vrot.slane %v3854_v11, 4  ;;  %v3861_v61 = vsel %vm1326_vm0, %v3109_v13, -inf  ;;  %v3868_v25 = vsel %vm1326_vm0, %v3108_v5, -inf }
 0x1c1   : > { %v2240_v63 = vmax.f32 %v1564_v50, %v6225_v24  ;;  %v2241_v55 = vmax.f32 %v1571_v16, %v6229_v35  ;;  %v2242_v29 = vmax.f32 %v1578_v62, %v6235_v42  ;;  %v5321_v8 = vpack.c.bf16 %v2239_v41, %v2239_v41 }
 0x1c2   : > { %v3856_v2 = vmax.f32 %v3854_v11, %v3855_v1  ;;  %v3862_v0 = vrot.slane %v3861_v61, 4  ;;  %v3869_v14 = vrot.slane %v3868_v25, 4  ;;  %v3875_v6 = vsel %vm1326_vm0, %v3110_v28, -inf }
 0x1c3   : > { %v5322_v36 = vpack.c.bf16 %v2240_v63, %v2240_v63  ;;  %v5323_v20 = vpack.c.bf16 %v2241_v55, %v2241_v55  ;;  %v5324_v21 = vpack.c.bf16 %v2242_v29, %v2242_v29  ;;  %v2559_v58 = vunpack.c.l.b16 %v5321_v8 }
 0x1c4   : > { %v3857_v10 = vrot.slane %v3856_v2, 2  ;;  %v3863_v31 = vmax.f32 %v3861_v61, %v3862_v0  ;;  %v3870_v56 = vmax.f32 %v3868_v25, %v3869_v14  ;;  %v3876_v33 = vrot.slane %v3875_v6, 4 }
 0x1c5   : > { %v2560_v40 = vunpack.c.l.b16 %v5322_v36  ;;  %v2561_v24 = vunpack.c.l.b16 %v5323_v20  ;;  %v6266_v44 = vunpack.c.l.b16 %v5324_v21  ;;  %v848_v35 = vrot.slane %v539_v46, %v5791_v38 }
 0x1c6   : > { %v3858_v42 = vmax.f32 %v3856_v2, %v3857_v10  ;;  %v3864_v9 = vrot.slane %v3863_v31, 2  ;;  %v3871_v57 = vrot.slane %v3870_v56, 2  ;;  %v3877_v4 = vmax.f32 %v3875_v6, %v3876_v33 }
 0x1c7   : > { %v2628_v22 = vsel %vm2607_vm1, %v2560_v40, %v2559_v58  ;;  %v855_v54 = vrot.slane %v841_v37, %v5791_v38  ;;  %v856_v59 = vcombine.high %v848_v35, %v848_v35  ;;  %v1635_v3 = vsel %vm1326_vm0, %v848_v35, -inf }
 0x1c8   : > { %v6275_v34 = vsel %vm2609_vm2, %v2561_v24, %v2628_v22  ;;  %v3859_v18 = vrot.slane %v3858_v42, 1  ;;  %v3865_v60 = vmax.f32 %v3863_v31, %v3864_v9  ;;  %v3872_v5 = vmax.f32 %v3870_v56, %v3871_v57 }
 0x1c9   : > { %v3878_v46 = vrot.slane %v3877_v4, 2  ;;  %v857_v13 = vcombine.high %v855_v54, %v855_v54  ;;  %v1636_v11 = vrot.slane %v1635_v3, 4  ;;  %v1642_v50 = vsel %vm1326_vm0, %v856_v59, -inf }
 0x1ca   : > { %v3860_v16 = vmax.f32 %v3858_v42, %v3859_v18  ;;  %v3866_v62 = vrot.slane %v3865_v60, 1  ;;  %v3873_v41 = vrot.slane %v3872_v5, 1  ;;  %v1643_v28 = vrot.slane %v1642_v50, 4 }
 0x1cb   : > { %v3879_v1 = vmax.f32 %v3877_v4, %v3878_v46  ;;  %v1637_v37 = vmax.f32 %v1635_v3, %v1636_v11  ;;  %v1649_v61 = vsel %vm1326_vm0, %v855_v54, -inf  ;;  %v1656_v25 = vsel %vm1326_vm0, %v857_v13, -inf }
 0x1cc   : > { %v3867_v63 = vmax.f32 %v3865_v60, %v3866_v62  ;;  %v3874_v55 = vmax.f32 %v3872_v5, %v3873_v41  ;;  %v4542_v29 = vmax.f32 %v3860_v16, %v6242_v15  ;;  %v1644_v8 = vmax.f32 %v1642_v50, %v1643_v28  ;;  %v6283_v15 = vpop.f32.mrb[17].mxu0 }
 0x1cd   : > { %v3880_v2 = vrot.slane %v3879_v1, 1  ;;  %v1638_v0 = vrot.slane %v1637_v37, 2  ;;  %v1650_v14 = vrot.slane %v1649_v61, 4  ;;  %v1657_v6 = vrot.slane %v1656_v25, 4 }
 0x1ce   : > { %v4543_v36 = vmax.f32 %v3867_v63, %v6244_v45  ;;  %v4544_v20 = vmax.f32 %v3874_v55, %v6246_v43  ;;  %v5385_v21 = vpack.c.bf16 %v4542_v29, %v4542_v29  ;;  %v1645_v58 = vrot.slane %v1644_v8, 2 }
 0x1cf   : > { %v3881_v10 = vmax.f32 %v3879_v1, %v3880_v2  ;;  %v1639_v31 = vmax.f32 %v1637_v37, %v1638_v0  ;;  %v1651_v56 = vmax.f32 %v1649_v61, %v1650_v14  ;;  %v1658_v33 = vmax.f32 %v1656_v25, %v1657_v6  ;;  %v6310_v14 = vpop.f32.mrb[17].mxu1 }
 0x1d0   : > { %v5386_v40 = vpack.c.bf16 %v4543_v36, %v4543_v36  ;;  %v5387_v24 = vpack.c.bf16 %v4544_v20, %v4544_v20  ;;  %v4862_v35 = vunpack.c.l.b16 %v5385_v21  ;;  %v1646_v42 = vmax.f32 %v1644_v8, %v1645_v58 }
 0x1d1   : > { %v4545_v9 = vmax.f32 %v3881_v10, %v6252_v47  ;;  %v1640_v57 = vrot.slane %v1639_v31, 1  ;;  %v1652_v4 = vrot.slane %v1651_v56, 2  ;;  %v1659_v22 = vrot.slane %v1658_v33, 2 }
 0x1d2   : > { %v4863_v45 = vunpack.c.l.b16 %v5386_v40  ;;  %v4864_v54 = vunpack.c.l.b16 %v5387_v24  ;;  %v1647_v43 = vrot.slane %v1646_v42, 1  ;;  %v2843_v59 = vadd.f32 %v6101_v26, %v5984_v51 }
 0x1d3   : > { %v5388_v3 = vpack.c.bf16 %v4545_v9, %v4545_v9  ;;  %v6288_v18 = vmax.f32 %v1639_v31, %v1640_v57  ;;  %v1653_v60 = vmax.f32 %v1651_v56, %v1652_v4  ;;  %v1660_v5 = vmax.f32 %v1658_v33, %v1659_v22 }
 0x1d4   : > { %v4924_v46 = vsel %vm2607_vm1, %v4863_v45, %v4862_v35  ;;  %v6291_v13 = vmax.f32 %v1646_v42, %v1647_v43  ;;  %v3145_v11 = vcombine.high %v2843_v59, %v2843_v59  ;;  %v3152_v47 = vrot.slane %v2843_v59, %v5791_v38 }
 0x1d5   : > { %v4865_v50 = vunpack.c.l.b16 %v5388_v3  ;;  %v4925_v16 = vsel %vm2609_vm2, %v4864_v54, %v4924_v46  ;;  %v1654_v62 = vrot.slane %v1653_v60, 1  ;;  %v1661_v41 = vrot.slane %v1660_v5, 1 }
 0x1d6   : > { %v3159_v28 = vrot.slane %v3145_v11, %v5791_v38  ;;  %v3160_v51 = vcombine.high %v3152_v47, %v3152_v47  ;;  %v3938_v1 = vsel %vm1326_vm0, %v3152_v47, -inf  ;;  %v531_v37 = vadd.f32 %v6123_v19, %v6016_v52 }
 0x1d7   : > { %v6299_v61 = vmax.f32 %v1653_v60, %v1654_v62  ;;  %v6301_v25 = vmax.f32 %v1660_v5, %v1661_v41  ;;  %v3939_v63 = vrot.slane %v3938_v1, 4  ;;  %v6306_v55 = vsel %vm2611_vm3, %v6266_v44, %v6275_v34 }
 0x1d8   : > { %v3161_v29 = vcombine.high %v3159_v28, %v3159_v28  ;;  %v3945_v8 = vsel %vm1326_vm0, %v3160_v51, -inf  ;;  %v3952_v2 = vsel %vm1326_vm0, %v3159_v28, -inf  ;;  %v807_v0 = vcombine.high %v531_v37, %v531_v37 }
 0x1d9   : > { %v3940_v6 = vmax.f32 %v3938_v1, %v3939_v63  ;;  %v3946_v52 = vrot.slane %v3945_v8, 4  ;;  %v3953_v36 = vrot.slane %v3952_v2, 4  ;;  %v814_v20 = vrot.slane %v531_v37, %v5791_v38 }
 0x1da   : > { %v3959_v21 = vsel %vm1326_vm0, %v3161_v29, -inf  ;;  %v821_v58 = vrot.slane %v807_v0, %v5791_v38  ;;  %v2835_v44 = vadd.f32 %v6101_v26, %v6034_v30  ;;  %v6318_v34 = vsel %vm2611_vm3, %v4865_v50, %v4925_v16  ;;  %v6324_v16 = vpop.f32.mrb[18].mxu0 }
 0x1db   : > { %v3941_v10 = vrot.slane %v3940_v6, 2  ;;  %v3947_v31 = vmax.f32 %v3945_v8, %v3946_v52  ;;  %v3954_v56 = vmax.f32 %v3952_v2, %v3953_v36  ;;  %v3960_v33 = vrot.slane %v3959_v21, 4 }
 0x1dc   : > { %v822_v40 = vcombine.high %v814_v20, %v814_v20  ;;  %v823_v24 = vcombine.high %v821_v58, %v821_v58  ;;  %v1579_v35 = vsel %vm1326_vm0, %v814_v20, -inf  ;;  %v1593_v42 = vsel %vm1326_vm0, %v821_v58, -inf }
 0x1dd   : > { %v3942_v9 = vmax.f32 %v3940_v6, %v3941_v10  ;;  %v3948_v57 = vrot.slane %v3947_v31, 2  ;;  %v3955_v4 = vrot.slane %v3954_v56, 2  ;;  %v3961_v22 = vmax.f32 %v3959_v21, %v3960_v33 }
 0x1de   : > { %v1580_v45 = vrot.slane %v1579_v35, 4  ;;  %v1586_v30 = vsel %vm1326_vm0, %v822_v40, -inf  ;;  %v1594_v54 = vrot.slane %v1593_v42, 4  ;;  %v1600_v43 = vsel %vm1326_vm0, %v823_v24, -inf }
 0x1df   : > { %v3943_v59 = vrot.slane %v3942_v9, 1  ;;  %v3949_v3 = vmax.f32 %v3947_v31, %v3948_v57  ;;  %v3956_v60 = vmax.f32 %v3954_v56, %v3955_v4  ;;  %v3962_v5 = vrot.slane %v3961_v22, 2 }
 0x1e0   : > { %v1581_v46 = vmax.f32 %v1579_v35, %v1580_v45  ;;  %v1587_v11 = vrot.slane %v1586_v30, 4  ;;  %v1595_v47 = vmax.f32 %v1593_v42, %v1594_v54  ;;  %v1601_v50 = vrot.slane %v1600_v43, 4 }
 0x1e1   : > { %v6326_v62 = vmax.f32 %v3942_v9, %v3943_v59  ;;  %v3950_v41 = vrot.slane %v3949_v3, 1  ;;  %v3957_v28 = vrot.slane %v3956_v60, 1  ;;  %v3963_v51 = vmax.f32 %v3961_v22, %v3962_v5 }
 0x1e2   : > { %v1582_v1 = vrot.slane %v1581_v46, 2  ;;  %v1588_v37 = vmax.f32 %v1586_v30, %v1587_v11  ;;  %v1596_v63 = vrot.slane %v1595_v47, 2  ;;  %v1602_v29 = vmax.f32 %v1600_v43, %v1601_v50 }
 0x1e3   : > { %v6328_v8 = vmax.f32 %v3949_v3, %v3950_v41  ;;  %v6330_v2 = vmax.f32 %v3956_v60, %v3957_v28  ;;  %v3964_v0 = vrot.slane %v3963_v51, 1  ;;  %v3111_v6 = vcombine.high %v2835_v44, %v2835_v44 }
 0x1e4   : > { %v1583_v52 = vmax.f32 %v1581_v46, %v1582_v1  ;;  %v1589_v36 = vrot.slane %v1588_v37, 2  ;;  %v1597_v20 = vmax.f32 %v1595_v47, %v1596_v63  ;;  %v1603_v21 = vrot.slane %v1602_v29, 2 }
 0x1e5   : > { %v6332_v58 = vmax.f32 %v3963_v51, %v3964_v0  ;;  %v3118_v10 = vrot.slane %v2835_v44, %v5791_v38  ;;  %v3125_v31 = vrot.slane %v3111_v6, %v5791_v38  ;;  %v552_v56 = vadd.f32 %v6123_v19, %v6072_v12 }
 0x1e6   : > { %v1584_v33 = vrot.slane %v1583_v52, 1  ;;  %v1590_v40 = vmax.f32 %v1588_v37, %v1589_v36  ;;  %v1598_v24 = vrot.slane %v1597_v20, 1  ;;  %v1604_v35 = vmax.f32 %v1602_v29, %v1603_v21 }
 0x1e7   : > { %v3126_v42 = vcombine.high %v3118_v10, %v3118_v10  ;;  %v3127_v9 = vcombine.high %v3125_v31, %v3125_v31  ;;  %v3882_v57 = vsel %vm1326_vm0, %v3118_v10, -inf  ;;  %v3896_v4 = vsel %vm1326_vm0, %v3125_v31, -inf }
 0x1e8   : > { %v1585_v22 = vmax.f32 %v1583_v52, %v1584_v33  ;;  %v1591_v45 = vrot.slane %v1590_v40, 1  ;;  %v1599_v30 = vmax.f32 %v1597_v20, %v1598_v24  ;;  %v1605_v54 = vrot.slane %v1604_v35, 1 }
 0x1e9   : > { %v3883_v44 = vrot.slane %v3882_v57, 4  ;;  %v3889_v43 = vsel %vm1326_vm0, %v3126_v42, -inf  ;;  %v3897_v59 = vrot.slane %v3896_v4, 4  ;;  %v3903_v12 = vsel %vm1326_vm0, %v3127_v9, -inf }
 0x1ea   : > { %v1592_v19 = vmax.f32 %v1590_v40, %v1591_v45  ;;  %v1606_v3 = vmax.f32 %v1604_v35, %v1605_v54  ;;  %v2243_v60 = vmax.f32 %v1585_v22, %v6288_v18  ;;  %v2245_v5 = vmax.f32 %v1599_v30, %v6299_v61  ;;  %v6348_v40 = vpop.f32.mrb[18].mxu1 }
 0x1eb   : > { %v3884_v46 = vmax.f32 %v3882_v57, %v3883_v44  ;;  %v3890_v11 = vrot.slane %v3889_v43, 4  ;;  %v3898_v47 = vmax.f32 %v3896_v4, %v3897_v59  ;;  %v3904_v50 = vrot.slane %v3903_v12, 4 }
 0x1ec   : > { %v2244_v41 = vmax.f32 %v1592_v19, %v6291_v13  ;;  %v2246_v28 = vmax.f32 %v1606_v3, %v6301_v25  ;;  %v5325_v51 = vpack.c.bf16 %v2243_v60, %v2243_v60  ;;  %v5327_v1 = vpack.c.bf16 %v2245_v5, %v2245_v5 }
 0x1ed   : > { %v3885_v37 = vrot.slane %v3884_v46, 2  ;;  %v3891_v63 = vmax.f32 %v3889_v43, %v3890_v11  ;;  %v3899_v29 = vrot.slane %v3898_v47, 2  ;;  %v3905_v0 = vmax.f32 %v3903_v12, %v3904_v50 }
 0x1ee   : > { %v5326_v6 = vpack.c.bf16 %v2244_v41, %v2244_v41  ;;  %v5328_v52 = vpack.c.bf16 %v2246_v28, %v2246_v28  ;;  %v2563_v36 = vunpack.c.l.b16 %v5325_v51  ;;  %v2565_v18 = vunpack.c.l.b16 %v5327_v1 }
 0x1ef   : > { %v3886_v20 = vmax.f32 %v3884_v46, %v3885_v37  ;;  %v3892_v61 = vrot.slane %v3891_v63, 2  ;;  %v3900_v21 = vmax.f32 %v3898_v47, %v3899_v29  ;;  %v3906_v10 = vrot.slane %v3905_v0, 2 }
 0x1f0   : > { %v2564_v31 = vunpack.c.l.b16 %v5326_v6  ;;  %v2566_v33 = vunpack.c.l.b16 %v5328_v52  ;;  %v2631_v13 = vsel %vm2613_vm4, %v2563_v36, %v6306_v55  ;;  %v892_v25 = vcombine.high %v552_v56, %v552_v56 }
 0x1f1   : > { %v3887_v24 = vrot.slane %v3886_v20, 1  ;;  %v3893_v35 = vmax.f32 %v3891_v63, %v3892_v61  ;;  %v3901_v42 = vrot.slane %v3900_v21, 1  ;;  %v3907_v9 = vmax.f32 %v3905_v0, %v3906_v10 }
 0x1f2   : > { %v2632_v57 = vsel %vm2615_vm5, %v2564_v31, %v2631_v13  ;;  %v899_v4 = vrot.slane %v552_v56, %v5791_v38  ;;  %v906_v22 = vrot.slane %v892_v25, %v5791_v38  ;;  %v2856_v45 = vadd.f32 %v6101_v26, %v6080_v53 }
 0x1f3   : > { %v2633_v30 = vsel %vm2617_vm6, %v2565_v18, %v2632_v57  ;;  %v3888_v55 = vmax.f32 %v3886_v20, %v3887_v24  ;;  %v3894_v54 = vrot.slane %v3893_v35, 1  ;;  %v3902_v44 = vmax.f32 %v3900_v21, %v3901_v42 }
 0x1f4   : > { %v2634_v43 = vsel %vm2619_vm7, %v2566_v33, %v2633_v30  ;;  %v3908_v59 = vrot.slane %v3907_v9, 1  ;;  %v907_v12 = vcombine.high %v899_v4, %v899_v4  ;;  %v908_v19 = vcombine.high %v906_v22, %v906_v22 }
 0x1f5   : > { %v2672_v3 = vpack.c.b16 %v2634_v43, %v2634_v43  ;;  %v3895_v60 = vmax.f32 %v3893_v35, %v3894_v54  ;;  %v4546_v56 = vmax.f32 %v3888_v55, %v6326_v62  ;;  %v4548_v5 = vmax.f32 %v3902_v44, %v6330_v2  ;;  %v6366_v2 = vpop.f32.mrb[19].mxu0 }
 0x1f6   : > { %v3909_v46 = vmax.f32 %v3907_v9, %v3908_v59  ;;  %v1719_v53 = vsel %vm1326_vm0, %v899_v4, -inf  ;;  %v1726_v26 = vsel %vm1326_vm0, %v907_v12, -inf  ;;  %v1733_v11 = vsel %vm1326_vm0, %v906_v22, -inf }
 0x1f7   : > { %2688 = vst [vmem:[%s6001_s14 + $0x8] sm:$0xf] %v2672_v3  ;;  %v4547_v47 = vmax.f32 %v3895_v60, %v6328_v8  ;;  %v5389_v50 = vpack.c.bf16 %v4546_v56, %v4546_v56  ;;  %v5391_v41 = vpack.c.bf16 %v4548_v5, %v4548_v5  ;;  %v1720_v28 = vrot.slane %v1719_v53, 4  ;;  %v6380_v56 = vpop.f32.mrb[19].mxu1 }
 0x1f8   : > { %v4549_v51 = vmax.f32 %v3909_v46, %v6332_v58  ;;  %v1727_v1 = vrot.slane %v1726_v26, 4  ;;  %v1734_v37 = vrot.slane %v1733_v11, 4  ;;  %v1740_v62 = vsel %vm1326_vm0, %v908_v19, -inf }
 0x1f9   : > { %v5390_v63 = vpack.c.bf16 %v4547_v47, %v4547_v47  ;;  %v4866_v29 = vunpack.c.l.b16 %v5389_v50  ;;  %v4868_v0 = vunpack.c.l.b16 %v5391_v41  ;;  %v1721_v6 = vmax.f32 %v1719_v53, %v1720_v28  ;;  %v6391_v41 = vld [vmem:[%s7191_s2] ss:$0 sm:$0xff] }
 0x1fa   : > { %v5392_v52 = vpack.c.bf16 %v4549_v51, %v4549_v51  ;;  %v1728_v36 = vmax.f32 %v1726_v26, %v1727_v1  ;;  %v1735_v18 = vmax.f32 %v1733_v11, %v1734_v37  ;;  %v1741_v20 = vrot.slane %v1740_v62, 4 }
 0x1fb   : > { %v4867_v8 = vunpack.c.l.b16 %v5390_v63  ;;  %v4927_v61 = vsel %vm2613_vm4, %v4866_v29, %v6318_v34  ;;  %v1722_v21 = vrot.slane %v1721_v6, 2  ;;  %v3196_v58 = vcombine.high %v2856_v45, %v2856_v45 }
 0x1fc   : > { %v4869_v10 = vunpack.c.l.b16 %v5392_v52  ;;  %v1729_v31 = vrot.slane %v1728_v36, 2  ;;  %v1736_v33 = vrot.slane %v1735_v18, 2  ;;  %v1742_v13 = vmax.f32 %v1740_v62, %v1741_v20  ;;  %v6400_v62 = vld [vmem:[%s7191_s2 + $0x1] ss:$0 sm:$0xff] }
 0x1fd   : > { %v4928_v25 = vsel %vm2615_vm5, %v4867_v8, %v4927_v61  ;;  %v1723_v24 = vmax.f32 %v1721_v6, %v1722_v21  ;;  %v3203_v35 = vrot.slane %v2856_v45, %v5791_v38  ;;  %v3210_v42 = vrot.slane %v3196_v58, %v5791_v38 }
 0x1fe   : > { %v4929_v9 = vsel %vm2617_vm6, %v4868_v0, %v4928_v25  ;;  %v1730_v57 = vmax.f32 %v1728_v36, %v1729_v31  ;;  %v1737_v4 = vmax.f32 %v1735_v18, %v1736_v33  ;;  %v1743_v22 = vrot.slane %v1742_v13, 2 }
 0x1ff   : > { %v4930_v34 = vsel %vm2619_vm7, %v4869_v10, %v4929_v9  ;;  %v1724_v30 = vrot.slane %v1723_v24, 1  ;;  %v3211_v55 = vcombine.high %v3203_v35, %v3203_v35  ;;  %v3212_v54 = vcombine.high %v3210_v42, %v3210_v42 }
 0x200   : > { %v4968_v44 = vpack.c.b16 %v4930_v34, %v4930_v34  ;;  %v1731_v43 = vrot.slane %v1730_v57, 1  ;;  %v1738_v59 = vrot.slane %v1737_v4, 1  ;;  %v1744_v12 = vmax.f32 %v1742_v13, %v1743_v22 }
 0x201   : > { %v6375_v19 = vmax.f32 %v1723_v24, %v1724_v30  ;;  %v4022_v45 = vsel %vm1326_vm0, %v3203_v35, -inf  ;;  %v4029_v3 = vsel %vm1326_vm0, %v3211_v55, -inf  ;;  %v4036_v60 = vsel %vm1326_vm0, %v3210_v42, -inf }
 0x202   : > { %4984 = vst [vmem:[%s6027_s21 + $0x8] sm:$0xf] %v4968_v44  ;;  %v6383_v5 = vmax.f32 %v1730_v57, %v1731_v43  ;;  %v6385_v46 = vmax.f32 %v1737_v4, %v1738_v59  ;;  %v1745_v53 = vrot.slane %v1744_v12, 1  ;;  %v4023_v26 = vrot.slane %v4022_v45, 4 }
 0x203   : > { %v4030_v11 = vrot.slane %v4029_v3, 4  ;;  %v4037_v47 = vrot.slane %v4036_v60, 4  ;;  %v4043_v50 = vsel %vm1326_vm0, %v3212_v54, -inf  ;;  %v544_v28 = vadd.f32 %v6391_v41, %v6116_v7 }
 0x204   : > { %v6395_v51 = vmax.f32 %v1744_v12, %v1745_v53  ;;  %v4024_v1 = vmax.f32 %v4022_v45, %v4023_v26  ;;  %v4044_v37 = vrot.slane %v4043_v50, 4  ;;  %v2848_v63 = vadd.f32 %v6400_v62, %v6132_v39 }
 0x205   : > { %v4031_v29 = vmax.f32 %v4029_v3, %v4030_v11  ;;  %v4038_v0 = vmax.f32 %v4036_v60, %v4037_v47  ;;  %v858_v6 = vcombine.high %v544_v28, %v544_v28  ;;  %v865_v52 = vrot.slane %v544_v28, %v5791_v38 }
 0x206   : > { %v4025_v36 = vrot.slane %v4024_v1, 2  ;;  %v4045_v18 = vmax.f32 %v4043_v50, %v4044_v37  ;;  %v3162_v7 = vcombine.high %v2848_v63, %v2848_v63  ;;  %v3169_v20 = vrot.slane %v2848_v63, %v5791_v38 }
 0x207   : > { %v4032_v8 = vrot.slane %v4031_v29, 2  ;;  %v4039_v61 = vrot.slane %v4038_v0, 2  ;;  %v872_v21 = vrot.slane %v858_v6, %v5791_v38  ;;  %v873_v58 = vcombine.high %v865_v52, %v865_v52 }
 0x208   : > { %v4026_v10 = vmax.f32 %v4024_v1, %v4025_v36  ;;  %v4046_v31 = vrot.slane %v4045_v18, 2  ;;  %v1663_v33 = vsel %vm1326_vm0, %v865_v52, -inf  ;;  %v3176_v39 = vrot.slane %v3162_v7, %v5791_v38  ;;  %v6422_v52 = vpop.f32.mrb[20].mxu0 }
 0x209   : > { %v4033_v13 = vmax.f32 %v4031_v29, %v4032_v8  ;;  %v4040_v25 = vmax.f32 %v4038_v0, %v4039_v61  ;;  %v874_v24 = vcombine.high %v872_v21, %v872_v21  ;;  %v1664_v35 = vrot.slane %v1663_v33, 4 }
 0x20a   : > { %v4027_v42 = vrot.slane %v4026_v10, 1  ;;  %v4047_v9 = vmax.f32 %v4045_v18, %v4046_v31  ;;  %v1670_v57 = vsel %vm1326_vm0, %v873_v58, -inf  ;;  %v1677_v4 = vsel %vm1326_vm0, %v872_v21, -inf }
 0x20b   : > { %v4034_v22 = vrot.slane %v4033_v13, 1  ;;  %v4041_v34 = vrot.slane %v4040_v25, 1  ;;  %v1665_v30 = vmax.f32 %v1663_v33, %v1664_v35  ;;  %v1671_v55 = vrot.slane %v1670_v57, 4 }
 0x20c   : > { %v6411_v54 = vmax.f32 %v4026_v10, %v4027_v42  ;;  %v4048_v44 = vrot.slane %v4047_v9, 1  ;;  %v1678_v43 = vrot.slane %v1677_v4, 4  ;;  %v1684_v59 = vsel %vm1326_vm0, %v874_v24, -inf }
 0x20d   : > { %v6414_v12 = vmax.f32 %v4033_v13, %v4034_v22  ;;  %v6416_v45 = vmax.f32 %v4040_v25, %v4041_v34  ;;  %v1666_v3 = vrot.slane %v1665_v30, 2  ;;  %v1672_v60 = vmax.f32 %v1670_v57, %v1671_v55 }
 0x20e   : > { %v6418_v53 = vmax.f32 %v4047_v9, %v4048_v44  ;;  %v1679_v26 = vmax.f32 %v1677_v4, %v1678_v43  ;;  %v1685_v11 = vrot.slane %v1684_v59, 4  ;;  %v3177_v47 = vcombine.high %v3169_v20, %v3169_v20 }
 0x20f   : > { %v1667_v50 = vmax.f32 %v1665_v30, %v1666_v3  ;;  %v1673_v28 = vrot.slane %v1672_v60, 2  ;;  %v3178_v1 = vcombine.high %v3176_v39, %v3176_v39  ;;  %v3966_v37 = vsel %vm1326_vm0, %v3169_v20, -inf }
 0x210   : > { %v1680_v63 = vrot.slane %v1679_v26, 2  ;;  %v1686_v29 = vmax.f32 %v1684_v59, %v1685_v11  ;;  %v3967_v0 = vrot.slane %v3966_v37, 4  ;;  %v3973_v6 = vsel %vm1326_vm0, %v3177_v47, -inf }
 0x211   : > { %v1668_v36 = vrot.slane %v1667_v50, 1  ;;  %v1674_v18 = vmax.f32 %v1672_v60, %v1673_v28  ;;  %v3974_v7 = vrot.slane %v3973_v6, 4  ;;  %v3980_v8 = vsel %vm1326_vm0, %v3176_v39, -inf }
 0x212   : > { %v1681_v61 = vmax.f32 %v1679_v26, %v1680_v63  ;;  %v1687_v21 = vrot.slane %v1686_v29, 2  ;;  %v3968_v58 = vmax.f32 %v3966_v37, %v3967_v0  ;;  %v3981_v10 = vrot.slane %v3980_v8, 4 }
 0x213   : > { %v1669_v31 = vmax.f32 %v1667_v50, %v1668_v36  ;;  %v1675_v33 = vrot.slane %v1674_v18, 1  ;;  %v3975_v13 = vmax.f32 %v3973_v6, %v3974_v7  ;;  %v3987_v20 = vsel %vm1326_vm0, %v3178_v1, -inf  ;;  %v6429_v50 = vpop.f32.mrb[20].mxu1 }
 0x214   : > { %v1682_v25 = vrot.slane %v1681_v61, 1  ;;  %v1688_v24 = vmax.f32 %v1686_v29, %v1687_v21  ;;  %v3969_v35 = vrot.slane %v3968_v58, 2  ;;  %v3982_v42 = vmax.f32 %v3980_v8, %v3981_v10 }
 0x215   : > { %v1676_v9 = vmax.f32 %v1674_v18, %v1675_v33  ;;  %v2247_v57 = vmax.f32 %v1669_v31, %v6375_v19  ;;  %v3976_v4 = vrot.slane %v3975_v13, 2  ;;  %v3988_v22 = vrot.slane %v3987_v20, 4 }
 0x216   : > { %v1683_v34 = vmax.f32 %v1681_v61, %v1682_v25  ;;  %v1689_v39 = vrot.slane %v1688_v24, 1  ;;  %v3970_v30 = vmax.f32 %v3968_v58, %v3969_v35  ;;  %v3983_v55 = vrot.slane %v3982_v42, 2 }
 0x217   : > { %v2248_v44 = vmax.f32 %v1676_v9, %v6383_v5  ;;  %v5329_v43 = vpack.c.bf16 %v2247_v57, %v2247_v57  ;;  %v3977_v59 = vmax.f32 %v3975_v13, %v3976_v4  ;;  %v3989_v3 = vmax.f32 %v3987_v20, %v3988_v22 }
 0x218   : > { %v1690_v60 = vmax.f32 %v1688_v24, %v1689_v39  ;;  %v2249_v26 = vmax.f32 %v1683_v34, %v6385_v46  ;;  %v3971_v11 = vrot.slane %v3970_v30, 1  ;;  %v3984_v47 = vmax.f32 %v3982_v42, %v3983_v55 }
 0x219   : > { %v5330_v28 = vpack.c.bf16 %v2248_v44, %v2248_v44  ;;  %v2567_v19 = vunpack.c.l.b16 %v5329_v43  ;;  %v3978_v1 = vrot.slane %v3977_v59, 1  ;;  %v3990_v37 = vrot.slane %v3989_v3, 2 }
 0x21a   : > { %v2250_v63 = vmax.f32 %v1690_v60, %v6395_v51  ;;  %v5331_v29 = vpack.c.bf16 %v2249_v26, %v2249_v26  ;;  %v3972_v0 = vmax.f32 %v3970_v30, %v3971_v11  ;;  %v3985_v6 = vrot.slane %v3984_v47, 1 }
 0x21b   : > { %v2568_v5 = vunpack.c.l.b16 %v5330_v28  ;;  %v3979_v36 = vmax.f32 %v3977_v59, %v3978_v1  ;;  %v3991_v18 = vmax.f32 %v3989_v3, %v3990_v37  ;;  %v555_v7 = vadd.f32 %v6391_v41, %v6155_v17  ;;  %v6463_v1 = vpop.f32.mrb[21].mxu0 }
 0x21c   : > { %v5332_v46 = vpack.c.bf16 %v2250_v63, %v2250_v63  ;;  %v2569_v8 = vunpack.c.l.b16 %v5331_v29  ;;  %v3986_v61 = vmax.f32 %v3984_v47, %v3985_v6  ;;  %v4550_v21 = vmax.f32 %v3972_v0, %v6411_v54 }
 0x21d   : > { %v2635_v58 = vsel %vm2607_vm1, %v2568_v5, %v2567_v19  ;;  %v3992_v10 = vrot.slane %v3991_v18, 1  ;;  %v4551_v31 = vmax.f32 %v3979_v36, %v6414_v12  ;;  %v909_v51 = vcombine.high %v555_v7, %v555_v7 }
 0x21e   : > { %v6437_v33 = vunpack.c.l.b16 %v5332_v46  ;;  %v6440_v13 = vsel %vm2609_vm2, %v2569_v8, %v2635_v58  ;;  %v4552_v20 = vmax.f32 %v3986_v61, %v6416_v45  ;;  %v5393_v25 = vpack.c.bf16 %v4550_v21, %v4550_v21 }
 0x21f   : > { %v3993_v17 = vmax.f32 %v3991_v18, %v3992_v10  ;;  %v5394_v24 = vpack.c.bf16 %v4551_v31, %v4551_v31  ;;  %v916_v35 = vrot.slane %v555_v7, %v5791_v38  ;;  %v923_v54 = vrot.slane %v909_v51, %v5791_v38  ;;  %v6471_v51 = vpop.f32.mrb[21].mxu1 }
 0x220   : > { %v5395_v42 = vpack.c.bf16 %v4552_v20, %v4552_v20  ;;  %v4870_v9 = vunpack.c.l.b16 %v5393_v25  ;;  %v2859_v12 = vadd.f32 %v6400_v62, %v6188_v48  ;;  %v6449_v57 = vadd.f32 %v6391_v41, %v6207_v23 }
 0x221   : > { %v4553_v4 = vmax.f32 %v3993_v17, %v6418_v53  ;;  %v4871_v22 = vunpack.c.l.b16 %v5394_v24  ;;  %v924_v45 = vcombine.high %v916_v35, %v916_v35  ;;  %v925_v34 = vcombine.high %v923_v54, %v923_v54 }
 0x222   : > { %v4872_v39 = vunpack.c.l.b16 %v5395_v42  ;;  %v1747_v30 = vsel %vm1326_vm0, %v916_v35, -inf  ;;  %v1761_v55 = vsel %vm1326_vm0, %v923_v54, -inf  ;;  %v3213_v44 = vcombine.high %v2859_v12, %v2859_v12 }
 0x223   : > { %v5396_v43 = vpack.c.bf16 %v4553_v4, %v4553_v4  ;;  %v4931_v59 = vsel %vm2607_vm1, %v4871_v22, %v4870_v9  ;;  %v1748_v3 = vrot.slane %v1747_v30, 4  ;;  %v1754_v48 = vsel %vm1326_vm0, %v924_v45, -inf }
 0x224   : > { %v6457_v23 = vsel %vm2609_vm2, %v4872_v39, %v4931_v59  ;;  %v1755_v60 = vrot.slane %v1754_v48, 4  ;;  %v1762_v53 = vrot.slane %v1761_v55, 4  ;;  %v1768_v26 = vsel %vm1326_vm0, %v925_v34, -inf }
 0x225   : > { %v6460_v11 = vunpack.c.l.b16 %v5396_v43  ;;  %v1749_v47 = vmax.f32 %v1747_v30, %v1748_v3  ;;  %v1769_v28 = vrot.slane %v1768_v26, 4  ;;  %v3220_v19 = vrot.slane %v2859_v12, %v5791_v38 }
 0x226   : > { %v1756_v37 = vmax.f32 %v1754_v48, %v1755_v60  ;;  %v1763_v63 = vmax.f32 %v1761_v55, %v1762_v53  ;;  %v3227_v29 = vrot.slane %v3213_v44, %v5791_v38  ;;  %v875_v0 = vcombine.high %v6449_v57, %v6449_v57 }
 0x227   : > { %v1750_v6 = vrot.slane %v1749_v47, 2  ;;  %v1770_v5 = vmax.f32 %v1768_v26, %v1769_v28  ;;  %v3228_v36 = vcombine.high %v3220_v19, %v3220_v19  ;;  %v4050_v18 = vsel %vm1326_vm0, %v3220_v19, -inf }
 0x228   : > { %v1757_v7 = vrot.slane %v1756_v37, 2  ;;  %v1764_v46 = vrot.slane %v1763_v63, 2  ;;  %v3229_v8 = vcombine.high %v3227_v29, %v3227_v29  ;;  %v4051_v61 = vrot.slane %v4050_v18, 4 }
 0x229   : > { %v1751_v21 = vmax.f32 %v1749_v47, %v1750_v6  ;;  %v1771_v58 = vrot.slane %v1770_v5, 2  ;;  %v4057_v10 = vsel %vm1326_vm0, %v3228_v36, -inf  ;;  %v4064_v31 = vsel %vm1326_vm0, %v3227_v29, -inf }
 0x22a   : > { %v1758_v20 = vmax.f32 %v1756_v37, %v1757_v7  ;;  %v1765_v25 = vmax.f32 %v1763_v63, %v1764_v46  ;;  %v4052_v17 = vmax.f32 %v4050_v18, %v4051_v61  ;;  %v4058_v24 = vrot.slane %v4057_v10, 4 }
 0x22b   : > { %v1752_v35 = vrot.slane %v1751_v21, 1  ;;  %v1772_v54 = vmax.f32 %v1770_v5, %v1771_v58  ;;  %v4065_v42 = vrot.slane %v4064_v31, 4  ;;  %v4071_v9 = vsel %vm1326_vm0, %v3229_v8, -inf }
 0x22c   : > { %v1759_v12 = vrot.slane %v1758_v20, 1  ;;  %v1766_v4 = vrot.slane %v1765_v25, 1  ;;  %v4053_v22 = vrot.slane %v4052_v17, 2  ;;  %v4059_v45 = vmax.f32 %v4057_v10, %v4058_v24 }
 0x22d   : > { %v6474_v34 = vmax.f32 %v1751_v21, %v1752_v35  ;;  %v1773_v39 = vrot.slane %v1772_v54, 1  ;;  %v4066_v30 = vmax.f32 %v4064_v31, %v4065_v42  ;;  %v4072_v55 = vrot.slane %v4071_v9, 4 }
 0x22e   : > { %v6476_v44 = vmax.f32 %v1758_v20, %v1759_v12  ;;  %v6478_v43 = vmax.f32 %v1765_v25, %v1766_v4  ;;  %v4054_v59 = vmax.f32 %v4052_v17, %v4053_v22  ;;  %v4060_v3 = vrot.slane %v4059_v45, 2 }
 0x22f   : > { %v6480_v48 = vmax.f32 %v1772_v54, %v1773_v39  ;;  %v4067_v60 = vrot.slane %v4066_v30, 2  ;;  %v4073_v53 = vmax.f32 %v4071_v9, %v4072_v55  ;;  %v882_v26 = vrot.slane %v6449_v57, %v5791_v38  ;;  %v6510_v55 = vpop.f32.mrb[22].mxu0 }
 0x230   : > { %v4055_v47 = vrot.slane %v4054_v59, 1  ;;  %v4061_v28 = vmax.f32 %v4059_v45, %v4060_v3  ;;  %v889_v19 = vrot.slane %v875_v0, %v5791_v38  ;;  %v6488_v37 = vsel %vm2611_vm3, %v6437_v33, %v6440_v13 }
 0x231   : > { %v4068_v63 = vmax.f32 %v4066_v30, %v4067_v60  ;;  %v4074_v29 = vrot.slane %v4073_v53, 2  ;;  %v890_v6 = vcombine.high %v882_v26, %v882_v26  ;;  %v1691_v5 = vsel %vm1326_vm0, %v882_v26, -inf }
 0x232   : > { %v6491_v36 = vmax.f32 %v4054_v59, %v4055_v47  ;;  %v4062_v18 = vrot.slane %v4061_v28, 1  ;;  %v891_v7 = vcombine.high %v889_v19, %v889_v19  ;;  %v1692_v46 = vrot.slane %v1691_v5, 4 }
 0x233   : > { %v4069_v57 = vrot.slane %v4068_v63, 1  ;;  %v4075_v8 = vmax.f32 %v4073_v53, %v4074_v29  ;;  %v1698_v61 = vsel %vm1326_vm0, %v890_v6, -inf  ;;  %v1705_v0 = vsel %vm1326_vm0, %v889_v19, -inf }
 0x234   : > { %v6495_v21 = vmax.f32 %v4061_v28, %v4062_v18  ;;  %v1693_v33 = vmax.f32 %v1691_v5, %v1692_v46  ;;  %v1699_v13 = vrot.slane %v1698_v61, 4  ;;  %v1706_v58 = vrot.slane %v1705_v0, 4 }
 0x235   : > { %v6497_v10 = vmax.f32 %v4068_v63, %v4069_v57  ;;  %v4076_v31 = vrot.slane %v4075_v8, 1  ;;  %v1712_v20 = vsel %vm1326_vm0, %v891_v7, -inf  ;;  %v2851_v25 = vadd.f32 %v6400_v62, %v6223_v32 }
 0x236   : > { %v1694_v17 = vrot.slane %v1693_v33, 2  ;;  %v1700_v24 = vmax.f32 %v1698_v61, %v1699_v13  ;;  %v1707_v35 = vmax.f32 %v1705_v0, %v1706_v58  ;;  %v1713_v54 = vrot.slane %v1712_v20, 4 }
 0x237   : > { %v6502_v42 = vmax.f32 %v4075_v8, %v4076_v31  ;;  %v3179_v9 = vcombine.high %v2851_v25, %v2851_v25  ;;  %v3186_v12 = vrot.slane %v2851_v25, %v5791_v38  ;;  %v6508_v4 = vsel %vm2611_vm3, %v6460_v11, %v6457_v23 }
 0x238   : > { %v1695_v22 = vmax.f32 %v1693_v33, %v1694_v17  ;;  %v1701_v45 = vrot.slane %v1700_v24, 2  ;;  %v1708_v39 = vrot.slane %v1707_v35, 2  ;;  %v1714_v30 = vmax.f32 %v1712_v20, %v1713_v54 }
 0x239   : > { %v3193_v32 = vrot.slane %v3179_v9, %v5791_v38  ;;  %v3194_v59 = vcombine.high %v3186_v12, %v3186_v12  ;;  %v3994_v3 = vsel %vm1326_vm0, %v3186_v12, -inf  ;;  %v568_v60 = vadd.f32 %v6391_v41, %v6250_v27 }
 0x23a   : > { %v1696_v53 = vrot.slane %v1695_v22, 1  ;;  %v1702_v26 = vmax.f32 %v1700_v24, %v1701_v45  ;;  %v1709_v47 = vmax.f32 %v1707_v35, %v1708_v39  ;;  %v1715_v28 = vrot.slane %v1714_v30, 2  ;;  %v6522_v45 = vpop.f32.mrb[22].mxu1 }
 0x23b   : > { %v3195_v23 = vcombine.high %v3193_v32, %v3193_v32  ;;  %v3995_v11 = vrot.slane %v3994_v3, 4  ;;  %v4001_v19 = vsel %vm1326_vm0, %v3194_v59, -inf  ;;  %v4008_v63 = vsel %vm1326_vm0, %v3193_v32, -inf }
 0x23c   : > { %v1697_v29 = vmax.f32 %v1695_v22, %v1696_v53  ;;  %v1703_v6 = vrot.slane %v1702_v26, 1  ;;  %v1710_v5 = vrot.slane %v1709_v47, 1  ;;  %v1716_v18 = vmax.f32 %v1714_v30, %v1715_v28 }
 0x23d   : > { %v3996_v7 = vmax.f32 %v3994_v3, %v3995_v11  ;;  %v4002_v46 = vrot.slane %v4001_v19, 4  ;;  %v4009_v57 = vrot.slane %v4008_v63, 4  ;;  %v4015_v8 = vsel %vm1326_vm0, %v3195_v23, -inf }
 0x23e   : > { %v1704_v27 = vmax.f32 %v1702_v26, %v1703_v6  ;;  %v1711_v61 = vmax.f32 %v1709_v47, %v1710_v5  ;;  %v1717_v0 = vrot.slane %v1716_v18, 1  ;;  %v2251_v33 = vmax.f32 %v1697_v29, %v6474_v34 }
 0x23f   : > { %v3997_v13 = vrot.slane %v3996_v7, 2  ;;  %v4003_v58 = vmax.f32 %v4001_v19, %v4002_v46  ;;  %v4010_v31 = vmax.f32 %v4008_v63, %v4009_v57  ;;  %v4016_v20 = vrot.slane %v4015_v8, 4 }
 0x240   : > { %v1718_v25 = vmax.f32 %v1716_v18, %v1717_v0  ;;  %v2252_v17 = vmax.f32 %v1704_v27, %v6476_v44  ;;  %v2253_v24 = vmax.f32 %v1711_v61, %v6478_v43  ;;  %v5333_v35 = vpack.c.bf16 %v2251_v33, %v2251_v33 }
 0x241   : > { %v3998_v54 = vmax.f32 %v3996_v7, %v3997_v13  ;;  %v4004_v9 = vrot.slane %v4003_v58, 2  ;;  %v4011_v12 = vrot.slane %v4010_v31, 2  ;;  %v4017_v22 = vmax.f32 %v4015_v8, %v4016_v20 }
 0x242   : > { %v2254_v39 = vmax.f32 %v1718_v25, %v6480_v48  ;;  %v5334_v30 = vpack.c.bf16 %v2252_v17, %v2252_v17  ;;  %v5335_v34 = vpack.c.bf16 %v2253_v24, %v2253_v24  ;;  %v2571_v32 = vunpack.c.l.b16 %v5333_v35 }
 0x243   : > { %v3999_v59 = vrot.slane %v3998_v54, 1  ;;  %v4005_v3 = vmax.f32 %v4003_v58, %v4004_v9  ;;  %v4012_v53 = vmax.f32 %v4010_v31, %v4011_v12  ;;  %v4018_v26 = vrot.slane %v4017_v22, 2 }
 0x244   : > { %v5336_v47 = vpack.c.bf16 %v2254_v39, %v2254_v39  ;;  %v2572_v44 = vunpack.c.l.b16 %v5334_v30  ;;  %v2573_v28 = vunpack.c.l.b16 %v5335_v34  ;;  %v2638_v43 = vsel %vm2613_vm4, %v2571_v32, %v6488_v37 }
 0x245   : > { %v4000_v23 = vmax.f32 %v3998_v54, %v3999_v59  ;;  %v4006_v11 = vrot.slane %v4005_v3, 1  ;;  %v4013_v19 = vrot.slane %v4012_v53, 1  ;;  %v4019_v63 = vmax.f32 %v4017_v22, %v4018_v26 }
 0x246   : > { %v2574_v29 = vunpack.c.l.b16 %v5336_v47  ;;  %v2639_v48 = vsel %vm2615_vm5, %v2572_v44, %v2638_v43  ;;  %v960_v6 = vcombine.high %v568_v60, %v568_v60  ;;  %v967_v5 = vrot.slane %v568_v60, %v5791_v38 }
 0x247   : > { %v2640_v18 = vsel %vm2617_vm6, %v2573_v28, %v2639_v48  ;;  %v4007_v7 = vmax.f32 %v4005_v3, %v4006_v11  ;;  %v4014_v46 = vmax.f32 %v4012_v53, %v4013_v19  ;;  %v4020_v57 = vrot.slane %v4019_v63, 1 }
 0x248   : > { %v2641_v8 = vsel %vm2619_vm7, %v2574_v29, %v2640_v18  ;;  %v4554_v37 = vmax.f32 %v4000_v23, %v6491_v36  ;;  %v974_v27 = vrot.slane %v960_v6, %v5791_v38  ;;  %v975_v61 = vcombine.high %v967_v5, %v967_v5 }
 0x249   : > { %v2673_v0 = vpack.c.b16 %v2641_v8, %v2641_v8  ;;  %v4021_v33 = vmax.f32 %v4019_v63, %v4020_v57  ;;  %v4555_v13 = vmax.f32 %v4007_v7, %v6495_v21  ;;  %v4556_v58 = vmax.f32 %v4014_v46, %v6497_v10 }
 0x24a   : > { %v5397_v60 = vpack.c.bf16 %v4554_v37, %v4554_v37  ;;  %v976_v31 = vcombine.high %v974_v27, %v974_v27  ;;  %v1831_v20 = vsel %vm1326_vm0, %v967_v5, -inf  ;;  %v1838_v25 = vsel %vm1326_vm0, %v975_v61, -inf }
 0x24b   : > { %2689 = vst [vmem:[%s6001_s14 + $0xc] sm:$0xf] %v2673_v0  ;;  %v4557_v17 = vmax.f32 %v4021_v33, %v6502_v42  ;;  %v5398_v24 = vpack.c.bf16 %v4555_v13, %v4555_v13  ;;  %v5399_v36 = vpack.c.bf16 %v4556_v58, %v4556_v58  ;;  %v1832_v35 = vrot.slane %v1831_v20, 4  ;;  %v6543_v42 = vpop.f32.mrb[23].mxu0  ;;  %v6554_v0 = vpop.f32.mrb[23].mxu1 }
 0x24c   : > { %v4874_v54 = vunpack.c.l.b16 %v5397_v60  ;;  %v1839_v9 = vrot.slane %v1838_v25, 4  ;;  %v1845_v12 = vsel %vm1326_vm0, %v974_v27, -inf  ;;  %v1852_v21 = vsel %vm1326_vm0, %v976_v31, -inf }
 0x24d   : > { %v5400_v22 = vpack.c.bf16 %v4557_v17, %v4557_v17  ;;  %v4875_v10 = vunpack.c.l.b16 %v5398_v24  ;;  %v4876_v39 = vunpack.c.l.b16 %v5399_v36  ;;  %v1833_v30 = vmax.f32 %v1831_v20, %v1832_v35 }
 0x24e   : > { %v4934_v34 = vsel %vm2613_vm4, %v4874_v54, %v6508_v4  ;;  %v1840_v32 = vmax.f32 %v1838_v25, %v1839_v9  ;;  %v1846_v59 = vrot.slane %v1845_v12, 4  ;;  %v1853_v3 = vrot.slane %v1852_v21, 4 }
 0x24f   : > { %v4877_v53 = vunpack.c.l.b16 %v5400_v22  ;;  %v4935_v26 = vsel %vm2615_vm5, %v4875_v10, %v4934_v34  ;;  %v1834_v47 = vrot.slane %v1833_v30, 2  ;;  %v2872_v44 = vadd.f32 %v6400_v62, %v6269_v49 }
 0x250   : > { %v4936_v28 = vsel %vm2617_vm6, %v4876_v39, %v4935_v26  ;;  %v1841_v43 = vrot.slane %v1840_v32, 2  ;;  %v1847_v23 = vmax.f32 %v1845_v12, %v1846_v59  ;;  %v1854_v11 = vmax.f32 %v1852_v21, %v1853_v3 }
 0x251   : > { %v4937_v4 = vsel %vm2619_vm7, %v4877_v53, %v4936_v28  ;;  %v1835_v19 = vmax.f32 %v1833_v30, %v1834_v47  ;;  %v3264_v63 = vcombine.high %v2872_v44, %v2872_v44  ;;  %v3271_v29 = vrot.slane %v2872_v44, %v5791_v38 }
 0x252   : > { %v4969_v48 = vpack.c.b16 %v4937_v4, %v4937_v4  ;;  %v1842_v6 = vmax.f32 %v1840_v32, %v1841_v43  ;;  %v1848_v5 = vrot.slane %v1847_v23, 2  ;;  %v1855_v18 = vrot.slane %v1854_v11, 2 }
 0x253   : > { %v1836_v7 = vrot.slane %v1835_v19, 1  ;;  %v3278_v46 = vrot.slane %v3264_v63, %v5791_v38  ;;  %v3279_v49 = vcombine.high %v3271_v29, %v3271_v29  ;;  %v4134_v57 = vsel %vm1326_vm0, %v3271_v29, -inf }
 0x254   : > { %4985 = vst [vmem:[%s6027_s21 + $0xc] sm:$0xf] %v4969_v48  ;;  %v1843_v8 = vrot.slane %v1842_v6, 1  ;;  %v1849_v37 = vmax.f32 %v1847_v23, %v1848_v5  ;;  %v1856_v27 = vmax.f32 %v1854_v11, %v1855_v18  ;;  %v4135_v61 = vrot.slane %v4134_v57, 4 }
 0x255   : > { %v6556_v33 = vmax.f32 %v1835_v19, %v1836_v7  ;;  %v3280_v13 = vcombine.high %v3278_v46, %v3278_v46  ;;  %v4141_v58 = vsel %vm1326_vm0, %v3279_v49, -inf  ;;  %v4148_v60 = vsel %vm1326_vm0, %v3278_v46, -inf }
 0x256   : > { %v6560_v31 = vmax.f32 %v1842_v6, %v1843_v8  ;;  %v1850_v20 = vrot.slane %v1849_v37, 1  ;;  %v1857_v25 = vrot.slane %v1856_v27, 1  ;;  %v4136_v17 = vmax.f32 %v4134_v57, %v4135_v61 }
 0x257   : > { %v4142_v24 = vrot.slane %v4141_v58, 4  ;;  %v4149_v36 = vrot.slane %v4148_v60, 4  ;;  %v4155_v35 = vsel %vm1326_vm0, %v3280_v13, -inf  ;;  %v560_v54 = vadd.f32 %v6391_v41, %v6283_v15 }
 0x258   : > { %v6565_v9 = vmax.f32 %v1849_v37, %v1850_v20  ;;  %v6567_v12 = vmax.f32 %v1856_v27, %v1857_v25  ;;  %v4137_v21 = vrot.slane %v4136_v17, 2  ;;  %v4156_v22 = vrot.slane %v4155_v35, 4 }
 0x259   : > { %v4143_v10 = vmax.f32 %v4141_v58, %v4142_v24  ;;  %v4150_v39 = vmax.f32 %v4148_v60, %v4149_v36  ;;  %v926_v30 = vcombine.high %v560_v54, %v560_v54  ;;  %v933_v34 = vrot.slane %v560_v54, %v5791_v38 }
 0x25a   : > { %v4138_v32 = vmax.f32 %v4136_v17, %v4137_v21  ;;  %v4157_v59 = vmax.f32 %v4155_v35, %v4156_v22  ;;  %v2864_v3 = vadd.f32 %v6400_v62, %v6310_v14  ;;  %v6574_v53 = vadd.f32 %v6391_v41, %v6324_v16 }
 0x25b   : > { %v4144_v15 = vrot.slane %v4143_v10, 2  ;;  %v4151_v26 = vrot.slane %v4150_v39, 2  ;;  %v940_v47 = vrot.slane %v926_v30, %v5791_v38  ;;  %v941_v44 = vcombine.high %v933_v34, %v933_v34  ;;  %v6592_v30 = vpop.f32.mrb[24].mxu0 }
 0x25c   : > { %v4139_v28 = vrot.slane %v4138_v32, 1  ;;  %v4158_v43 = vrot.slane %v4157_v59, 2  ;;  %v1775_v23 = vsel %vm1326_vm0, %v933_v34, -inf  ;;  %v3230_v11 = vcombine.high %v2864_v3, %v2864_v3 }
 0x25d   : > { %v4145_v4 = vmax.f32 %v4143_v10, %v4144_v15  ;;  %v4152_v19 = vmax.f32 %v4150_v39, %v4151_v26  ;;  %v942_v63 = vcombine.high %v940_v47, %v940_v47  ;;  %v1776_v29 = vrot.slane %v1775_v23, 4 }
 0x25e   : > { %v6578_v48 = vmax.f32 %v4138_v32, %v4139_v28  ;;  %v4159_v14 = vmax.f32 %v4157_v59, %v4158_v43  ;;  %v1782_v16 = vsel %vm1326_vm0, %v941_v44, -inf  ;;  %v1789_v6 = vsel %vm1326_vm0, %v940_v47, -inf }
 0x25f   : > { %v4146_v5 = vrot.slane %v4145_v4, 1  ;;  %v4153_v18 = vrot.slane %v4152_v19, 1  ;;  %v1777_v7 = vmax.f32 %v1775_v23, %v1776_v29  ;;  %v1783_v46 = vrot.slane %v1782_v16, 4 }
 0x260   : > { %v4160_v49 = vrot.slane %v4159_v14, 1  ;;  %v1790_v57 = vrot.slane %v1789_v6, 4  ;;  %v1796_v8 = vsel %vm1326_vm0, %v942_v63, -inf  ;;  %v3237_v37 = vrot.slane %v2864_v3, %v5791_v38 }
 0x261   : > { %v6584_v27 = vmax.f32 %v4145_v4, %v4146_v5  ;;  %v6586_v61 = vmax.f32 %v4152_v19, %v4153_v18  ;;  %v1778_v13 = vrot.slane %v1777_v7, 2  ;;  %v1784_v58 = vmax.f32 %v1782_v16, %v1783_v46 }
 0x262   : > { %v6588_v60 = vmax.f32 %v4159_v14, %v4160_v49  ;;  %v1791_v20 = vmax.f32 %v1789_v6, %v1790_v57  ;;  %v1797_v25 = vrot.slane %v1796_v8, 4  ;;  %v3244_v17 = vrot.slane %v3230_v11, %v5791_v38 }
 0x263   : > { %v1779_v24 = vmax.f32 %v1777_v7, %v1778_v13  ;;  %v1785_v36 = vrot.slane %v1784_v58, 2  ;;  %v3245_v35 = vcombine.high %v3237_v37, %v3237_v37  ;;  %v4078_v54 = vsel %vm1326_vm0, %v3237_v37, -inf }
 0x264   : > { %v1792_v21 = vrot.slane %v1791_v20, 2  ;;  %v1798_v22 = vmax.f32 %v1796_v8, %v1797_v25  ;;  %v3246_v10 = vcombine.high %v3244_v17, %v3244_v17  ;;  %v4079_v39 = vrot.slane %v4078_v54, 4 }
 0x265   : > { %v1780_v34 = vrot.slane %v1779_v24, 1  ;;  %v1786_v32 = vmax.f32 %v1784_v58, %v1785_v36  ;;  %v4085_v59 = vsel %vm1326_vm0, %v3245_v35, -inf  ;;  %v4092_v3 = vsel %vm1326_vm0, %v3244_v17, -inf }
 0x266   : > { %v1793_v15 = vmax.f32 %v1791_v20, %v1792_v21  ;;  %v1799_v26 = vrot.slane %v1798_v22, 2  ;;  %v4080_v47 = vmax.f32 %v4078_v54, %v4079_v39  ;;  %v4086_v44 = vrot.slane %v4085_v59, 4  ;;  %v6600_v54 = vpop.f32.mrb[24].mxu1 }
 0x267   : > { %v1781_v28 = vmax.f32 %v1779_v24, %v1780_v34  ;;  %v1787_v43 = vrot.slane %v1786_v32, 1  ;;  %v4093_v23 = vrot.slane %v4092_v3, 4  ;;  %v4099_v11 = vsel %vm1326_vm0, %v3246_v10, -inf }
 0x268   : > { %v1794_v4 = vrot.slane %v1793_v15, 1  ;;  %v1800_v19 = vmax.f32 %v1798_v22, %v1799_v26  ;;  %v4081_v63 = vrot.slane %v4080_v47, 2  ;;  %v4087_v29 = vmax.f32 %v4085_v59, %v4086_v44 }
 0x269   : > { %v1788_v14 = vmax.f32 %v1786_v32, %v1787_v43  ;;  %v2255_v16 = vmax.f32 %v1781_v28, %v6556_v33  ;;  %v4094_v6 = vmax.f32 %v4092_v3, %v4093_v23  ;;  %v4100_v5 = vrot.slane %v4099_v11, 4 }
 0x26a   : > { %v1795_v18 = vmax.f32 %v1793_v15, %v1794_v4  ;;  %v1801_v7 = vrot.slane %v1800_v19, 1  ;;  %v4082_v46 = vmax.f32 %v4080_v47, %v4081_v63  ;;  %v4088_v49 = vrot.slane %v4087_v29, 2 }
 0x26b   : > { %v2256_v57 = vmax.f32 %v1788_v14, %v6560_v31  ;;  %v5337_v8 = vpack.c.bf16 %v2255_v16, %v2255_v16  ;;  %v4095_v37 = vrot.slane %v4094_v6, 2  ;;  %v4101_v13 = vmax.f32 %v4099_v11, %v4100_v5 }
 0x26c   : > { %v1802_v58 = vmax.f32 %v1800_v19, %v1801_v7  ;;  %v2257_v20 = vmax.f32 %v1795_v18, %v6565_v9  ;;  %v4083_v25 = vrot.slane %v4082_v46, 1  ;;  %v4089_v17 = vmax.f32 %v4087_v29, %v4088_v49 }
 0x26d   : > { %v5338_v24 = vpack.c.bf16 %v2256_v57, %v2256_v57  ;;  %v2575_v36 = vunpack.c.l.b16 %v5337_v8  ;;  %v4096_v35 = vmax.f32 %v4094_v6, %v4095_v37  ;;  %v4102_v33 = vrot.slane %v4101_v13, 2 }
 0x26e   : > { %v2258_v21 = vmax.f32 %v1802_v58, %v6567_v12  ;;  %v5339_v22 = vpack.c.bf16 %v2257_v20, %v2257_v20  ;;  %v4084_v10 = vmax.f32 %v4082_v46, %v4083_v25  ;;  %v4090_v39 = vrot.slane %v4089_v17, 1 }
 0x26f   : > { %v2576_v31 = vunpack.c.l.b16 %v5338_v24  ;;  %v4097_v34 = vrot.slane %v4096_v35, 1  ;;  %v4103_v32 = vmax.f32 %v4101_v13, %v4102_v33  ;;  %v977_v59 = vcombine.high %v6574_v53, %v6574_v53 }
 0x270   : > { %v5340_v9 = vpack.c.bf16 %v2258_v21, %v2258_v21  ;;  %v2577_v3 = vunpack.c.l.b16 %v5339_v22  ;;  %v4091_v15 = vmax.f32 %v4089_v17, %v4090_v39  ;;  %v4558_v26 = vmax.f32 %v4084_v10, %v6578_v48 }
 0x271   : > { %v2642_v47 = vsel %vm2607_vm1, %v2576_v31, %v2575_v36  ;;  %v4098_v44 = vmax.f32 %v4096_v35, %v4097_v34  ;;  %v4104_v28 = vrot.slane %v4103_v32, 1  ;;  %v984_v12 = vrot.slane %v6574_v53, %v5791_v38  ;;  %v6631_v35 = vpop.f32.mrb[25].mxu0 }
 0x272   : > { %v6609_v43 = vunpack.c.l.b16 %v5340_v9  ;;  %v6612_v23 = vsel %vm2609_vm2, %v2577_v3, %v2642_v47  ;;  %v4559_v11 = vmax.f32 %v4091_v15, %v6584_v27  ;;  %v5401_v4 = vpack.c.bf16 %v4558_v26, %v4558_v26 }
 0x273   : > { %v4105_v19 = vmax.f32 %v4103_v32, %v4104_v28  ;;  %v4560_v63 = vmax.f32 %v4098_v44, %v6586_v61  ;;  %v991_v48 = vrot.slane %v977_v59, %v5791_v38  ;;  %v992_v29 = vcombine.high %v984_v12, %v984_v12 }
 0x274   : > { %v5402_v14 = vpack.c.bf16 %v4559_v11, %v4559_v11  ;;  %v4878_v16 = vunpack.c.l.b16 %v5401_v4  ;;  %v1859_v6 = vsel %vm1326_vm0, %v984_v12, -inf  ;;  %v2875_v53 = vadd.f32 %v6400_v62, %v6348_v40 }
 0x275   : > { %v4561_v5 = vmax.f32 %v4105_v19, %v6588_v60  ;;  %v5403_v18 = vpack.c.bf16 %v4560_v63, %v4560_v63  ;;  %v993_v7 = vcombine.high %v991_v48, %v991_v48  ;;  %v1860_v46 = vrot.slane %v1859_v6, 4 }
 0x276   : > { %v4879_v27 = vunpack.c.l.b16 %v5402_v14  ;;  %v1866_v49 = vsel %vm1326_vm0, %v992_v29, -inf  ;;  %v1873_v61 = vsel %vm1326_vm0, %v991_v48, -inf  ;;  %v3281_v57 = vcombine.high %v2875_v53, %v2875_v53 }
 0x277   : > { %v5404_v8 = vpack.c.bf16 %v4561_v5, %v4561_v5  ;;  %v4880_v37 = vunpack.c.l.b16 %v5403_v18  ;;  %v1861_v13 = vmax.f32 %v1859_v6, %v1860_v46  ;;  %v1867_v58 = vrot.slane %v1866_v49, 4 }
 0x278   : > { %v4938_v20 = vsel %vm2607_vm1, %v4879_v27, %v4878_v16  ;;  %v1874_v25 = vrot.slane %v1873_v61, 4  ;;  %v1880_v40 = vsel %vm1326_vm0, %v993_v7, -inf  ;;  %v3288_v62 = vrot.slane %v2875_v53, %v5791_v38  ;;  %v6642_v53 = vpop.f32.mrb[25].mxu1 }
 0x279   : > { %v6626_v60 = vunpack.c.l.b16 %v5404_v8  ;;  %v6629_v17 = vsel %vm2609_vm2, %v4880_v37, %v4938_v20  ;;  %v1862_v24 = vrot.slane %v1861_v13, 2  ;;  %v1868_v36 = vmax.f32 %v1866_v49, %v1867_v58 }
 0x27a   : > { %v1875_v33 = vmax.f32 %v1873_v61, %v1874_v25  ;;  %v1881_v21 = vrot.slane %v1880_v40, 4  ;;  %v3295_v22 = vrot.slane %v3281_v57, %v5791_v38  ;;  %v3296_v10 = vcombine.high %v3288_v62, %v3288_v62 }
 0x27b   : > { %v1863_v39 = vmax.f32 %v1861_v13, %v1862_v24  ;;  %v1869_v31 = vrot.slane %v1868_v36, 2  ;;  %v4162_v34 = vsel %vm1326_vm0, %v3288_v62, -inf  ;;  %v563_v32 = vadd.f32 %v6391_v41, %v6366_v2 }
 0x27c   : > { %v1876_v59 = vrot.slane %v1875_v33, 2  ;;  %v1882_v9 = vmax.f32 %v1880_v40, %v1881_v21  ;;  %v3297_v3 = vcombine.high %v3295_v22, %v3295_v22  ;;  %v4163_v15 = vrot.slane %v4162_v34, 4 }
 0x27d   : > { %v1864_v26 = vrot.slane %v1863_v39, 1  ;;  %v1870_v47 = vmax.f32 %v1868_v36, %v1869_v31  ;;  %v4169_v44 = vsel %vm1326_vm0, %v3296_v10, -inf  ;;  %v4176_v28 = vsel %vm1326_vm0, %v3295_v22, -inf }
 0x27e   : > { %v1877_v12 = vmax.f32 %v1875_v33, %v1876_v59  ;;  %v1883_v11 = vrot.slane %v1882_v9, 2  ;;  %v4164_v4 = vmax.f32 %v4162_v34, %v4163_v15  ;;  %v4170_v19 = vrot.slane %v4169_v44, 4 }
 0x27f   : > { %v6639_v63 = vmax.f32 %v1863_v39, %v1864_v26  ;;  %v1871_v48 = vrot.slane %v1870_v47, 1  ;;  %v4177_v29 = vrot.slane %v4176_v28, 4  ;;  %v4183_v2 = vsel %vm1326_vm0, %v3297_v3, -inf  ;;  %v6665_v26 = vpop.f32.mrb[26].mxu0 }
 0x280   : > { %v1878_v41 = vrot.slane %v1877_v12, 1  ;;  %v1884_v14 = vmax.f32 %v1882_v9, %v1883_v11  ;;  %v4165_v16 = vrot.slane %v4164_v4, 2  ;;  %v4171_v6 = vmax.f32 %v4169_v44, %v4170_v19  ;;  %v6672_v19 = vld [vmem:[%s7191_s2 + $0x1] ss:$0 sm:$0xff] }
 0x281   : > { %v6644_v5 = vmax.f32 %v1870_v47, %v1871_v48  ;;  %v4178_v18 = vmax.f32 %v4176_v28, %v4177_v29  ;;  %v4184_v7 = vrot.slane %v4183_v2, 4  ;;  %v943_v46 = vcombine.high %v563_v32, %v563_v32 }
 0x282   : > { %v6646_v27 = vmax.f32 %v1877_v12, %v1878_v41  ;;  %v1885_v49 = vrot.slane %v1884_v14, 1  ;;  %v4166_v61 = vmax.f32 %v4164_v4, %v4165_v16  ;;  %v4172_v57 = vrot.slane %v4171_v6, 2  ;;  %v6686_v16 = vld [vmem:[%s7191_s2] ss:$0 sm:$0xff] }
 0x283   : > { %v4179_v8 = vrot.slane %v4178_v18, 2  ;;  %v4185_v37 = vmax.f32 %v4183_v2, %v4184_v7  ;;  %v950_v13 = vrot.slane %v563_v32, %v5791_v38  ;;  %v957_v58 = vrot.slane %v943_v46, %v5791_v38 }
 0x284   : > { %v6650_v20 = vmax.f32 %v1884_v14, %v1885_v49  ;;  %v4167_v25 = vrot.slane %v4166_v61, 1  ;;  %v4173_v40 = vmax.f32 %v4171_v6, %v4172_v57  ;;  %v6655_v62 = vsel %vm2611_vm3, %v6609_v43, %v6612_v23 }
 0x285   : > { %v4180_v24 = vmax.f32 %v4178_v18, %v4179_v8  ;;  %v4186_v36 = vrot.slane %v4185_v37, 2  ;;  %v958_v33 = vcombine.high %v950_v13, %v950_v13  ;;  %v959_v21 = vcombine.high %v957_v58, %v957_v58 }
 0x286   : > { %v6657_v22 = vmax.f32 %v4166_v61, %v4167_v25  ;;  %v4174_v10 = vrot.slane %v4173_v40, 1  ;;  %v1803_v39 = vsel %vm1326_vm0, %v950_v13, -inf  ;;  %v1817_v31 = vsel %vm1326_vm0, %v957_v58, -inf }
 0x287   : > { %v4181_v34 = vrot.slane %v4180_v24, 1  ;;  %v4187_v32 = vmax.f32 %v4185_v37, %v4186_v36  ;;  %v1804_v59 = vrot.slane %v1803_v39, 4  ;;  %v1810_v9 = vsel %vm1326_vm0, %v958_v33, -inf }
 0x288   : > { %v6662_v3 = vmax.f32 %v4173_v40, %v4174_v10  ;;  %v1811_v43 = vrot.slane %v1810_v9, 4  ;;  %v1818_v23 = vrot.slane %v1817_v31, 4  ;;  %v1824_v15 = vsel %vm1326_vm0, %v959_v21, -inf }
 0x289   : > { %v6667_v47 = vmax.f32 %v4180_v24, %v4181_v34  ;;  %v4188_v44 = vrot.slane %v4187_v32, 1  ;;  %v1805_v28 = vmax.f32 %v1803_v39, %v1804_v59  ;;  %v1825_v12 = vrot.slane %v1824_v15, 4 }
 0x28a   : > { %v1812_v11 = vmax.f32 %v1810_v9, %v1811_v43  ;;  %v1819_v4 = vmax.f32 %v1817_v31, %v1818_v23  ;;  %v2867_v48 = vadd.f32 %v6672_v19, %v6380_v56  ;;  %v6679_v29 = vsel %vm2611_vm3, %v6626_v60, %v6629_v17 }
 0x28b   : > { %v6681_v2 = vmax.f32 %v4187_v32, %v4188_v44  ;;  %v1806_v41 = vrot.slane %v1805_v28, 2  ;;  %v1826_v14 = vmax.f32 %v1824_v15, %v1825_v12  ;;  %v584_v6 = vadd.f32 %v6686_v16, %v6422_v52 }
 0x28c   : > { %v1813_v18 = vrot.slane %v1812_v11, 2  ;;  %v1820_v7 = vrot.slane %v1819_v4, 2  ;;  %v3247_v56 = vcombine.high %v2867_v48, %v2867_v48  ;;  %v3254_v46 = vrot.slane %v2867_v48, %v5791_v38 }
 0x28d   : > { %v1807_v49 = vmax.f32 %v1805_v28, %v1806_v41  ;;  %v1827_v60 = vrot.slane %v1826_v14, 2  ;;  %v1028_v17 = vcombine.high %v584_v6, %v584_v6  ;;  %v6692_v61 = vrot.slane %v584_v6, %v5791_v38 }
 0x28e   : > { %v1814_v57 = vmax.f32 %v1812_v11, %v1813_v18  ;;  %v1821_v8 = vmax.f32 %v1819_v4, %v1820_v7  ;;  %v3261_v37 = vrot.slane %v3247_v56, %v5791_v38  ;;  %v3262_v13 = vcombine.high %v3254_v46, %v3254_v46 }
 0x28f   : > { %v1808_v58 = vrot.slane %v1807_v49, 1  ;;  %v1828_v25 = vmax.f32 %v1826_v14, %v1827_v60  ;;  %v4106_v52 = vsel %vm1326_vm0, %v3254_v46, -inf  ;;  %v6697_v40 = vrot.slane %v1028_v17, %v5791_v38 }
 0x290   : > { %v1815_v24 = vrot.slane %v1814_v57, 1  ;;  %v1822_v36 = vrot.slane %v1821_v8, 1  ;;  %v3263_v33 = vcombine.high %v3261_v37, %v3261_v37  ;;  %v4107_v21 = vrot.slane %v4106_v52, 4 }
 0x291   : > { %v1809_v10 = vmax.f32 %v1807_v49, %v1808_v58  ;;  %v1829_v39 = vrot.slane %v1828_v25, 1  ;;  %v4113_v31 = vsel %vm1326_vm0, %v3262_v13, -inf  ;;  %v4120_v34 = vsel %vm1326_vm0, %v3261_v37, -inf }
 0x292   : > { %v1816_v32 = vmax.f32 %v1814_v57, %v1815_v24  ;;  %v1823_v59 = vmax.f32 %v1821_v8, %v1822_v36  ;;  %v4108_v9 = vmax.f32 %v4106_v52, %v4107_v21  ;;  %v4114_v43 = vrot.slane %v4113_v31, 4  ;;  %v6708_v52 = vpop.f32.mrb[26].mxu1 }
 0x293   : > { %v1830_v23 = vmax.f32 %v1828_v25, %v1829_v39  ;;  %v2259_v15 = vmax.f32 %v1809_v10, %v6639_v63  ;;  %v4121_v44 = vrot.slane %v4120_v34, 4  ;;  %v4127_v28 = vsel %vm1326_vm0, %v3263_v33, -inf }
 0x294   : > { %v2260_v12 = vmax.f32 %v1816_v32, %v6644_v5  ;;  %v2261_v11 = vmax.f32 %v1823_v59, %v6646_v27  ;;  %v4109_v4 = vrot.slane %v4108_v9, 2  ;;  %v4115_v48 = vmax.f32 %v4113_v31, %v4114_v43 }
 0x295   : > { %v2262_v41 = vmax.f32 %v1830_v23, %v6650_v20  ;;  %v5341_v14 = vpack.c.bf16 %v2259_v15, %v2259_v15  ;;  %v4122_v6 = vmax.f32 %v4120_v34, %v4121_v44  ;;  %v4128_v18 = vrot.slane %v4127_v28, 4 }
 0x296   : > { %v5342_v7 = vpack.c.bf16 %v2260_v12, %v2260_v12  ;;  %v5343_v56 = vpack.c.bf16 %v2261_v11, %v2261_v11  ;;  %v4110_v46 = vmax.f32 %v4108_v9, %v4109_v4  ;;  %v4116_v49 = vrot.slane %v4115_v48, 2 }
 0x297   : > { %v5344_v60 = vpack.c.bf16 %v2262_v41, %v2262_v41  ;;  %v2579_v63 = vunpack.c.l.b16 %v5341_v14  ;;  %v4123_v17 = vrot.slane %v4122_v6, 2  ;;  %v4129_v57 = vmax.f32 %v4127_v28, %v4128_v18 }
 0x298   : > { %v2580_v8 = vunpack.c.l.b16 %v5342_v7  ;;  %v2581_v37 = vunpack.c.l.b16 %v5343_v56  ;;  %v4111_v5 = vrot.slane %v4110_v46, 1  ;;  %v4117_v13 = vmax.f32 %v4115_v48, %v4116_v49  ;;  %v6727_v56 = vpop.f32.mrb[27].mxu0 }
 0x299   : > { %v2582_v27 = vunpack.c.l.b16 %v5344_v60  ;;  %v2645_v58 = vsel %vm2613_vm4, %v2579_v63, %v6655_v62  ;;  %v4124_v20 = vmax.f32 %v4122_v6, %v4123_v17  ;;  %v4130_v25 = vrot.slane %v4129_v57, 2 }
 0x29a   : > { %v2646_v24 = vsel %vm2615_vm5, %v2580_v8, %v2645_v58  ;;  %v4112_v36 = vmax.f32 %v4110_v46, %v4111_v5  ;;  %v4118_v33 = vrot.slane %v4117_v13, 1  ;;  %v1043_v21 = vcombine.high %v6692_v61, %v6692_v61 }
 0x29b   : > { %v2647_v10 = vsel %vm2617_vm6, %v2581_v37, %v2646_v24  ;;  %v4125_v39 = vrot.slane %v4124_v20, 1  ;;  %v4131_v31 = vmax.f32 %v4129_v57, %v4130_v25  ;;  %v1044_v34 = vcombine.high %v6697_v40, %v6697_v40 }
 0x29c   : > { %v2648_v62 = vsel %vm2619_vm7, %v2582_v27, %v2647_v10  ;;  %v4119_v32 = vmax.f32 %v4117_v13, %v4118_v33  ;;  %v4562_v59 = vmax.f32 %v4112_v36, %v6657_v22  ;;  %v1943_v9 = vsel %vm1326_vm0, %v6692_v61, -inf }
 0x29d   : > { %v2674_v43 = vpack.c.b16 %v2648_v62, %v2648_v62  ;;  %v4126_v23 = vmax.f32 %v4124_v20, %v4125_v39  ;;  %v4132_v15 = vrot.slane %v4131_v31, 1  ;;  %v1944_v44 = vrot.slane %v1943_v9, 4 }
 0x29e   : > { %v4563_v28 = vmax.f32 %v4119_v32, %v6662_v3  ;;  %v5405_v12 = vpack.c.bf16 %v4562_v59, %v4562_v59  ;;  %v1950_v11 = vsel %vm1326_vm0, %v1043_v21, -inf  ;;  %v1957_v4 = vsel %vm1326_vm0, %v6697_v40, -inf }
 0x29f   : > { %2690 = vst [vmem:[%s6001_s14 + $0x10] sm:$0xf] %v2674_v43  ;;  %v4133_v48 = vmax.f32 %v4131_v31, %v4132_v15  ;;  %v4564_v41 = vmax.f32 %v4126_v23, %v6667_v47  ;;  %v1945_v22 = vmax.f32 %v1943_v9, %v1944_v44  ;;  %v1951_v14 = vrot.slane %v1950_v11, 4  ;;  %v6743_v43 = vpop.f32.mrb[27].mxu1 }
 0x2a0   : > { %v5406_v6 = vpack.c.bf16 %v4563_v28, %v4563_v28  ;;  %v4882_v61 = vunpack.c.l.b16 %v5405_v12  ;;  %v1958_v18 = vrot.slane %v1957_v4, 4  ;;  %v1964_v7 = vsel %vm1326_vm0, %v1044_v34, -inf }
 0x2a1   : > { %v4565_v3 = vmax.f32 %v4133_v48, %v6681_v2  ;;  %v5407_v46 = vpack.c.bf16 %v4564_v41, %v4564_v41  ;;  %v1946_v49 = vrot.slane %v1945_v22, 2  ;;  %v1952_v60 = vmax.f32 %v1950_v11, %v1951_v14 }
 0x2a2   : > { %v4883_v63 = vunpack.c.l.b16 %v5406_v6  ;;  %v4941_v40 = vsel %vm2613_vm4, %v4882_v61, %v6679_v29  ;;  %v1959_v17 = vmax.f32 %v1957_v4, %v1958_v18  ;;  %v1965_v47 = vrot.slane %v1964_v7, 4 }
 0x2a3   : > { %v5408_v57 = vpack.c.bf16 %v4565_v3, %v4565_v3  ;;  %v4884_v8 = vunpack.c.l.b16 %v5407_v46  ;;  %v1947_v37 = vmax.f32 %v1945_v22, %v1946_v49  ;;  %v1953_v5 = vrot.slane %v1952_v60, 2 }
 0x2a4   : > { %v4942_v13 = vsel %vm2615_vm5, %v4883_v63, %v4941_v40  ;;  %v1960_v27 = vrot.slane %v1959_v17, 2  ;;  %v1966_v58 = vmax.f32 %v1964_v7, %v1965_v47  ;;  %v2888_v2 = vadd.f32 %v6672_v19, %v6429_v50 }
 0x2a5   : > { %v4885_v20 = vunpack.c.l.b16 %v5408_v57  ;;  %v4943_v25 = vsel %vm2617_vm6, %v4884_v8, %v4942_v13  ;;  %v1948_v24 = vrot.slane %v1947_v37, 1  ;;  %v1954_v36 = vmax.f32 %v1952_v60, %v1953_v5 }
 0x2a6   : > { %v1961_v33 = vmax.f32 %v1959_v17, %v1960_v27  ;;  %v1967_v29 = vrot.slane %v1966_v58, 2  ;;  %v3332_v21 = vcombine.high %v2888_v2, %v2888_v2  ;;  %v3339_v10 = vrot.slane %v2888_v2, %v5791_v38 }
 0x2a7   : > { %v4944_v39 = vsel %vm2619_vm7, %v4885_v20, %v4943_v25  ;;  %v6738_v31 = vmax.f32 %v1947_v37, %v1948_v24  ;;  %v1955_v34 = vrot.slane %v1954_v36, 1  ;;  %v576_v62 = vadd.f32 %v6686_v16, %v6463_v1 }
 0x2a8   : > { %v4970_v50 = vpack.c.b16 %v4944_v39, %v4944_v39  ;;  %v1962_v32 = vrot.slane %v1961_v33, 1  ;;  %v1968_v59 = vmax.f32 %v1966_v58, %v1967_v29  ;;  %v3346_v9 = vrot.slane %v3332_v21, %v5791_v38 }
 0x2a9   : > { %v6745_v23 = vmax.f32 %v1954_v36, %v1955_v34  ;;  %v3347_v15 = vcombine.high %v3339_v10, %v3339_v10  ;;  %v4246_v44 = vsel %vm1326_vm0, %v3339_v10, -inf  ;;  %v994_v28 = vcombine.high %v576_v62, %v576_v62 }
 0x2aa   : > { %4986 = vst [vmem:[%s6027_s21 + $0x10] sm:$0xf] %v4970_v50  ;;  %v6749_v12 = vmax.f32 %v1961_v33, %v1962_v32  ;;  %v1969_v11 = vrot.slane %v1968_v59, 1  ;;  %v3348_v4 = vcombine.high %v3346_v9, %v3346_v9  ;;  %v4247_v48 = vrot.slane %v4246_v44, 4 }
 0x2ab   : > { %v4253_v1 = vsel %vm1326_vm0, %v3347_v15, -inf  ;;  %v4260_v41 = vsel %vm1326_vm0, %v3346_v9, -inf  ;;  %v1001_v22 = vrot.slane %v576_v62, %v5791_v38  ;;  %v1008_v14 = vrot.slane %v994_v28, %v5791_v38 }
 0x2ac   : > { %v6755_v6 = vmax.f32 %v1968_v59, %v1969_v11  ;;  %v4248_v61 = vmax.f32 %v4246_v44, %v4247_v48  ;;  %v4254_v18 = vrot.slane %v4253_v1, 4  ;;  %v4261_v7 = vrot.slane %v4260_v41, 4 }
 0x2ad   : > { %v4267_v3 = vsel %vm1326_vm0, %v3348_v4, -inf  ;;  %v1009_v46 = vcombine.high %v1001_v22, %v1001_v22  ;;  %v1010_v49 = vcombine.high %v1008_v14, %v1008_v14  ;;  %v1887_v60 = vsel %vm1326_vm0, %v1001_v22, -inf }
 0x2ae   : > { %v4249_v63 = vrot.slane %v4248_v61, 2  ;;  %v4255_v40 = vmax.f32 %v4253_v1, %v4254_v18  ;;  %v4262_v17 = vmax.f32 %v4260_v41, %v4261_v7  ;;  %v4268_v47 = vrot.slane %v4267_v3, 4 }
 0x2af   : > { %v1888_v57 = vrot.slane %v1887_v60, 4  ;;  %v1894_v8 = vsel %vm1326_vm0, %v1009_v46, -inf  ;;  %v1901_v37 = vsel %vm1326_vm0, %v1008_v14, -inf  ;;  %v1908_v5 = vsel %vm1326_vm0, %v1010_v49, -inf }
 0x2b0   : > { %v4250_v13 = vmax.f32 %v4248_v61, %v4249_v63  ;;  %v4256_v27 = vrot.slane %v4255_v40, 2  ;;  %v4263_v58 = vrot.slane %v4262_v17, 2  ;;  %v4269_v2 = vmax.f32 %v4267_v3, %v4268_v47  ;;  %v6770_v3 = vpop.f32.mrb[28].mxu0 }
 0x2b1   : > { %v1889_v20 = vmax.f32 %v1887_v60, %v1888_v57  ;;  %v1895_v25 = vrot.slane %v1894_v8, 4  ;;  %v1902_v24 = vrot.slane %v1901_v37, 4  ;;  %v1909_v36 = vrot.slane %v1908_v5, 4 }
 0x2b2   : > { %v4251_v33 = vrot.slane %v4250_v13, 1  ;;  %v4257_v29 = vmax.f32 %v4255_v40, %v4256_v27  ;;  %v4264_v21 = vmax.f32 %v4262_v17, %v4263_v58  ;;  %v4270_v10 = vrot.slane %v4269_v2, 2 }
 0x2b3   : > { %v1890_v39 = vrot.slane %v1889_v20, 2  ;;  %v1896_v34 = vmax.f32 %v1894_v8, %v1895_v25  ;;  %v1903_v62 = vmax.f32 %v1901_v37, %v1902_v24  ;;  %v1910_v50 = vmax.f32 %v1908_v5, %v1909_v36 }
 0x2b4   : > { %v6762_v32 = vmax.f32 %v4250_v13, %v4251_v33  ;;  %v4258_v59 = vrot.slane %v4257_v29, 1  ;;  %v4265_v9 = vrot.slane %v4264_v21, 1  ;;  %v4271_v15 = vmax.f32 %v4269_v2, %v4270_v10 }
 0x2b5   : > { %v1891_v44 = vmax.f32 %v1889_v20, %v1890_v39  ;;  %v1897_v28 = vrot.slane %v1896_v34, 2  ;;  %v1904_v11 = vrot.slane %v1903_v62, 2  ;;  %v1911_v4 = vrot.slane %v1910_v50, 2 }
 0x2b6   : > { %v6764_v48 = vmax.f32 %v4257_v29, %v4258_v59  ;;  %v6766_v1 = vmax.f32 %v4264_v21, %v4265_v9  ;;  %v4272_v41 = vrot.slane %v4271_v15, 1  ;;  %v2880_v22 = vadd.f32 %v6672_v19, %v6471_v51 }
 0x2b7   : > { %v1892_v14 = vrot.slane %v1891_v44, 1  ;;  %v1898_v61 = vmax.f32 %v1896_v34, %v1897_v28  ;;  %v1905_v18 = vmax.f32 %v1903_v62, %v1904_v11  ;;  %v1912_v7 = vmax.f32 %v1910_v50, %v1911_v4 }
 0x2b8   : > { %v6772_v46 = vmax.f32 %v4271_v15, %v4272_v41  ;;  %v3298_v49 = vcombine.high %v2880_v22, %v2880_v22  ;;  %v3305_v60 = vrot.slane %v2880_v22, %v5791_v38  ;;  %v587_v63 = vadd.f32 %v6686_v16, %v6510_v55 }
 0x2b9   : > { %v1893_v40 = vmax.f32 %v1891_v44, %v1892_v14  ;;  %v1899_v17 = vrot.slane %v1898_v61, 1  ;;  %v1906_v47 = vrot.slane %v1905_v18, 1  ;;  %v1913_v57 = vrot.slane %v1912_v7, 1 }
 0x2ba   : > { %v3312_v51 = vrot.slane %v3298_v49, %v5791_v38  ;;  %v3313_v8 = vcombine.high %v3305_v60, %v3305_v60  ;;  %v4190_v37 = vsel %vm1326_vm0, %v3305_v60, -inf  ;;  %v1045_v5 = vcombine.high %v587_v63, %v587_v63 }
 0x2bb   : > { %v1900_v13 = vmax.f32 %v1898_v61, %v1899_v17  ;;  %v1907_v27 = vmax.f32 %v1905_v18, %v1906_v47  ;;  %v1914_v58 = vmax.f32 %v1912_v7, %v1913_v57  ;;  %v2263_v2 = vmax.f32 %v1893_v40, %v6738_v31  ;;  %v6789_v18 = vpop.f32.mrb[28].mxu1 }
 0x2bc   : > { %v3314_v20 = vcombine.high %v3312_v51, %v3312_v51  ;;  %v4191_v25 = vrot.slane %v4190_v37, 4  ;;  %v4197_v24 = vsel %vm1326_vm0, %v3313_v8, -inf  ;;  %v4204_v55 = vsel %vm1326_vm0, %v3312_v51, -inf }
 0x2bd   : > { %v2264_v36 = vmax.f32 %v1900_v13, %v6745_v23  ;;  %v2265_v33 = vmax.f32 %v1907_v27, %v6749_v12  ;;  %v2266_v29 = vmax.f32 %v1914_v58, %v6755_v6  ;;  %v5345_v21 = vpack.c.bf16 %v2263_v2, %v2263_v2 }
 0x2be   : > { %v4192_v10 = vmax.f32 %v4190_v37, %v4191_v25  ;;  %v4198_v39 = vrot.slane %v4197_v24, 4  ;;  %v4205_v34 = vrot.slane %v4204_v55, 4  ;;  %v4211_v62 = vsel %vm1326_vm0, %v3314_v20, -inf }
 0x2bf   : > { %v5346_v50 = vpack.c.bf16 %v2264_v36, %v2264_v36  ;;  %v5347_v31 = vpack.c.bf16 %v2265_v33, %v2265_v33  ;;  %v5348_v59 = vpack.c.bf16 %v2266_v29, %v2266_v29  ;;  %v2583_v9 = vunpack.c.l.b16 %v5345_v21 }
 0x2c0   : > { %v4193_v15 = vrot.slane %v4192_v10, 2  ;;  %v4199_v44 = vmax.f32 %v4197_v24, %v4198_v39  ;;  %v4206_v28 = vmax.f32 %v4204_v55, %v4205_v34  ;;  %v4212_v11 = vrot.slane %v4211_v62, 4 }
 0x2c1   : > { %v2584_v4 = vunpack.c.l.b16 %v5346_v50  ;;  %v2585_v23 = vunpack.c.l.b16 %v5347_v31  ;;  %v6786_v41 = vunpack.c.l.b16 %v5348_v59  ;;  %v1052_v12 = vrot.slane %v587_v63, %v5791_v38 }
 0x2c2   : > { %v4194_v6 = vmax.f32 %v4192_v10, %v4193_v15  ;;  %v4200_v22 = vrot.slane %v4199_v44, 2  ;;  %v4207_v14 = vrot.slane %v4206_v28, 2  ;;  %v4213_v61 = vmax.f32 %v4211_v62, %v4212_v11 }
 0x2c3   : > { %v2649_v7 = vsel %vm2607_vm1, %v2584_v4, %v2583_v9  ;;  %v1059_v49 = vrot.slane %v1045_v5, %v5791_v38  ;;  %v1060_v60 = vcombine.high %v1052_v12, %v1052_v12  ;;  %v1971_v40 = vsel %vm1326_vm0, %v1052_v12, -inf }
 0x2c4   : > { %v6795_v17 = vsel %vm2609_vm2, %v2585_v23, %v2649_v7  ;;  %v4195_v47 = vrot.slane %v4194_v6, 1  ;;  %v4201_v57 = vmax.f32 %v4199_v44, %v4200_v22  ;;  %v4208_v51 = vmax.f32 %v4206_v28, %v4207_v14 }
 0x2c5   : > { %v4214_v63 = vrot.slane %v4213_v61, 2  ;;  %v1061_v8 = vcombine.high %v1059_v49, %v1059_v49  ;;  %v1972_v37 = vrot.slane %v1971_v40, 4  ;;  %v1978_v13 = vsel %vm1326_vm0, %v1060_v60, -inf }
 0x2c6   : > { %v4196_v27 = vmax.f32 %v4194_v6, %v4195_v47  ;;  %v4202_v58 = vrot.slane %v4201_v57, 1  ;;  %v4209_v2 = vrot.slane %v4208_v51, 1  ;;  %v1979_v20 = vrot.slane %v1978_v13, 4 }
 0x2c7   : > { %v4215_v25 = vmax.f32 %v4213_v61, %v4214_v63  ;;  %v1973_v5 = vmax.f32 %v1971_v40, %v1972_v37  ;;  %v1985_v24 = vsel %vm1326_vm0, %v1059_v49, -inf  ;;  %v1992_v55 = vsel %vm1326_vm0, %v1061_v8, -inf }
 0x2c8   : > { %v4203_v36 = vmax.f32 %v4201_v57, %v4202_v58  ;;  %v4210_v33 = vmax.f32 %v4208_v51, %v4209_v2  ;;  %v4566_v29 = vmax.f32 %v4196_v27, %v6762_v32  ;;  %v1980_v21 = vmax.f32 %v1978_v13, %v1979_v20  ;;  %v6803_v32 = vpop.f32.mrb[29].mxu0 }
 0x2c9   : > { %v4216_v10 = vrot.slane %v4215_v25, 1  ;;  %v1974_v39 = vrot.slane %v1973_v5, 2  ;;  %v1986_v34 = vrot.slane %v1985_v24, 4  ;;  %v1993_v62 = vrot.slane %v1992_v55, 4 }
 0x2ca   : > { %v4567_v50 = vmax.f32 %v4203_v36, %v6764_v48  ;;  %v4568_v31 = vmax.f32 %v4210_v33, %v6766_v1  ;;  %v5409_v59 = vpack.c.bf16 %v4566_v29, %v4566_v29  ;;  %v1981_v9 = vrot.slane %v1980_v21, 2 }
 0x2cb   : > { %v4217_v15 = vmax.f32 %v4215_v25, %v4216_v10  ;;  %v1975_v44 = vmax.f32 %v1973_v5, %v1974_v39  ;;  %v1987_v28 = vmax.f32 %v1985_v24, %v1986_v34  ;;  %v1994_v11 = vmax.f32 %v1992_v55, %v1993_v62  ;;  %v6830_v34 = vpop.f32.mrb[29].mxu1 }
 0x2cc   : > { %v5410_v4 = vpack.c.bf16 %v4567_v50, %v4567_v50  ;;  %v5411_v23 = vpack.c.bf16 %v4568_v31, %v4568_v31  ;;  %v4886_v12 = vunpack.c.l.b16 %v5409_v59  ;;  %v1982_v6 = vmax.f32 %v1980_v21, %v1981_v9 }
 0x2cd   : > { %v4569_v22 = vmax.f32 %v4217_v15, %v6772_v46  ;;  %v1976_v14 = vrot.slane %v1975_v44, 1  ;;  %v1988_v61 = vrot.slane %v1987_v28, 2  ;;  %v1995_v7 = vrot.slane %v1994_v11, 2 }
 0x2ce   : > { %v4887_v48 = vunpack.c.l.b16 %v5410_v4  ;;  %v4888_v49 = vunpack.c.l.b16 %v5411_v23  ;;  %v1983_v1 = vrot.slane %v1982_v6, 1  ;;  %v2891_v60 = vadd.f32 %v6672_v19, %v6522_v45 }
 0x2cf   : > { %v5412_v40 = vpack.c.bf16 %v4569_v22, %v4569_v22  ;;  %v6808_v47 = vmax.f32 %v1975_v44, %v1976_v14  ;;  %v1989_v57 = vmax.f32 %v1987_v28, %v1988_v61  ;;  %v1996_v51 = vmax.f32 %v1994_v11, %v1995_v7 }
 0x2d0   : > { %v4945_v63 = vsel %vm2607_vm1, %v4887_v48, %v4886_v12  ;;  %v6811_v8 = vmax.f32 %v1982_v6, %v1983_v1  ;;  %v3349_v37 = vcombine.high %v2891_v60, %v2891_v60  ;;  %v3356_v46 = vrot.slane %v2891_v60, %v5791_v38 }
 0x2d1   : > { %v4889_v13 = vunpack.c.l.b16 %v5412_v40  ;;  %v4946_v27 = vsel %vm2609_vm2, %v4888_v49, %v4945_v63  ;;  %v1990_v58 = vrot.slane %v1989_v57, 1  ;;  %v1997_v2 = vrot.slane %v1996_v51, 1 }
 0x2d2   : > { %v3363_v20 = vrot.slane %v3349_v37, %v5791_v38  ;;  %v3364_v45 = vcombine.high %v3356_v46, %v3356_v46  ;;  %v4274_v25 = vsel %vm1326_vm0, %v3356_v46, -inf  ;;  %v579_v5 = vadd.f32 %v6686_v16, %v6543_v42 }
 0x2d3   : > { %v6819_v24 = vmax.f32 %v1989_v57, %v1990_v58  ;;  %v6821_v55 = vmax.f32 %v1996_v51, %v1997_v2  ;;  %v4275_v36 = vrot.slane %v4274_v25, 4  ;;  %v6826_v33 = vsel %vm2611_vm3, %v6786_v41, %v6795_v17 }
 0x2d4   : > { %v3365_v29 = vcombine.high %v3363_v20, %v3363_v20  ;;  %v4281_v21 = vsel %vm1326_vm0, %v3364_v45, -inf  ;;  %v4288_v10 = vsel %vm1326_vm0, %v3363_v20, -inf  ;;  %v1011_v39 = vcombine.high %v579_v5, %v579_v5 }
 0x2d5   : > { %v4276_v62 = vmax.f32 %v4274_v25, %v4275_v36  ;;  %v4282_v42 = vrot.slane %v4281_v21, 4  ;;  %v4289_v50 = vrot.slane %v4288_v10, 4  ;;  %v1018_v31 = vrot.slane %v579_v5, %v5791_v38 }
 0x2d6   : > { %v4295_v59 = vsel %vm1326_vm0, %v3365_v29, -inf  ;;  %v1025_v9 = vrot.slane %v1011_v39, %v5791_v38  ;;  %v2883_v41 = vadd.f32 %v6672_v19, %v6554_v0  ;;  %v6838_v17 = vsel %vm2611_vm3, %v4889_v13, %v4946_v27  ;;  %v6844_v27 = vpop.f32.mrb[30].mxu0 }
 0x2d7   : > { %v4277_v15 = vrot.slane %v4276_v62, 2  ;;  %v4283_v44 = vmax.f32 %v4281_v21, %v4282_v42  ;;  %v4290_v28 = vmax.f32 %v4288_v10, %v4289_v50  ;;  %v4296_v11 = vrot.slane %v4295_v59, 4 }
 0x2d8   : > { %v1026_v4 = vcombine.high %v1018_v31, %v1018_v31  ;;  %v1027_v23 = vcombine.high %v1025_v9, %v1025_v9  ;;  %v1915_v12 = vsel %vm1326_vm0, %v1018_v31, -inf  ;;  %v1929_v6 = vsel %vm1326_vm0, %v1025_v9, -inf }
 0x2d9   : > { %v4278_v22 = vmax.f32 %v4276_v62, %v4277_v15  ;;  %v4284_v14 = vrot.slane %v4283_v44, 2  ;;  %v4291_v61 = vrot.slane %v4290_v28, 2  ;;  %v4297_v7 = vmax.f32 %v4295_v59, %v4296_v11 }
 0x2da   : > { %v1916_v48 = vrot.slane %v1915_v12, 4  ;;  %v1922_v0 = vsel %vm1326_vm0, %v1026_v4, -inf  ;;  %v1930_v49 = vrot.slane %v1929_v6, 4  ;;  %v1936_v1 = vsel %vm1326_vm0, %v1027_v23, -inf }
 0x2db   : > { %v4279_v60 = vrot.slane %v4278_v22, 1  ;;  %v4285_v40 = vmax.f32 %v4283_v44, %v4284_v14  ;;  %v4292_v57 = vmax.f32 %v4290_v28, %v4291_v61  ;;  %v4298_v51 = vrot.slane %v4297_v7, 2 }
 0x2dc   : > { %v1917_v63 = vmax.f32 %v1915_v12, %v1916_v48  ;;  %v1923_v37 = vrot.slane %v1922_v0, 4  ;;  %v1931_v46 = vmax.f32 %v1929_v6, %v1930_v49  ;;  %v1937_v13 = vrot.slane %v1936_v1, 4 }
 0x2dd   : > { %v6846_v58 = vmax.f32 %v4278_v22, %v4279_v60  ;;  %v4286_v2 = vrot.slane %v4285_v40, 1  ;;  %v4293_v20 = vrot.slane %v4292_v57, 1  ;;  %v4299_v45 = vmax.f32 %v4297_v7, %v4298_v51 }
 0x2de   : > { %v1918_v25 = vrot.slane %v1917_v63, 2  ;;  %v1924_v5 = vmax.f32 %v1922_v0, %v1923_v37  ;;  %v1932_v36 = vrot.slane %v1931_v46, 2  ;;  %v1938_v29 = vmax.f32 %v1936_v1, %v1937_v13 }
 0x2df   : > { %v6848_v21 = vmax.f32 %v4285_v40, %v4286_v2  ;;  %v6850_v10 = vmax.f32 %v4292_v57, %v4293_v20  ;;  %v4300_v39 = vrot.slane %v4299_v45, 1  ;;  %v3315_v62 = vcombine.high %v2883_v41, %v2883_v41 }
 0x2e0   : > { %v1919_v42 = vmax.f32 %v1917_v63, %v1918_v25  ;;  %v1925_v50 = vrot.slane %v1924_v5, 2  ;;  %v1933_v31 = vmax.f32 %v1931_v46, %v1932_v36  ;;  %v1939_v59 = vrot.slane %v1938_v29, 2 }
 0x2e1   : > { %v6852_v9 = vmax.f32 %v4299_v45, %v4300_v39  ;;  %v3322_v15 = vrot.slane %v2883_v41, %v5791_v38  ;;  %v3329_v44 = vrot.slane %v3315_v62, %v5791_v38  ;;  %v600_v28 = vadd.f32 %v6686_v16, %v6592_v30 }
 0x2e2   : > { %v1920_v11 = vrot.slane %v1919_v42, 1  ;;  %v1926_v4 = vmax.f32 %v1924_v5, %v1925_v50  ;;  %v1934_v23 = vrot.slane %v1933_v31, 1  ;;  %v1940_v12 = vmax.f32 %v1938_v29, %v1939_v59 }
 0x2e3   : > { %v3330_v6 = vcombine.high %v3322_v15, %v3322_v15  ;;  %v3331_v22 = vcombine.high %v3329_v44, %v3329_v44  ;;  %v4218_v14 = vsel %vm1326_vm0, %v3322_v15, -inf  ;;  %v4232_v61 = vsel %vm1326_vm0, %v3329_v44, -inf }
 0x2e4   : > { %v1921_v7 = vmax.f32 %v1919_v42, %v1920_v11  ;;  %v1927_v48 = vrot.slane %v1926_v4, 1  ;;  %v1935_v0 = vmax.f32 %v1933_v31, %v1934_v23  ;;  %v1941_v49 = vrot.slane %v1940_v12, 1  ;;  %v6868_v23 = vpop.f32.mrb[30].mxu1 }
 0x2e5   : > { %v4219_v41 = vrot.slane %v4218_v14, 4  ;;  %v4225_v1 = vsel %vm1326_vm0, %v3330_v6, -inf  ;;  %v4233_v60 = vrot.slane %v4232_v61, 4  ;;  %v4239_v30 = vsel %vm1326_vm0, %v3331_v22, -inf }
 0x2e6   : > { %v1928_v40 = vmax.f32 %v1926_v4, %v1927_v48  ;;  %v1942_v57 = vmax.f32 %v1940_v12, %v1941_v49  ;;  %v2267_v51 = vmax.f32 %v1921_v7, %v6808_v47  ;;  %v2269_v63 = vmax.f32 %v1935_v0, %v6819_v24 }
 0x2e7   : > { %v4220_v37 = vmax.f32 %v4218_v14, %v4219_v41  ;;  %v4226_v46 = vrot.slane %v4225_v1, 4  ;;  %v4234_v13 = vmax.f32 %v4232_v61, %v4233_v60  ;;  %v4240_v2 = vrot.slane %v4239_v30, 4 }
 0x2e8   : > { %v2268_v20 = vmax.f32 %v1928_v40, %v6811_v8  ;;  %v2270_v45 = vmax.f32 %v1942_v57, %v6821_v55  ;;  %v5349_v25 = vpack.c.bf16 %v2267_v51, %v2267_v51  ;;  %v5351_v5 = vpack.c.bf16 %v2269_v63, %v2269_v63 }
 0x2e9   : > { %v4221_v36 = vrot.slane %v4220_v37, 2  ;;  %v4227_v29 = vmax.f32 %v4225_v1, %v4226_v46  ;;  %v4235_v39 = vrot.slane %v4234_v13, 2  ;;  %v4241_v62 = vmax.f32 %v4239_v30, %v4240_v2 }
 0x2ea   : > { %v5350_v42 = vpack.c.bf16 %v2268_v20, %v2268_v20  ;;  %v5352_v50 = vpack.c.bf16 %v2270_v45, %v2270_v45  ;;  %v2587_v31 = vunpack.c.l.b16 %v5349_v25  ;;  %v2589_v47 = vunpack.c.l.b16 %v5351_v5 }
 0x2eb   : > { %v4222_v59 = vmax.f32 %v4220_v37, %v4221_v36  ;;  %v4228_v24 = vrot.slane %v4227_v29, 2  ;;  %v4236_v15 = vmax.f32 %v4234_v13, %v4235_v39  ;;  %v4242_v44 = vrot.slane %v4241_v62, 2 }
 0x2ec   : > { %v2588_v11 = vunpack.c.l.b16 %v5350_v42  ;;  %v2590_v4 = vunpack.c.l.b16 %v5352_v50  ;;  %v2652_v8 = vsel %vm2613_vm4, %v2587_v31, %v6826_v33  ;;  %v1096_v55 = vcombine.high %v600_v28, %v600_v28 }
 0x2ed   : > { %v4223_v12 = vrot.slane %v4222_v59, 1  ;;  %v4229_v6 = vmax.f32 %v4227_v29, %v4228_v24  ;;  %v4237_v22 = vrot.slane %v4236_v15, 1  ;;  %v4243_v14 = vmax.f32 %v4241_v62, %v4242_v44 }
 0x2ee   : > { %v2653_v61 = vsel %vm2615_vm5, %v2588_v11, %v2652_v8  ;;  %v1103_v7 = vrot.slane %v600_v28, %v5791_v38  ;;  %v1110_v48 = vrot.slane %v1096_v55, %v5791_v38  ;;  %v2904_v0 = vadd.f32 %v6672_v19, %v6600_v54 }
 0x2ef   : > { %v2654_v49 = vsel %vm2617_vm6, %v2589_v47, %v2653_v61  ;;  %v4224_v33 = vmax.f32 %v4222_v59, %v4223_v12  ;;  %v4230_v41 = vrot.slane %v4229_v6, 1  ;;  %v4238_v1 = vmax.f32 %v4236_v15, %v4237_v22 }
 0x2f0   : > { %v2655_v60 = vsel %vm2619_vm7, %v2590_v4, %v2654_v49  ;;  %v4244_v30 = vrot.slane %v4243_v14, 1  ;;  %v1111_v40 = vcombine.high %v1103_v7, %v1103_v7  ;;  %v1112_v57 = vcombine.high %v1110_v48, %v1110_v48 }
 0x2f1   : > { %v2675_v51 = vpack.c.b16 %v2655_v60, %v2655_v60  ;;  %v4231_v63 = vmax.f32 %v4229_v6, %v4230_v41  ;;  %v4570_v28 = vmax.f32 %v4224_v33, %v6846_v58  ;;  %v4572_v37 = vmax.f32 %v4238_v1, %v6850_v10  ;;  %v6886_v10 = vpop.f32.mrb[31].mxu0 }
 0x2f2   : > { %v4245_v46 = vmax.f32 %v4243_v14, %v4244_v30  ;;  %v2055_v54 = vsel %vm1326_vm0, %v1103_v7, -inf  ;;  %v2062_v13 = vsel %vm1326_vm0, %v1111_v40, -inf  ;;  %v2069_v2 = vsel %vm1326_vm0, %v1110_v48, -inf }
 0x2f3   : > { %2691 = vst [vmem:[%s6001_s14 + $0x14] sm:$0xf] %v2675_v51  ;;  %v4571_v20 = vmax.f32 %v4231_v63, %v6848_v21  ;;  %v5413_v45 = vpack.c.bf16 %v4570_v28, %v4570_v28  ;;  %v5415_v25 = vpack.c.bf16 %v4572_v37, %v4572_v37  ;;  %v2056_v5 = vrot.slane %v2055_v54, 4 }
 0x2f4   : > { %v4573_v36 = vmax.f32 %v4245_v46, %v6852_v9  ;;  %v2063_v29 = vrot.slane %v2062_v13, 4  ;;  %v2070_v39 = vrot.slane %v2069_v2, 4  ;;  %v2076_v58 = vsel %vm1326_vm0, %v1112_v57, -inf  ;;  %v6900_v46 = vpop.f32.mrb[31].mxu1 }
 0x2f5   : > { %v5414_v62 = vpack.c.bf16 %v4571_v20, %v4571_v20  ;;  %v4890_v42 = vunpack.c.l.b16 %v5413_v45  ;;  %v4892_v50 = vunpack.c.l.b16 %v5415_v25  ;;  %v2057_v31 = vmax.f32 %v2055_v54, %v2056_v5 }
 0x2f6   : > { %v5416_v47 = vpack.c.bf16 %v4573_v36, %v4573_v36  ;;  %v2064_v59 = vmax.f32 %v2062_v13, %v2063_v29  ;;  %v2071_v24 = vmax.f32 %v2069_v2, %v2070_v39  ;;  %v2077_v15 = vrot.slane %v2076_v58, 4 }
 0x2f7   : > { %v4891_v21 = vunpack.c.l.b16 %v5414_v62  ;;  %v4948_v44 = vsel %vm2613_vm4, %v4890_v42, %v6838_v17  ;;  %v2058_v11 = vrot.slane %v2057_v31, 2  ;;  %v3400_v9 = vcombine.high %v2904_v0, %v2904_v0 }
 0x2f8   : > { %v4893_v4 = vunpack.c.l.b16 %v5416_v47  ;;  %v2065_v8 = vrot.slane %v2064_v59, 2  ;;  %v2072_v55 = vrot.slane %v2071_v24, 2  ;;  %v2078_v12 = vmax.f32 %v2076_v58, %v2077_v15 }
 0x2f9   : > { %v4949_v6 = vsel %vm2615_vm5, %v4891_v21, %v4948_v44  ;;  %v2059_v22 = vmax.f32 %v2057_v31, %v2058_v11  ;;  %v3407_v14 = vrot.slane %v2904_v0, %v5791_v38  ;;  %v3414_v61 = vrot.slane %v3400_v9, %v5791_v38 }
 0x2fa   : > { %v4950_v7 = vsel %vm2617_vm6, %v4892_v50, %v4949_v6  ;;  %v2066_v48 = vmax.f32 %v2064_v59, %v2065_v8  ;;  %v2073_v49 = vmax.f32 %v2071_v24, %v2072_v55  ;;  %v2079_v33 = vrot.slane %v2078_v12, 2 }
 0x2fb   : > { %v4951_v17 = vsel %vm2619_vm7, %v4893_v4, %v4950_v7  ;;  %v2060_v41 = vrot.slane %v2059_v22, 1  ;;  %v3415_v1 = vcombine.high %v3407_v14, %v3407_v14  ;;  %v3416_v60 = vcombine.high %v3414_v61, %v3414_v61 }
 0x2fc   : > { %v4971_v30 = vpack.c.b16 %v4951_v17, %v4951_v17  ;;  %v2067_v40 = vrot.slane %v2066_v48, 1  ;;  %v2074_v57 = vrot.slane %v2073_v49, 1  ;;  %v2080_v51 = vmax.f32 %v2078_v12, %v2079_v33 }
 0x2fd   : > { %v6895_v63 = vmax.f32 %v2059_v22, %v2060_v41  ;;  %v4358_v0 = vsel %vm1326_vm0, %v3407_v14, -inf  ;;  %v4365_v28 = vsel %vm1326_vm0, %v3415_v1, -inf  ;;  %v4372_v37 = vsel %vm1326_vm0, %v3414_v61, -inf }
 0x2fe   : > { %4987 = vst [vmem:[%s6027_s21 + $0x14] sm:$0xf] %v4971_v30  ;;  %v6903_v54 = vmax.f32 %v2066_v48, %v2067_v40  ;;  %v6905_v13 = vmax.f32 %v2073_v49, %v2074_v57  ;;  %v2081_v2 = vrot.slane %v2080_v51, 1  ;;  %v4359_v20 = vrot.slane %v4358_v0, 4 }
 0x2ff   : > { %v4366_v45 = vrot.slane %v4365_v28, 4  ;;  %v4373_v25 = vrot.slane %v4372_v37, 4  ;;  %v4379_v5 = vsel %vm1326_vm0, %v3416_v60, -inf  ;;  %v592_v36 = vadd.f32 %v6686_v16, %v6631_v35 }
 0x300   : > { %v6910_v29 = vmax.f32 %v2080_v51, %v2081_v2  ;;  %v4360_v39 = vmax.f32 %v4358_v0, %v4359_v20  ;;  %v4380_v58 = vrot.slane %v4379_v5, 4  ;;  %v2896_v62 = vadd.f32 %v6672_v19, %v6642_v53 }
 0x301   : > { %v4367_v42 = vmax.f32 %v4365_v28, %v4366_v45  ;;  %v4374_v50 = vmax.f32 %v4372_v37, %v4373_v25  ;;  %v1062_v31 = vcombine.high %v592_v36, %v592_v36  ;;  %v1069_v47 = vrot.slane %v592_v36, %v5791_v38 }
 0x302   : > { %v4361_v59 = vrot.slane %v4360_v39, 2  ;;  %v4381_v24 = vmax.f32 %v4379_v5, %v4380_v58  ;;  %v3366_v15 = vcombine.high %v2896_v62, %v2896_v62  ;;  %v3373_v21 = vrot.slane %v2896_v62, %v5791_v38 }
 0x303   : > { %v4368_v44 = vrot.slane %v4367_v42, 2  ;;  %v4375_v11 = vrot.slane %v4374_v50, 2  ;;  %v1076_v35 = vrot.slane %v1062_v31, %v5791_v38  ;;  %v1077_v16 = vcombine.high %v1069_v47, %v1069_v47 }
 0x304   : > { %v4362_v9 = vmax.f32 %v4360_v39, %v4361_v59  ;;  %v4382_v4 = vrot.slane %v4381_v24, 2  ;;  %v1999_v8 = vsel %vm1326_vm0, %v1069_v47, -inf  ;;  %v3380_v53 = vrot.slane %v3366_v15, %v5791_v38 }
 0x305   : > { %v4369_v19 = vmax.f32 %v4367_v42, %v4368_v44  ;;  %v4376_v55 = vmax.f32 %v4374_v50, %v4375_v11  ;;  %v1078_v12 = vcombine.high %v1076_v35, %v1076_v35  ;;  %v2000_v6 = vrot.slane %v1999_v8, 4 }
 0x306   : > { %v4363_v22 = vrot.slane %v4362_v9, 1  ;;  %v4383_v14 = vmax.f32 %v4381_v24, %v4382_v4  ;;  %v2006_v61 = vsel %vm1326_vm0, %v1077_v16, -inf  ;;  %v2013_v7 = vsel %vm1326_vm0, %v1076_v35, -inf }
 0x307   : > { %v4370_v48 = vrot.slane %v4369_v19, 1  ;;  %v4377_v49 = vrot.slane %v4376_v55, 1  ;;  %v2001_v33 = vmax.f32 %v1999_v8, %v2000_v6  ;;  %v2007_v17 = vrot.slane %v2006_v61, 4 }
 0x308   : > { %v6921_v41 = vmax.f32 %v4362_v9, %v4363_v22  ;;  %v4384_v1 = vrot.slane %v4383_v14, 1  ;;  %v2014_v60 = vrot.slane %v2013_v7, 4  ;;  %v2020_v30 = vsel %vm1326_vm0, %v1078_v12, -inf }
 0x309   : > { %v6924_v40 = vmax.f32 %v4369_v19, %v4370_v48  ;;  %v6926_v57 = vmax.f32 %v4376_v55, %v4377_v49  ;;  %v2002_v51 = vrot.slane %v2001_v33, 2  ;;  %v2008_v0 = vmax.f32 %v2006_v61, %v2007_v17 }
 0x30a   : > { %v6928_v28 = vmax.f32 %v4383_v14, %v4384_v1  ;;  %v2015_v37 = vmax.f32 %v2013_v7, %v2014_v60  ;;  %v2021_v2 = vrot.slane %v2020_v30, 4  ;;  %v3381_v20 = vcombine.high %v3373_v21, %v3373_v21 }
 0x30b   : > { %v2003_v45 = vmax.f32 %v2001_v33, %v2002_v51  ;;  %v2009_v25 = vrot.slane %v2008_v0, 2  ;;  %v3382_v5 = vcombine.high %v3380_v53, %v3380_v53  ;;  %v4302_v36 = vsel %vm1326_vm0, %v3373_v21, -inf }
 0x30c   : > { %v2016_v39 = vrot.slane %v2015_v37, 2  ;;  %v2022_v58 = vmax.f32 %v2020_v30, %v2021_v2  ;;  %v4303_v62 = vrot.slane %v4302_v36, 4  ;;  %v4309_v42 = vsel %vm1326_vm0, %v3381_v20, -inf }
 0x30d   : > { %v2004_v50 = vrot.slane %v2003_v45, 1  ;;  %v2010_v31 = vmax.f32 %v2008_v0, %v2009_v25  ;;  %v4310_v47 = vrot.slane %v4309_v42, 4  ;;  %v4316_v59 = vsel %vm1326_vm0, %v3380_v53, -inf }
 0x30e   : > { %v2017_v24 = vmax.f32 %v2015_v37, %v2016_v39  ;;  %v2023_v15 = vrot.slane %v2022_v58, 2  ;;  %v4304_v44 = vmax.f32 %v4302_v36, %v4303_v62  ;;  %v4317_v11 = vrot.slane %v4316_v59, 4  ;;  %v6941_v62 = vld [vmem:[%s7191_s2] ss:$0 sm:$0xff] }
 0x30f   : > { %v2005_v35 = vmax.f32 %v2003_v45, %v2004_v50  ;;  %v2011_v16 = vrot.slane %v2010_v31, 1  ;;  %v4311_v9 = vmax.f32 %v4309_v42, %v4310_v47  ;;  %v4323_v4 = vsel %vm1326_vm0, %v3382_v5, -inf }
 0x310   : > { %v2018_v21 = vrot.slane %v2017_v24, 1  ;;  %v2024_v8 = vmax.f32 %v2022_v58, %v2023_v15  ;;  %v4305_v19 = vrot.slane %v4304_v44, 2  ;;  %v4318_v55 = vmax.f32 %v4316_v59, %v4317_v11 }
 0x311   : > { %v2012_v12 = vmax.f32 %v2010_v31, %v2011_v16  ;;  %v2271_v6 = vmax.f32 %v2005_v35, %v6895_v63  ;;  %v4312_v22 = vrot.slane %v4311_v9, 2  ;;  %v4324_v14 = vrot.slane %v4323_v4, 4 }
 0x312   : > { %v2019_v61 = vmax.f32 %v2017_v24, %v2018_v21  ;;  %v2025_v53 = vrot.slane %v2024_v8, 1  ;;  %v4306_v7 = vmax.f32 %v4304_v44, %v4305_v19  ;;  %v4319_v48 = vrot.slane %v4318_v55, 2 }
 0x313   : > { %v2272_v49 = vmax.f32 %v2012_v12, %v6903_v54  ;;  %v5353_v33 = vpack.c.bf16 %v2271_v6, %v2271_v6  ;;  %v4313_v17 = vmax.f32 %v4311_v9, %v4312_v22  ;;  %v4325_v1 = vmax.f32 %v4323_v4, %v4324_v14 }
 0x314   : > { %v2026_v60 = vmax.f32 %v2024_v8, %v2025_v53  ;;  %v2273_v30 = vmax.f32 %v2019_v61, %v6905_v13  ;;  %v4307_v51 = vrot.slane %v4306_v7, 1  ;;  %v4320_v0 = vmax.f32 %v4318_v55, %v4319_v48 }
 0x315   : > { %v5354_v37 = vpack.c.bf16 %v2272_v49, %v2272_v49  ;;  %v2591_v2 = vunpack.c.l.b16 %v5353_v33  ;;  %v4314_v20 = vrot.slane %v4313_v17, 1  ;;  %v4326_v63 = vrot.slane %v4325_v1, 2 }
 0x316   : > { %v2274_v45 = vmax.f32 %v2026_v60, %v6910_v29  ;;  %v5355_v25 = vpack.c.bf16 %v2273_v30, %v2273_v30  ;;  %v4308_v5 = vmax.f32 %v4306_v7, %v4307_v51  ;;  %v4321_v36 = vrot.slane %v4320_v0, 1 }
 0x317   : > { %v2592_v39 = vunpack.c.l.b16 %v5354_v37  ;;  %v4315_v58 = vmax.f32 %v4313_v17, %v4314_v20  ;;  %v4327_v54 = vmax.f32 %v4325_v1, %v4326_v63  ;;  %v603_v13 = vadd.f32 %v6941_v62, %v6665_v26 }
 0x318   : > { %v5356_v42 = vpack.c.bf16 %v2274_v45, %v2274_v45  ;;  %v2593_v50 = vunpack.c.l.b16 %v5355_v25  ;;  %v4322_v31 = vmax.f32 %v4320_v0, %v4321_v36  ;;  %v4574_v47 = vmax.f32 %v4308_v5, %v6921_v41 }
 0x319   : > { %v2656_v29 = vsel %vm2607_vm1, %v2592_v39, %v2591_v2  ;;  %v4328_v59 = vrot.slane %v4327_v54, 1  ;;  %v4575_v24 = vmax.f32 %v4315_v58, %v6924_v40  ;;  %v1113_v15 = vcombine.high %v603_v13, %v603_v13  ;;  %v6959_v40 = vld [vmem:[%s7191_s2 + $0x1] ss:$0 sm:$0xff] }
 0x31a   : > { %v6948_v44 = vunpack.c.l.b16 %v5356_v42  ;;  %v6951_v11 = vsel %vm2609_vm2, %v2593_v50, %v2656_v29  ;;  %v4576_v35 = vmax.f32 %v4322_v31, %v6926_v57  ;;  %v5417_v16 = vpack.c.bf16 %v4574_v47, %v4574_v47 }
 0x31b   : > { %v4329_v26 = vmax.f32 %v4327_v54, %v4328_v59  ;;  %v5418_v9 = vpack.c.bf16 %v4575_v24, %v4575_v24  ;;  %v1120_v4 = vrot.slane %v603_v13, %v5791_v38  ;;  %v1127_v41 = vrot.slane %v1113_v15, %v5791_v38 }
 0x31c   : > { %v5419_v21 = vpack.c.bf16 %v4576_v35, %v4576_v35  ;;  %v4894_v8 = vunpack.c.l.b16 %v5417_v16  ;;  %v2907_v19 = vadd.f32 %v6959_v40, %v6708_v52  ;;  %v6965_v57 = vadd.f32 %v6941_v62, %v6727_v56 }
 0x31d   : > { %v4577_v55 = vmax.f32 %v4329_v26, %v6928_v28  ;;  %v4895_v12 = vunpack.c.l.b16 %v5418_v9  ;;  %v1128_v6 = vcombine.high %v1120_v4, %v1120_v4  ;;  %v1129_v22 = vcombine.high %v1127_v41, %v1127_v41 }
 0x31e   : > { %v4896_v14 = vunpack.c.l.b16 %v5419_v21  ;;  %v2083_v61 = vsel %vm1326_vm0, %v1120_v4, -inf  ;;  %v2097_v53 = vsel %vm1326_vm0, %v1127_v41, -inf  ;;  %v3417_v7 = vcombine.high %v2907_v19, %v2907_v19 }
 0x31f   : > { %v5420_v48 = vpack.c.bf16 %v4577_v55, %v4577_v55  ;;  %v4952_v49 = vsel %vm2607_vm1, %v4895_v12, %v4894_v8  ;;  %v2084_v33 = vrot.slane %v2083_v61, 4  ;;  %v2090_v52 = vsel %vm1326_vm0, %v1128_v6, -inf }
 0x320   : > { %v6973_v56 = vsel %vm2609_vm2, %v4896_v14, %v4952_v49  ;;  %v2091_v17 = vrot.slane %v2090_v52, 4  ;;  %v2098_v28 = vrot.slane %v2097_v53, 4  ;;  %v2104_v1 = vsel %vm1326_vm0, %v1129_v22, -inf }
 0x321   : > { %v6976_v60 = vunpack.c.l.b16 %v5420_v48  ;;  %v2085_v30 = vmax.f32 %v2083_v61, %v2084_v33  ;;  %v2105_v51 = vrot.slane %v2104_v1, 4  ;;  %v3424_v0 = vrot.slane %v2907_v19, %v5791_v38 }
 0x322   : > { %v2092_v37 = vmax.f32 %v2090_v52, %v2091_v17  ;;  %v2099_v2 = vmax.f32 %v2097_v53, %v2098_v28  ;;  %v3431_v20 = vrot.slane %v3417_v7, %v5791_v38  ;;  %v1079_v63 = vcombine.high %v6965_v57, %v6965_v57 }
 0x323   : > { %v2086_v45 = vrot.slane %v2085_v30, 2  ;;  %v2106_v25 = vmax.f32 %v2104_v1, %v2105_v51  ;;  %v3432_v5 = vcombine.high %v3424_v0, %v3424_v0  ;;  %v4386_v36 = vsel %vm1326_vm0, %v3424_v0, -inf }
 0x324   : > { %v2093_v39 = vrot.slane %v2092_v37, 2  ;;  %v2100_v58 = vrot.slane %v2099_v2, 2  ;;  %v3433_v54 = vcombine.high %v3431_v20, %v3431_v20  ;;  %v4387_v13 = vrot.slane %v4386_v36, 4 }
 0x325   : > { %v2087_v42 = vmax.f32 %v2085_v30, %v2086_v45  ;;  %v2107_v50 = vrot.slane %v2106_v25, 2  ;;  %v4393_v31 = vsel %vm1326_vm0, %v3432_v5, -inf  ;;  %v4400_v47 = vsel %vm1326_vm0, %v3431_v20, -inf }
 0x326   : > { %v2094_v29 = vmax.f32 %v2092_v37, %v2093_v39  ;;  %v2101_v59 = vmax.f32 %v2099_v2, %v2100_v58  ;;  %v4388_v24 = vmax.f32 %v4386_v36, %v4387_v13  ;;  %v4394_v15 = vrot.slane %v4393_v31, 4 }
 0x327   : > { %v2088_v35 = vrot.slane %v2087_v42, 1  ;;  %v2108_v16 = vmax.f32 %v2106_v25, %v2107_v50  ;;  %v4401_v26 = vrot.slane %v4400_v47, 4  ;;  %v4407_v9 = vsel %vm1326_vm0, %v3433_v54, -inf }
 0x328   : > { %v2095_v4 = vrot.slane %v2094_v29, 1  ;;  %v2102_v41 = vrot.slane %v2101_v59, 1  ;;  %v4389_v21 = vrot.slane %v4388_v24, 2  ;;  %v4395_v8 = vmax.f32 %v4393_v31, %v4394_v15 }
 0x329   : > { %v6986_v19 = vmax.f32 %v2087_v42, %v2088_v35  ;;  %v2109_v55 = vrot.slane %v2108_v16, 1  ;;  %v4402_v12 = vmax.f32 %v4400_v47, %v4401_v26  ;;  %v4408_v6 = vrot.slane %v4407_v9, 4 }
 0x32a   : > { %v6988_v22 = vmax.f32 %v2094_v29, %v2095_v4  ;;  %v6990_v14 = vmax.f32 %v2101_v59, %v2102_v41  ;;  %v4390_v61 = vmax.f32 %v4388_v24, %v4389_v21  ;;  %v4396_v53 = vrot.slane %v4395_v8, 2 }
 0x32b   : > { %v6992_v7 = vmax.f32 %v2108_v16, %v2109_v55  ;;  %v4403_v48 = vrot.slane %v4402_v12, 2  ;;  %v4409_v49 = vmax.f32 %v4407_v9, %v4408_v6  ;;  %v1086_v33 = vrot.slane %v6965_v57, %v5791_v38 }
 0x32c   : > { %v4391_v52 = vrot.slane %v4390_v61, 1  ;;  %v4397_v17 = vmax.f32 %v4395_v8, %v4396_v53  ;;  %v1093_v28 = vrot.slane %v1079_v63, %v5791_v38  ;;  %v7000_v1 = vsel %vm2611_vm3, %v6948_v44, %v6951_v11 }
 0x32d   : > { %v4404_v30 = vmax.f32 %v4402_v12, %v4403_v48  ;;  %v4410_v51 = vrot.slane %v4409_v49, 2  ;;  %v1094_v0 = vcombine.high %v1086_v33, %v1086_v33  ;;  %v2027_v37 = vsel %vm1326_vm0, %v1086_v33, -inf }
 0x32e   : > { %v7003_v2 = vmax.f32 %v4390_v61, %v4391_v52  ;;  %v4398_v20 = vrot.slane %v4397_v17, 1  ;;  %v1095_v45 = vcombine.high %v1093_v28, %v1093_v28  ;;  %v2028_v25 = vrot.slane %v2027_v37, 4 }
 0x32f   : > { %v4405_v57 = vrot.slane %v4404_v30, 1  ;;  %v4411_v5 = vmax.f32 %v4409_v49, %v4410_v51  ;;  %v2034_v36 = vsel %vm1326_vm0, %v1094_v0, -inf  ;;  %v2041_v63 = vsel %vm1326_vm0, %v1093_v28, -inf }
 0x330   : > { %v7007_v39 = vmax.f32 %v4397_v17, %v4398_v20  ;;  %v2029_v44 = vmax.f32 %v2027_v37, %v2028_v25  ;;  %v2035_v11 = vrot.slane %v2034_v36, 4  ;;  %v2042_v58 = vrot.slane %v2041_v63, 4 }
 0x331   : > { %v7009_v54 = vmax.f32 %v4404_v30, %v4405_v57  ;;  %v4412_v13 = vrot.slane %v4411_v5, 1  ;;  %v2048_v42 = vsel %vm1326_vm0, %v1095_v45, -inf  ;;  %v2899_v50 = vadd.f32 %v6959_v40, %v6743_v43 }
 0x332   : > { %v2030_v31 = vrot.slane %v2029_v44, 2  ;;  %v2036_v47 = vmax.f32 %v2034_v36, %v2035_v11  ;;  %v2043_v29 = vmax.f32 %v2041_v63, %v2042_v58  ;;  %v2049_v59 = vrot.slane %v2048_v42, 4 }
 0x333   : > { %v7014_v24 = vmax.f32 %v4411_v5, %v4412_v13  ;;  %v3383_v15 = vcombine.high %v2899_v50, %v2899_v50  ;;  %v3390_v35 = vrot.slane %v2899_v50, %v5791_v38  ;;  %v7020_v16 = vsel %vm2611_vm3, %v6976_v60, %v6973_v56 }
 0x334   : > { %v2031_v26 = vmax.f32 %v2029_v44, %v2030_v31  ;;  %v2037_v9 = vrot.slane %v2036_v47, 2  ;;  %v2044_v4 = vrot.slane %v2043_v29, 2  ;;  %v2050_v41 = vmax.f32 %v2048_v42, %v2049_v59 }
 0x335   : > { %v3397_v43 = vrot.slane %v3383_v15, %v5791_v38  ;;  %v3398_v21 = vcombine.high %v3390_v35, %v3390_v35  ;;  %v4330_v8 = vsel %vm1326_vm0, %v3390_v35, -inf  ;;  %v616_v55 = vadd.f32 %v6941_v62, %v6770_v3 }
 0x336   : > { %v2032_v12 = vrot.slane %v2031_v26, 1  ;;  %v2038_v6 = vmax.f32 %v2036_v47, %v2037_v9  ;;  %v2045_v61 = vmax.f32 %v2043_v29, %v2044_v4  ;;  %v2051_v53 = vrot.slane %v2050_v41, 2 }
 0x337   : > { %v3399_v48 = vcombine.high %v3397_v43, %v3397_v43  ;;  %v4331_v49 = vrot.slane %v4330_v8, 4  ;;  %v4337_v56 = vsel %vm1326_vm0, %v3398_v21, -inf  ;;  %v4344_v60 = vsel %vm1326_vm0, %v3397_v43, -inf }
 0x338   : > { %v2033_v33 = vmax.f32 %v2031_v26, %v2032_v12  ;;  %v2039_v52 = vrot.slane %v2038_v6, 1  ;;  %v2046_v17 = vrot.slane %v2045_v61, 1  ;;  %v2052_v28 = vmax.f32 %v2050_v41, %v2051_v53 }
 0x339   : > { %v4332_v30 = vmax.f32 %v4330_v8, %v4331_v49  ;;  %v4338_v51 = vrot.slane %v4337_v56, 4  ;;  %v4345_v0 = vrot.slane %v4344_v60, 4  ;;  %v4351_v37 = vsel %vm1326_vm0, %v3399_v48, -inf }
 0x33a   : > { %v2040_v3 = vmax.f32 %v2038_v6, %v2039_v52  ;;  %v2047_v20 = vmax.f32 %v2045_v61, %v2046_v17  ;;  %v2053_v45 = vrot.slane %v2052_v28, 1  ;;  %v2275_v25 = vmax.f32 %v2033_v33, %v6986_v19 }
 0x33b   : > { %v4333_v57 = vrot.slane %v4332_v30, 2  ;;  %v4339_v5 = vmax.f32 %v4337_v56, %v4338_v51  ;;  %v4346_v36 = vmax.f32 %v4344_v60, %v4345_v0  ;;  %v4352_v63 = vrot.slane %v4351_v37, 4 }
 0x33c   : > { %v2054_v44 = vmax.f32 %v2052_v28, %v2053_v45  ;;  %v2276_v11 = vmax.f32 %v2040_v3, %v6988_v22  ;;  %v2277_v58 = vmax.f32 %v2047_v20, %v6990_v14  ;;  %v5357_v13 = vpack.c.bf16 %v2275_v25, %v2275_v25 }
 0x33d   : > { %v4334_v42 = vmax.f32 %v4332_v30, %v4333_v57  ;;  %v4340_v50 = vrot.slane %v4339_v5, 2  ;;  %v4347_v31 = vrot.slane %v4346_v36, 2  ;;  %v4353_v47 = vmax.f32 %v4351_v37, %v4352_v63 }
 0x33e   : > { %v2278_v29 = vmax.f32 %v2054_v44, %v6992_v7  ;;  %v5358_v59 = vpack.c.bf16 %v2276_v11, %v2276_v11  ;;  %v5359_v15 = vpack.c.bf16 %v2277_v58, %v2277_v58  ;;  %v2595_v35 = vunpack.c.l.b16 %v5357_v13 }
 0x33f   : > { %v4335_v19 = vrot.slane %v4334_v42, 1  ;;  %v4341_v26 = vmax.f32 %v4339_v5, %v4340_v50  ;;  %v4348_v9 = vmax.f32 %v4346_v36, %v4347_v31  ;;  %v4354_v4 = vrot.slane %v4353_v47, 2 }
 0x340   : > { %v5360_v41 = vpack.c.bf16 %v2278_v29, %v2278_v29  ;;  %v2596_v43 = vunpack.c.l.b16 %v5358_v59  ;;  %v2597_v21 = vunpack.c.l.b16 %v5359_v15  ;;  %v2659_v22 = vsel %vm2613_vm4, %v2595_v35, %v7000_v1 }
 0x341   : > { %v4336_v14 = vmax.f32 %v4334_v42, %v4335_v19  ;;  %v4342_v8 = vrot.slane %v4341_v26, 1  ;;  %v4349_v12 = vrot.slane %v4348_v9, 1  ;;  %v4355_v6 = vmax.f32 %v4353_v47, %v4354_v4 }
 0x342   : > { %v2598_v61 = vunpack.c.l.b16 %v5360_v41  ;;  %v2660_v7 = vsel %vm2615_vm5, %v2596_v43, %v2659_v22  ;;  %v1164_v53 = vcombine.high %v616_v55, %v616_v55  ;;  %v1171_v48 = vrot.slane %v616_v55, %v5791_v38 }
 0x343   : > { %v2661_v49 = vsel %vm2617_vm6, %v2597_v21, %v2660_v7  ;;  %v4343_v56 = vmax.f32 %v4341_v26, %v4342_v8  ;;  %v4350_v60 = vmax.f32 %v4348_v9, %v4349_v12  ;;  %v4356_v33 = vrot.slane %v4355_v6, 1 }
 0x344   : > { %v2662_v52 = vsel %vm2619_vm7, %v2598_v61, %v2661_v49  ;;  %v4578_v1 = vmax.f32 %v4336_v14, %v7003_v2  ;;  %v1178_v17 = vrot.slane %v1164_v53, %v5791_v38  ;;  %v1179_v28 = vcombine.high %v1171_v48, %v1171_v48 }
 0x345   : > { %v2676_v30 = vpack.c.b16 %v2662_v52, %v2662_v52  ;;  %v4357_v51 = vmax.f32 %v4355_v6, %v4356_v33  ;;  %v4579_v0 = vmax.f32 %v4343_v56, %v7007_v39  ;;  %v4580_v37 = vmax.f32 %v4350_v60, %v7009_v54 }
 0x346   : > { %v5421_v55 = vpack.c.bf16 %v4578_v1, %v4578_v1  ;;  %v1180_v3 = vcombine.high %v1178_v17, %v1178_v17  ;;  %v2167_v20 = vsel %vm1326_vm0, %v1171_v48, -inf  ;;  %v2174_v45 = vsel %vm1326_vm0, %v1179_v28, -inf }
 0x347   : > { %2692 = vst [vmem:[%s6001_s14 + $0x18] sm:$0xf] %v2676_v30  ;;  %v4581_v25 = vmax.f32 %v4357_v51, %v7014_v24  ;;  %v5422_v57 = vpack.c.bf16 %v4579_v0, %v4579_v0  ;;  %v5423_v2 = vpack.c.bf16 %v4580_v37, %v4580_v37  ;;  %v2168_v5 = vrot.slane %v2167_v20, 4 }
 0x348   : > { %v4898_v36 = vunpack.c.l.b16 %v5421_v55  ;;  %v2175_v63 = vrot.slane %v2174_v45, 4  ;;  %v2181_v44 = vsel %vm1326_vm0, %v1178_v17, -inf  ;;  %v2188_v39 = vsel %vm1326_vm0, %v1180_v3, -inf }
 0x349   : > { %v5424_v11 = vpack.c.bf16 %v4581_v25, %v4581_v25  ;;  %v4899_v54 = vunpack.c.l.b16 %v5422_v57  ;;  %v4900_v58 = vunpack.c.l.b16 %v5423_v2  ;;  %v2169_v13 = vmax.f32 %v2167_v20, %v2168_v5 }
 0x34a   : > { %v4955_v42 = vsel %vm2613_vm4, %v4898_v36, %v7020_v16  ;;  %v2176_v50 = vmax.f32 %v2174_v45, %v2175_v63  ;;  %v2182_v31 = vrot.slane %v2181_v44, 4  ;;  %v2189_v47 = vrot.slane %v2188_v39, 4 }
 0x34b   : > { %v4901_v24 = vunpack.c.l.b16 %v5424_v11  ;;  %v4956_v29 = vsel %vm2615_vm5, %v4899_v54, %v4955_v42  ;;  %v2170_v59 = vrot.slane %v2169_v13, 2  ;;  %v2920_v15 = vadd.f32 %v6959_v40, %v6789_v18 }
 0x34c   : > { %v4957_v35 = vsel %vm2617_vm6, %v4900_v58, %v4956_v29  ;;  %v2177_v19 = vrot.slane %v2176_v50, 2  ;;  %v2183_v26 = vmax.f32 %v2181_v44, %v2182_v31  ;;  %v2190_v9 = vmax.f32 %v2188_v39, %v2189_v47 }
 0x34d   : > { %v4958_v4 = vsel %vm2619_vm7, %v4901_v24, %v4957_v35  ;;  %v2171_v41 = vmax.f32 %v2169_v13, %v2170_v59  ;;  %v3468_v16 = vcombine.high %v2920_v15, %v2920_v15  ;;  %v3475_v43 = vrot.slane %v2920_v15, %v5791_v38 }
 0x34e   : > { %v4972_v21 = vpack.c.b16 %v4958_v4, %v4958_v4  ;;  %v2178_v22 = vmax.f32 %v2176_v50, %v2177_v19  ;;  %v2184_v14 = vrot.slane %v2183_v26, 2  ;;  %v2191_v8 = vrot.slane %v2190_v9, 2 }
 0x34f   : > { %v2172_v12 = vrot.slane %v2171_v41, 1  ;;  %v3482_v6 = vrot.slane %v3468_v16, %v5791_v38  ;;  %v3483_v18 = vcombine.high %v3475_v43, %v3475_v43  ;;  %v4470_v61 = vsel %vm1326_vm0, %v3475_v43, -inf }
 0x350   : > { %4988 = vst [vmem:[%s6027_s21 + $0x18] sm:$0xf] %v4972_v21  ;;  %v2179_v7 = vrot.slane %v2178_v22, 1  ;;  %v2185_v53 = vmax.f32 %v2183_v26, %v2184_v14  ;;  %v2192_v48 = vmax.f32 %v2190_v9, %v2191_v8  ;;  %v4471_v49 = vrot.slane %v4470_v61, 4 }
 0x351   : > { %v3484_v56 = vcombine.high %v3482_v6, %v3482_v6  ;;  %v4477_v60 = vsel %vm1326_vm0, %v3483_v18, -inf  ;;  %v4484_v33 = vsel %vm1326_vm0, %v3482_v6, -inf  ;;  %v7062_v52 = vmax.f32 %v2171_v41, %v2172_v12 }
 0x352   : > { %v2186_v1 = vrot.slane %v2185_v53, 1  ;;  %v2193_v17 = vrot.slane %v2192_v48, 1  ;;  %v4472_v28 = vmax.f32 %v4470_v61, %v4471_v49  ;;  %v4478_v30 = vrot.slane %v4477_v60, 4 }
 0x353   : > { %v4485_v51 = vrot.slane %v4484_v33, 4  ;;  %v4491_v0 = vsel %vm1326_vm0, %v3484_v56, -inf  ;;  %v608_v37 = vadd.f32 %v6941_v62, %v6803_v32  ;;  %v7067_v55 = vmax.f32 %v2178_v22, %v2179_v7 }
 0x354   : > { %v7069_v3 = vmax.f32 %v2185_v53, %v2186_v1  ;;  %v4473_v20 = vrot.slane %v4472_v28, 2  ;;  %v4492_v45 = vrot.slane %v4491_v0, 4  ;;  %v4479_v25 = vmax.f32 %v4477_v60, %v4478_v30 }
 0x355   : > { %v4486_v57 = vmax.f32 %v4484_v33, %v4485_v51  ;;  %v1130_v2 = vcombine.high %v608_v37, %v608_v37  ;;  %v1137_v5 = vrot.slane %v608_v37, %v5791_v38  ;;  %v7072_v36 = vmax.f32 %v2192_v48, %v2193_v17 }
 0x356   : > { %v4474_v63 = vmax.f32 %v4472_v28, %v4473_v20  ;;  %v4493_v44 = vmax.f32 %v4491_v0, %v4492_v45  ;;  %v2912_v39 = vadd.f32 %v6959_v40, %v6830_v34  ;;  %v4480_v11 = vrot.slane %v4479_v25, 2 }
 0x357   : > { %v4487_v32 = vrot.slane %v4486_v57, 2  ;;  %v1144_v54 = vrot.slane %v1130_v2, %v5791_v38  ;;  %v1145_v58 = vcombine.high %v1137_v5, %v1137_v5  ;;  %v2111_v50 = vsel %vm1326_vm0, %v1137_v5, -inf }
 0x358   : > { %v4475_v13 = vrot.slane %v4474_v63, 1  ;;  %v4494_v42 = vrot.slane %v4493_v44, 2  ;;  %v7080_v31 = vadd.f32 %v6941_v62, %v6844_v27  ;;  %v4481_v47 = vmax.f32 %v4479_v25, %v4480_v11 }
 0x359   : > { %v4488_v24 = vmax.f32 %v4486_v57, %v4487_v32  ;;  %v1146_v29 = vcombine.high %v1144_v54, %v1144_v54  ;;  %v2112_v59 = vrot.slane %v2111_v50, 4  ;;  %v2118_v34 = vsel %vm1326_vm0, %v1145_v58, -inf }
 0x35a   : > { %v7082_v15 = vmax.f32 %v4493_v44, %v4494_v42  ;;  %v2125_v35 = vsel %vm1326_vm0, %v1144_v54, -inf  ;;  %v3434_v19 = vcombine.high %v2912_v39, %v2912_v39  ;;  %v4482_v26 = vrot.slane %v4481_v47, 1 }
 0x35b   : > { %v4489_v9 = vrot.slane %v4488_v24, 1  ;;  %v2113_v4 = vmax.f32 %v2111_v50, %v2112_v59  ;;  %v2119_v41 = vrot.slane %v2118_v34, 4  ;;  %v7086_v16 = vmax.f32 %v4474_v63, %v4475_v13 }
 0x35c   : > { %v2126_v43 = vrot.slane %v2125_v35, 4  ;;  %v2132_v27 = vsel %vm1326_vm0, %v1146_v29, -inf  ;;  %v3441_v21 = vrot.slane %v2912_v39, %v5791_v38  ;;  %v7090_v22 = vmax.f32 %v4481_v47, %v4482_v26 }
 0x35d   : > { %v4496_v14 = vrot.slane %v7082_v15, 1  ;;  %v2114_v8 = vrot.slane %v2113_v4, 2  ;;  %v2120_v12 = vmax.f32 %v2118_v34, %v2119_v41  ;;  %v7093_v6 = vmax.f32 %v4488_v24, %v4489_v9 }
 0x35e   : > { %v2127_v18 = vmax.f32 %v2125_v35, %v2126_v43  ;;  %v2133_v61 = vrot.slane %v2132_v27, 4  ;;  %v3448_v7 = vrot.slane %v3434_v19, %v5791_v38  ;;  %v3449_v49 = vcombine.high %v3441_v21, %v3441_v21 }
 0x35f   : > { %v2115_v53 = vmax.f32 %v2113_v4, %v2114_v8  ;;  %v2121_v48 = vrot.slane %v2120_v12, 2  ;;  %v4414_v56 = vsel %vm1326_vm0, %v3441_v21, -inf }
 0x360   : > { %v2128_v60 = vrot.slane %v2127_v18, 2  ;;  %v2134_v33 = vmax.f32 %v2132_v27, %v2133_v61  ;;  %v3450_v1 = vcombine.high %v3448_v7, %v3448_v7  ;;  %v4415_v17 = vrot.slane %v4414_v56, 4 }
 0x361   : > { %v2116_v28 = vrot.slane %v2115_v53, 1  ;;  %v2122_v30 = vmax.f32 %v2120_v12, %v2121_v48  ;;  %v4421_v51 = vsel %vm1326_vm0, %v3449_v49, -inf  ;;  %v4428_v0 = vsel %vm1326_vm0, %v3448_v7, -inf }
 0x362   : > { %v2129_v37 = vmax.f32 %v2127_v18, %v2128_v60  ;;  %v2135_v20 = vrot.slane %v2134_v33, 2  ;;  %v4416_v45 = vmax.f32 %v4414_v56, %v4415_v17  ;;  %v4422_v25 = vrot.slane %v4421_v51, 4 }
 0x363   : > { %v2117_v57 = vmax.f32 %v2115_v53, %v2116_v28  ;;  %v2123_v2 = vrot.slane %v2122_v30, 1  ;;  %v4429_v5 = vrot.slane %v4428_v0, 4  ;;  %v4435_v63 = vsel %vm1326_vm0, %v3450_v1, -inf }
 0x364   : > { %v2130_v44 = vrot.slane %v2129_v37, 1  ;;  %v2136_v39 = vmax.f32 %v2134_v33, %v2135_v20  ;;  %v4417_v11 = vrot.slane %v4416_v45, 2  ;;  %v4423_v32 = vmax.f32 %v4421_v51, %v4422_v25 }
 0x365   : > { %v2124_v54 = vmax.f32 %v2122_v30, %v2123_v2  ;;  %v2279_v58 = vmax.f32 %v2117_v57, %v7062_v52  ;;  %v4430_v13 = vmax.f32 %v4428_v0, %v4429_v5  ;;  %v4436_v42 = vrot.slane %v4435_v63, 4 }
 0x366   : > { %v2131_v50 = vmax.f32 %v2129_v37, %v2130_v44  ;;  %v2137_v47 = vrot.slane %v2136_v39, 1  ;;  %v4418_v24 = vmax.f32 %v4416_v45, %v4417_v11  ;;  %v4424_v29 = vrot.slane %v4423_v32, 2 }
 0x367   : > { %v2280_v59 = vmax.f32 %v2124_v54, %v7067_v55  ;;  %v5361_v34 = vpack.c.bf16 %v2279_v58, %v2279_v58  ;;  %v4431_v35 = vrot.slane %v4430_v13, 2  ;;  %v4437_v19 = vmax.f32 %v4435_v63, %v4436_v42 }
 0x368   : > { %v2138_v26 = vmax.f32 %v2136_v39, %v2137_v47  ;;  %v2281_v9 = vmax.f32 %v2131_v50, %v7069_v3  ;;  %v4419_v4 = vrot.slane %v4418_v24, 1  ;;  %v4425_v41 = vmax.f32 %v4423_v32, %v4424_v29 }
 0x369   : > { %v5362_v43 = vpack.c.bf16 %v2280_v59, %v2280_v59  ;;  %v2599_v27 = vunpack.c.l.b16 %v5361_v34  ;;  %v4432_v21 = vmax.f32 %v4430_v13, %v4431_v35  ;;  %v4438_v52 = vrot.slane %v4437_v19, 2 }
 0x36a   : > { %v7104_v8 = vmax.f32 %v2138_v26, %v7072_v36  ;;  %v5363_v12 = vpack.c.bf16 %v2281_v9, %v2281_v9  ;;  %v4420_v18 = vmax.f32 %v4418_v24, %v4419_v4  ;;  %v4426_v61 = vrot.slane %v4425_v41, 1 }
 0x36b   : > { %v2600_v7 = vunpack.c.l.b16 %v5362_v43  ;;  %v4433_v55 = vrot.slane %v4432_v21, 1  ;;  %v4439_v53 = vmax.f32 %v4437_v19, %v4438_v52  ;;  %v1181_v48 = vcombine.high %v7080_v31, %v7080_v31 }
 0x36c   : > { %v4497_v3 = vmax.f32 %v7082_v15, %v4496_v14  ;;  %v2601_v49 = vunpack.c.l.b16 %v5363_v12  ;;  %v4427_v56 = vmax.f32 %v4425_v41, %v4426_v61  ;;  %v4582_v60 = vmax.f32 %v4420_v18, %v7086_v16 }
 0x36d   : > { %v2663_v33 = vsel %vm2607_vm1, %v2600_v7, %v2599_v27  ;;  %v4434_v1 = vmax.f32 %v4432_v21, %v4433_v55  ;;  %v4440_v36 = vrot.slane %v4439_v53, 1  ;;  %v1188_v17 = vrot.slane %v7080_v31, %v5791_v38 }
 0x36e   : > { %v7114_v28 = vsel %vm2609_vm2, %v2601_v49, %v2663_v33  ;;  %v4583_v30 = vmax.f32 %v4427_v56, %v7090_v22  ;;  %v5425_v51 = vpack.c.bf16 %v4582_v60, %v4582_v60  ;;  %v1195_v14 = vrot.slane %v1181_v48, %v5791_v38 }
 0x36f   : > { %v4441_v0 = vmax.f32 %v4439_v53, %v4440_v36  ;;  %v4584_v15 = vmax.f32 %v4434_v1, %v7093_v6  ;;  %v1196_v37 = vcombine.high %v1188_v17, %v1188_v17  ;;  %v2195_v45 = vsel %vm1326_vm0, %v1188_v17, -inf }
 0x370   : > { %v5426_v16 = vpack.c.bf16 %v4583_v30, %v4583_v30  ;;  %v4902_v20 = vunpack.c.l.b16 %v5425_v51  ;;  %v2923_v25 = vadd.f32 %v6959_v40, %v6868_v23  ;;  %v1197_v2 = vcombine.high %v1195_v14, %v1195_v14 }
 0x371   : > { %v4585_v31 = vmax.f32 %v4441_v0, %v4497_v3  ;;  %v5427_v57 = vpack.c.bf16 %v4584_v15, %v4584_v15  ;;  %v2196_v5 = vrot.slane %v2195_v45, 4  ;;  %v2202_v22 = vsel %vm1326_vm0, %v1196_v37, -inf }
 0x372   : > { %v4903_v63 = vunpack.c.l.b16 %v5426_v16  ;;  %v2209_v44 = vsel %vm1326_vm0, %v1195_v14, -inf  ;;  %v3485_v6 = vcombine.high %v2923_v25, %v2923_v25  ;;  %v2203_v32 = vrot.slane %v2202_v22, 4 }
 0x373   : > { %v4904_v39 = vunpack.c.l.b16 %v5427_v57  ;;  %v2197_v11 = vmax.f32 %v2195_v45, %v2196_v5  ;;  %v2210_v58 = vrot.slane %v2209_v44, 4  ;;  %v2216_v13 = vsel %vm1326_vm0, %v1197_v2, -inf }
 0x374   : > { %v4959_v54 = vsel %vm2607_vm1, %v4903_v63, %v4902_v20  ;;  %v3492_v23 = vrot.slane %v2923_v25, %v5791_v38  ;;  %v2204_v47 = vmax.f32 %v2202_v22, %v2203_v32  ;;  %v2217_v29 = vrot.slane %v2216_v13, 4 }
 0x375   : > { %v7128_v42 = vsel %vm2609_vm2, %v4904_v39, %v4959_v54  ;;  %v2198_v50 = vrot.slane %v2197_v11, 2  ;;  %v2211_v24 = vmax.f32 %v2209_v44, %v2210_v58  ;;  %v3499_v59 = vrot.slane %v3485_v6, %v5791_v38 }
 0x376   : > { %v3500_v34 = vcombine.high %v3492_v23, %v3492_v23  ;;  %v5364_v35 = vpack.c.bf16 %v7104_v8, %v7104_v8  ;;  %v2205_v26 = vrot.slane %v2204_v47, 2  ;;  %v4498_v9 = vsel %vm1326_vm0, %v3492_v23, -inf }
 0x377   : > { %v2199_v19 = vmax.f32 %v2197_v11, %v2198_v50  ;;  %v2212_v4 = vrot.slane %v2211_v24, 2  ;;  %v2218_v41 = vmax.f32 %v2216_v13, %v2217_v29  ;;  %v3501_v43 = vcombine.high %v3499_v59, %v3499_v59 }
 0x378   : > { %v4499_v27 = vrot.slane %v4498_v9, 4  ;;  %v2206_v21 = vmax.f32 %v2204_v47, %v2205_v26  ;;  %v4505_v52 = vsel %vm1326_vm0, %v3500_v34, -inf  ;;  %v4512_v12 = vsel %vm1326_vm0, %v3499_v59, -inf }
 0x379   : > { %v611_v18 = vadd.f32 %v6941_v62, %v6886_v10  ;;  %v2213_v61 = vmax.f32 %v2211_v24, %v2212_v4  ;;  %v2219_v7 = vrot.slane %v2218_v41, 2  ;;  %v4506_v8 = vrot.slane %v4505_v52, 4 }
 0x37a   : > { %v4500_v55 = vmax.f32 %v4498_v9, %v4499_v27  ;;  %v2602_v53 = vunpack.c.l.b16 %v5364_v35  ;;  %v5428_v48 = vpack.c.bf16 %v4585_v31, %v4585_v31  ;;  %v4513_v3 = vrot.slane %v4512_v12, 4 }
 0x37b   : > { %v4519_v49 = vsel %vm1326_vm0, %v3501_v43, -inf  ;;  %v2200_v56 = vrot.slane %v2199_v19, 1  ;;  %v2220_v60 = vmax.f32 %v2218_v41, %v2219_v7  ;;  %v4507_v1 = vmax.f32 %v4505_v52, %v4506_v8 }
 0x37c   : > { %v4501_v33 = vrot.slane %v4500_v55, 2  ;;  %v4514_v36 = vmax.f32 %v4512_v12, %v4513_v3  ;;  %v4520_v17 = vrot.slane %v4519_v49, 4  ;;  %v1147_v30 = vcombine.high %v611_v18, %v611_v18 }
 0x37d   : > { %v2207_v51 = vrot.slane %v2206_v21, 1  ;;  %v2214_v0 = vrot.slane %v2213_v61, 1  ;;  %v4508_v10 = vrot.slane %v4507_v1, 2  ;;  %v1154_v62 = vrot.slane %v611_v18, %v5791_v38 }
 0x37e   : > { %v4502_v15 = vmax.f32 %v4500_v55, %v4501_v33  ;;  %v1161_v14 = vrot.slane %v1147_v30, %v5791_v38  ;;  %v4905_v37 = vunpack.c.l.b16 %v5428_v48  ;;  %v2201_v16 = vmax.f32 %v2199_v19, %v2200_v56 }
 0x37f   : > { %v2221_v20 = vrot.slane %v2220_v60, 1  ;;  %v7143_v45 = vsel %vm2611_vm3, %v2602_v53, %v7114_v28  ;;  %v4515_v25 = vrot.slane %v4514_v36, 2  ;;  %v4521_v31 = vmax.f32 %v4519_v49, %v4520_v17 }
 0x380   : > { %v1162_v57 = vcombine.high %v1154_v62, %v1154_v62  ;;  %v1163_v2 = vcombine.high %v1161_v14, %v1161_v14  ;;  %v2208_v5 = vmax.f32 %v2206_v21, %v2207_v51  ;;  %v2215_v63 = vmax.f32 %v2213_v61, %v2214_v0 }
 0x381   : > { %v2139_v22 = vsel %vm1326_vm0, %v1154_v62, -inf  ;;  %v2153_v44 = vsel %vm1326_vm0, %v1161_v14, -inf  ;;  %v4503_v6 = vrot.slane %v4502_v15, 1  ;;  %v4509_v39 = vmax.f32 %v4507_v1, %v4508_v10 }
 0x382   : > { %v2140_v11 = vrot.slane %v2139_v22, 4  ;;  %v2146_v32 = vsel %vm1326_vm0, %v1162_v57, -inf  ;;  %v2222_v54 = vmax.f32 %v2220_v60, %v2221_v20  ;;  %v2154_v13 = vrot.slane %v2153_v44, 4 }
 0x383   : > { %v2147_v58 = vrot.slane %v2146_v32, 4  ;;  %v2160_v28 = vsel %vm1326_vm0, %v1163_v2, -inf  ;;  %v7149_v23 = vmax.f32 %v4514_v36, %v4515_v25  ;;  %v4522_v50 = vrot.slane %v4521_v31, 2 }
 0x384   : > { %v2141_v47 = vmax.f32 %v2139_v22, %v2140_v11  ;;  %v2161_v24 = vrot.slane %v2160_v28, 4  ;;  %v2155_v59 = vmax.f32 %v2153_v44, %v2154_v13  ;;  %v2915_v34 = vadd.f32 %v6959_v40, %v6900_v46 }
 0x385   : > { %v2148_v29 = vmax.f32 %v2146_v32, %v2147_v58  ;;  %v7155_v35 = vsel %vm2611_vm3, %v4905_v37, %v7128_v42  ;;  %v7157_v19 = vmax.f32 %v4502_v15, %v4503_v6  ;;  %v4510_v26 = vrot.slane %v4509_v39, 1 }
 0x386   : > { %v2142_v9 = vrot.slane %v2141_v47, 2  ;;  %v2162_v4 = vmax.f32 %v2160_v28, %v2161_v24  ;;  %v2156_v43 = vrot.slane %v2155_v59, 2  ;;  %v3451_v27 = vcombine.high %v2915_v34, %v2915_v34 }
 0x387   : > { %v2149_v41 = vrot.slane %v2148_v29, 2  ;;  %v3458_v21 = vrot.slane %v2915_v34, %v5791_v38  ;;  %v4517_v52 = vrot.slane %v7149_v23, 1  ;;  %v4523_v12 = vmax.f32 %v4521_v31, %v4522_v50 }
 0x388   : > { %v2143_v18 = vmax.f32 %v2141_v47, %v2142_v9  ;;  %v2163_v61 = vrot.slane %v2162_v4, 2  ;;  %v2157_v40 = vmax.f32 %v2155_v59, %v2156_v43  ;;  %v3465_v42 = vrot.slane %v3451_v27, %v5791_v38 }
 0x389   : > { %v2150_v46 = vmax.f32 %v2148_v29, %v2149_v41  ;;  %v3466_v7 = vcombine.high %v3458_v21, %v3458_v21  ;;  %v4511_v55 = vmax.f32 %v4509_v39, %v4510_v26  ;;  %v4442_v48 = vsel %vm1326_vm0, %v3458_v21, -inf }
 0x38a   : > { %v2144_v8 = vrot.slane %v2143_v18, 1  ;;  %v2164_v53 = vmax.f32 %v2162_v4, %v2163_v61  ;;  %v2158_v49 = vrot.slane %v2157_v40, 1  ;;  %v3467_v56 = vcombine.high %v3465_v42, %v3465_v42 }
 0x38b   : > { %v2151_v3 = vrot.slane %v2150_v46, 1  ;;  %v4443_v60 = vrot.slane %v4442_v48, 4  ;;  %v4449_v36 = vsel %vm1326_vm0, %v3466_v7, -inf  ;;  %v4456_v17 = vsel %vm1326_vm0, %v3465_v42, -inf }
 0x38c   : > { %v2145_v33 = vmax.f32 %v2143_v18, %v2144_v8  ;;  %v2165_v1 = vrot.slane %v2164_v53, 1  ;;  %v2159_v51 = vmax.f32 %v2157_v40, %v2158_v49  ;;  %v4450_v38 = vrot.slane %v4449_v36, 4 }
 0x38d   : > { %v2152_v30 = vmax.f32 %v2150_v46, %v2151_v3  ;;  %v4444_v0 = vmax.f32 %v4442_v48, %v4443_v60  ;;  %v4457_v62 = vrot.slane %v4456_v17, 4  ;;  %v4463_v14 = vsel %vm1326_vm0, %v3467_v56, -inf }
 0x38e   : > { %v2166_v15 = vmax.f32 %v2164_v53, %v2165_v1  ;;  %v2283_v10 = vmax.f32 %v2145_v33, %v2201_v16  ;;  %v2285_v20 = vmax.f32 %v2159_v51, %v2215_v63  ;;  %v4451_v31 = vmax.f32 %v4449_v36, %v4450_v38 }
 0x38f   : > { %v2284_v37 = vmax.f32 %v2152_v30, %v2208_v5  ;;  %v4445_v25 = vrot.slane %v4444_v0, 2  ;;  %v4458_v22 = vmax.f32 %v4456_v17, %v4457_v62  ;;  %v4464_v44 = vrot.slane %v4463_v14, 4 }
 0x390   : > { %v2286_v57 = vmax.f32 %v2166_v15, %v2222_v54  ;;  %v5365_v2 = vpack.c.bf16 %v2283_v10, %v2283_v10  ;;  %v5367_v39 = vpack.c.bf16 %v2285_v20, %v2285_v20  ;;  %v4452_v32 = vrot.slane %v4451_v31, 2 }
 0x391   : > { %v5366_v6 = vpack.c.bf16 %v2284_v37, %v2284_v37  ;;  %v4446_v11 = vmax.f32 %v4444_v0, %v4445_v25  ;;  %v4459_v28 = vrot.slane %v4458_v22, 2  ;;  %v4465_v50 = vmax.f32 %v4463_v14, %v4464_v44 }
 0x392   : > { %v5368_v58 = vpack.c.bf16 %v2286_v57, %v2286_v57  ;;  %v2603_v13 = vunpack.c.l.b16 %v5365_v2  ;;  %v4524_v16 = vrot.slane %v4523_v12, 1  ;;  %v4453_v29 = vmax.f32 %v4451_v31, %v4452_v32 }
 0x393   : > { %v2604_v47 = vunpack.c.l.b16 %v5366_v6  ;;  %v4447_v24 = vrot.slane %v4446_v11, 1  ;;  %v2605_v5 = vunpack.c.l.b16 %v5367_v39  ;;  %v4460_v54 = vmax.f32 %v4458_v22, %v4459_v28 }
 0x394   : > { %v2666_v63 = vsel %vm2613_vm4, %v2603_v13, %v7143_v45  ;;  %v4466_v59 = vrot.slane %v4465_v50, 2  ;;  %v2606_v34 = vunpack.c.l.b16 %v5368_v58  ;;  %v4454_v4 = vrot.slane %v4453_v29, 1 }
 0x395   : > { %v2667_v26 = vsel %vm2615_vm5, %v2604_v47, %v2666_v63  ;;  %v4448_v9 = vmax.f32 %v4446_v11, %v4447_v24  ;;  %v4518_v41 = vmax.f32 %v7149_v23, %v4517_v52  ;;  %v4461_v27 = vrot.slane %v4460_v54, 1 }
 0x396   : > { %v2668_v43 = vsel %vm2617_vm6, %v2605_v5, %v2667_v26  ;;  %v4467_v21 = vmax.f32 %v4465_v50, %v4466_v59  ;;  %v4455_v61 = vmax.f32 %v4453_v29, %v4454_v4  ;;  %v4525_v45 = vmax.f32 %v4523_v12, %v4524_v16 }
 0x397   : > { %v2669_v18 = vsel %vm2619_vm7, %v2606_v34, %v2668_v43  ;;  %v4586_v46 = vmax.f32 %v4448_v9, %v7157_v19  ;;  %v4462_v42 = vmax.f32 %v4460_v54, %v4461_v27 }
 0x398   : > { %v2677_v40 = vpack.c.b16 %v2669_v18, %v2669_v18  ;;  %v4468_v7 = vrot.slane %v4467_v21, 1  ;;  %v4587_v8 = vmax.f32 %v4455_v61, %v4511_v55 }
 0x399   : > { %v5429_v53 = vpack.c.bf16 %v4586_v46, %v4586_v46  ;;  %v4588_v3 = vmax.f32 %v4462_v42, %v4518_v41 }
 0x39a   : > { %2693 = vst [vmem:[%s6001_s14 + $0x1c] sm:$0xf] %v2677_v40  ;;  %v4469_v48 = vmax.f32 %v4467_v21, %v4468_v7  ;;  %v5430_v23 = vpack.c.bf16 %v4587_v8, %v4587_v8 }
 0x39b   : > { %v4906_v52 = vunpack.c.l.b16 %v5429_v53  ;;  %v5431_v56 = vpack.c.bf16 %v4588_v3, %v4588_v3 }
 0x39c   : > { %v4589_v49 = vmax.f32 %v4469_v48, %v4525_v45  ;;  %v4907_v60 = vunpack.c.l.b16 %v5430_v23 }
 0x39d   : > { %v4962_v33 = vsel %vm2613_vm4, %v4906_v52, %v7155_v35  ;;  %v4908_v19 = vunpack.c.l.b16 %v5431_v56 }
 0x39e   : > { %v5432_v1 = vpack.c.bf16 %v4589_v49, %v4589_v49  ;;  %v4963_v12 = vsel %vm2615_vm5, %v4907_v60, %v4962_v33 }
 0x39f   : > { %v4964_v55 = vsel %vm2617_vm6, %v4908_v19, %v4963_v12 }
 0x3a0   : > { %v4909_v36 = vunpack.c.l.b16 %v5432_v1 }
 0x3a2   : > { %v4965_v17 = vsel %vm2619_vm7, %v4909_v36, %v4964_v55 }
 0x3a3   : > { %v4973_v30 = vpack.c.b16 %v4965_v17, %v4965_v17 }
 0x3a5   : > { %4989 = vst [vmem:[%s6027_s21 + $0x1c] sm:$0xf] %v4973_v30 }
 0x3a6 PF: > { %s15_s17 = sadd.s32 1, %s5664_s17   ;;  %s7194_s15 = smov %s5660_s16 }
 0x3a7   : > { %p12_p5 = scmp.ge.s32.totalorder %s15_s17, 4   ;;  %s7195_s16 = smov %s7197_s18 }
 0x3a9   :  { %14 = sbr.rel (!%p12_p5) target bundleno = 2 (0x2), region = 74 }

</bundles_post_ra>
